<compile_context>
chip_gen: v7x
topology: tpu7x:2x2x1
jax: 0.10.0
libtpu: 0.0.40
codegen_flags: <defaults>
</compile_context>

<pallas_src>
import functools

import jax
import jax.numpy as jnp
from jax.experimental import pallas as pl
from jax.experimental.pallas import tpu as pltpu

BF16 = jnp.bfloat16


def _ru8(v):
    return (v + 7) // 8 * 8


# ---------------------------------------------------------------------------
# Kernel: one group of G nerflets x one batch tile per grid step.
# ---------------------------------------------------------------------------
def _make_kernel(D, W, skips, G):
    GW = G * W
    GH = G * (W // 2)
    RF = GW + 4 * G          # fused xyz_encoding_final rows + sigma-scatter rows

    def kernel(xyz_ref, dir_ref, wxyz_ref, wh_ref, wdir_ref, wrgb_ref,
               b_ref, out_ref):
        xyz = xyz_ref[...]                       # (in_xyz_p, TB) bf16, shared RHS
        dirv = dir_ref[...]                      # (in_dir_p, TB) bf16, shared RHS

        boff = [0]

        def bias(rows):                          # static, 8-aligned row slices
            b = b_ref[boff[0]:boff[0] + rows, :]  # (rows, 1) f32
            boff[0] += rows
            return b

        # ---- layer 0: G weights row-stacked -> one (GW, in_xyz) matmul ------
        h = jnp.dot(wxyz_ref[0:GW, :], xyz, preferred_element_type=jnp.float32)
        h = jnp.maximum(h + bias(GW), 0.0)       # (GW, TB) f32

        # ---- hidden layers 1..D-1: block-diagonal (GW, GW) matmuls ----------
        hoff, xoff = 0, GW
        for i in range(1, D):
            acc = jnp.dot(wh_ref[hoff:hoff + GW, :], h.astype(BF16),
                          preferred_element_type=jnp.float32)
            hoff += GW
            if i in skips:                       # skip: split matmul, no concat
                acc = acc + jnp.dot(wxyz_ref[xoff:xoff + GW, :], xyz,
                                    preferred_element_type=jnp.float32)
                xoff += GW
            h = jnp.maximum(acc + bias(GW), 0.0)

        # ---- fused xyz_encoding_final + sigma scatter ------------------------
        fs = jnp.dot(wh_ref[hoff:hoff + RF, :], h.astype(BF16),
                     preferred_element_type=jnp.float32) + bias(RF)
        hoff += RF
        feat = fs[0:GW, :]                       # (GW, TB) final encoding
        sig4 = fs[GW:GW + 4 * G, :]              # (4G, TB), sigma logits at rows 4j+3

        # ---- dir encoding: block-diag on feat + row-stacked on dir ----------
        de = (jnp.dot(wh_ref[hoff:hoff + GH, :], feat.astype(BF16),
                      preferred_element_type=jnp.float32)
              + jnp.dot(wdir_ref[...], dirv, preferred_element_type=jnp.float32)
              + bias(GH))
        de = jnp.maximum(de, 0.0)                # (GH, TB)

        # ---- rgb head, pre-interleaved to rows 4j+{0,1,2} --------------------
        rgb4 = jnp.dot(wrgb_ref[...], de.astype(BF16),
                       preferred_element_type=jnp.float32) + bias(4 * G)

        row = jax.lax.broadcasted_iota(jnp.int32, (4 * G, rgb4.shape[1]), 0)
        # TODO(synk): 'ssoftplus' assumed to be shifted softplus, softplus(x - 1);
        # verify against the actual PyTorch StackedFc activation.
        out_ref[...] = jnp.where(row % 4 == 3,
                                 jax.nn.softplus(sig4 - 1.0),
                                 jax.nn.sigmoid(rgb4))     # dense (4G, TB) slab

    return kernel


# ---------------------------------------------------------------------------
# Parameter construction (module layout: weights (n, cin, cout), biases (n,1,cout))
# ---------------------------------------------------------------------------
def layer_dims(D, W, in_xyz, in_dir, skips):
    dims = []
    for i in range(D):
        if i == 0:
            cin = in_xyz
        elif i in skips:
            cin = W + in_xyz
        else:
            cin = W
        dims.append((cin, W))
    # order: xyz layers, sigma, final, dir, rgb
    dims += [(W, 1), (W, W), (W + in_dir, W // 2), (W // 2, 3)]
    return dims


def init_params(key, n, D, W, in_xyz, in_dir, skips):
    params = []
    for (cin, cout) in layer_dims(D, W, in_xyz, in_dir, skips):
        key, kw, kb = jax.random.split(key, 3)
        scale = 1.0 / jnp.sqrt(jnp.float32(cin))
        w = jax.random.uniform(kw, (n, cin, cout), jnp.float32, -scale, scale)
        b = jax.random.uniform(kb, (n, 1, cout), jnp.float32, -scale, scale)
        params += [w, b]
    return params


def pack_params(params, *, n, D, W, in_xyz, in_dir, skips, G):
    """Repack module params into 5 coalesced kernel arrays (per group of G).

    W_xyz : (n//G, GW*(1+len(skips)), in_xyz_p)   row-stacked, shared xyz RHS
    W_h   : (n//G, (D-1)*GW + GW+4G + GH, GW)     block-diagonal, h/feat RHS
    W_dir : (n//G, GH, in_dir_p)                  row-stacked, shared dir RHS
    W_rgb : (n//G, 4G, GH)                        block-diag, rgb rows at 4j+{0,1,2}
    bias  : (n//G, D*GW + GW+4G + GH + 4G, 1)     f32, kernel consumption order
    """
    skips = tuple(sorted(skips))
    ng = n // G
    H = W // 2
    in_xyz_p, in_dir_p = _ru8(in_xyz), _ru8(in_dir)

    def wT(a):                       # (n, cin, cout) -> (n, cout, cin)
        return jnp.transpose(a, (0, 2, 1))

    def colb(b):                     # (n, 1, cout)   -> (n, cout, 1)
        return jnp.transpose(b, (0, 2, 1))

    def rowstack(wt):                # (n, co, ci) -> (ng, G*co, ci)
        _, co, ci = wt.shape
        return wt.reshape(ng, G * co, ci)

    def blockdiag(wt):               # (n, co, ci) -> (ng, G*co, G*ci)
        _, co, ci = wt.shape
        eye = jnp.eye(G, dtype=wt.dtype)
        bd = (wt.reshape(ng, G, co, ci)[:, :, :, None, :]
              * eye[None, :, None, :, None])
        return bd.reshape(ng, G * co, G * ci)

    def pad_ci(a, target):
        return jnp.pad(a, ((0, 0), (0, 0), (0, target - a.shape[-1])))

    xyz_w = [params[2 * i] for i in range(D)]
    xyz_b = [params[2 * i + 1] for i in range(D)]
    ws, bs = params[2 * D], params[2 * D + 1]         # sigma (n, W, 1)
    wf, bfin = params[2 * D + 2], params[2 * D + 3]   # final (n, W, W)
    wd, bd_ = params[2 * D + 4], params[2 * D + 5]    # dir   (n, W+in_dir, W//2)
    wr, br = params[2 * D + 6], params[2 * D + 7]     # rgb   (n, W//2, 3)

    # xyz-consuming weights (shared xyz RHS): layer 0 + each skip layer's xyz part
    xyz_parts = [rowstack(wT(xyz_w[0]))]
    for i in skips:
        xyz_parts.append(rowstack(wT(xyz_w[i][:, :in_xyz, :])))
    W_xyz = pad_ci(jnp.concatenate(xyz_parts, axis=1), in_xyz_p).astype(BF16)

    # h/feat-consuming weights (block-diagonal across G nerflets)
    h_parts = []
    for i in range(1, D):
        wi = xyz_w[i][:, in_xyz:, :] if i in skips else xyz_w[i]
        h_parts.append(blockdiag(wT(wi)))                           # (ng, GW, GW)
    ws4 = jnp.concatenate([jnp.zeros((n, 3, W), ws.dtype), wT(ws)], axis=1)
    h_parts.append(jnp.concatenate([blockdiag(wT(wf)), blockdiag(ws4)], axis=1))
    h_parts.append(blockdiag(wT(wd[:, :W, :])))                     # (ng, GH, GW)
    W_h = jnp.concatenate(h_parts, axis=1).astype(BF16)

    # dir-consuming weight (shared dir RHS)
    W_dir = pad_ci(rowstack(wT(wd[:, W:, :])), in_dir_p).astype(BF16)

    # rgb head, pre-interleaved so outputs land at rows 4j+{0,1,2}
    wr4 = jnp.concatenate([wT(wr), jnp.zeros((n, 1, H), wr.dtype)], axis=1)
    W_rgb = blockdiag(wr4).astype(BF16)

    # biases, concatenated in kernel consumption order
    b_parts = [rowstack(colb(xyz_b[i])) for i in range(D)]
    bs4 = jnp.concatenate([jnp.zeros((n, 3, 1), bs.dtype), colb(bs)], axis=1)
    b_parts.append(jnp.concatenate([rowstack(colb(bfin)), rowstack(bs4)], axis=1))
    b_parts.append(rowstack(colb(bd_)))
    br4 = jnp.concatenate([colb(br), jnp.zeros((n, 1, 1), br.dtype)], axis=1)
    b_parts.append(rowstack(br4))
    bias = jnp.concatenate(b_parts, axis=1).astype(jnp.float32)

    return W_xyz, W_h, W_dir, W_rgb, bias


# ---------------------------------------------------------------------------
# Pallas wrapper
# ---------------------------------------------------------------------------
@functools.partial(
    jax.jit,
    static_argnames=("n", "D", "W", "in_xyz", "in_dir", "skips", "G", "TB"))
def nerflets_forward(x, packed, *, n, D, W, in_xyz, in_dir, skips, G=8, TB=512):
    skips = tuple(sorted(skips))
    B = x.shape[0]
    assert B % TB == 0, "batch must be a multiple of the batch tile"
    assert n % G == 0, "n must be a multiple of the nerflet group size"
    assert all(0 < s < D for s in skips)
    GW, GH = G * W, G * (W // 2)
    assert GW % 8 == 0 and GH % 8 == 0 and (4 * G) % 8 == 0
    in_xyz_p, in_dir_p = _ru8(in_xyz), _ru8(in_dir)

    W_xyz, W_h, W_dir, W_rgb, bias = packed
    R_xyz, R_h, R_b = W_xyz.shape[1], W_h.shape[1], bias.shape[1]

    # Transposed, padded, bf16 inputs: batch on the 128-lane axis.
    xyz_t = jnp.pad(x[:, :in_xyz].T,
                    ((0, in_xyz_p - in_xyz), (0, 0))).astype(BF16)
    dir_t = jnp.pad(x[:, in_xyz:in_xyz + in_dir].T,
                    ((0, in_dir_p - in_dir), (0, 0))).astype(BF16)

    # Group axis outermost, batch axis innermost: weight blocks depend only on
    # g, so they are DMAed once per group and stay VMEM-resident for the sweep.
    grid = (n // G, B // TB)

    in_specs = [
        pl.BlockSpec((in_xyz_p, TB), lambda g, b: (0, b)),
        pl.BlockSpec((in_dir_p, TB), lambda g, b: (0, b)),
        pl.BlockSpec((None, R_xyz, in_xyz_p), lambda g, b: (g, 0, 0)),
        pl.BlockSpec((None, R_h, GW), lambda g, b: (g, 0, 0)),
        pl.BlockSpec((None, GH, in_dir_p), lambda g, b: (g, 0, 0)),
        pl.BlockSpec((None, 4 * G, GH), lambda g, b: (g, 0, 0)),
        pl.BlockSpec((None, R_b, 1), lambda g, b: (g, 0, 0)),
    ]
    out_specs = pl.BlockSpec((4 * G, TB), lambda g, b: (g, b))

    out = pl.pallas_call(
        _make_kernel(D, W, skips, G),
        out_shape=jax.ShapeDtypeStruct((n * 4, B), jnp.float32),
        grid=grid,
        in_specs=in_specs,
        out_specs=out_specs,
        compiler_params=pltpu.CompilerParams(
            dimension_semantics=("parallel", "parallel"),
            vmem_limit_bytes=48 * 1024 * 1024,   # <= v7x 64 MiB physical VMEM
        ),
    )(xyz_t, dir_t, W_xyz, W_h, W_dir, W_rgb, bias)

    # (n*4, B) -> module layout (n, B, 4).
    # TODO(synk): consumers that accept the lane-dense (n, 4, B) layout can skip
    # this transpose (it is a full extra HBM read+write of the output).
    return jnp.transpose(out.reshape(n, 4, B), (0, 2, 1))


# ---------------------------------------------------------------------------
# Pure-JAX reference (mirrors the kernel's bf16-in / f32-accumulate numerics)
# ---------------------------------------------------------------------------
def nerflets_ref(x, params, *, n, D, W, in_xyz, in_dir, skips):
    B = x.shape[0]
    xyz = jnp.broadcast_to(x[None, :, :in_xyz], (n, B, in_xyz))
    dirv = jnp.broadcast_to(x[None, :, in_xyz:in_xyz + in_dir], (n, B, in_dir))

    def fc(h, w, b):
        return jnp.einsum("nbi,nio->nbo", h.astype(BF16), w.astype(BF16),
                          preferred_element_type=jnp.float32) + b

    h = xyz
    pi = 0
    for i in range(D):
        if i in skips:
            h = jnp.concatenate([xyz, h], axis=-1)
        h = jnp.maximum(fc(h, params[pi], params[pi + 1]), 0.0)
        pi += 2
    sigma = jax.nn.softplus(fc(h, params[pi], params[pi + 1]) - 1.0); pi += 2
    feat = fc(h, params[pi], params[pi + 1]); pi += 2
    d_in = jnp.concatenate([feat, dirv], axis=-1)
    de = jnp.maximum(fc(d_in, params[pi], params[pi + 1]), 0.0); pi += 2
    rgb = jax.nn.sigmoid(fc(de, params[pi], params[pi + 1])); pi += 2
    return jnp.concatenate([rgb, sigma], axis=-1)


# ---------------------------------------------------------------------------
if __name__ == "__main__":
    # Small but representative config (skip connection at i=4 exercised).
    n, D, W = 16, 5, 32
    in_xyz, in_dir = 63, 27
    skips = (4,)
    B = 512
    G, TB = 8, 256    # G*W = 256 fills the MXU; use G=4 on v5e (128-wide MXU)

    key = jax.random.PRNGKey(0)
    key, kx = jax.random.split(key)
    x = jax.random.normal(kx, (B, in_xyz + in_dir), jnp.float32)
    params = init_params(key, n, D, W, in_xyz, in_dir, skips)

    packed = pack_params(params, n=n, D=D, W=W, in_xyz=in_xyz, in_dir=in_dir,
                         skips=skips, G=G)

    # TODO(synk): topk>0 path (StackedFcSlow per-ray top-k nerflet gather),
    # sigma_only early-exit, and with_semantics sem_logits are not part of this
    # dense-path kernel.
    out = nerflets_forward(x, packed, n=n, D=D, W=W, in_xyz=in_xyz,
                           in_dir=in_dir, skips=skips, G=G, TB=TB)
    out = jax.block_until_ready(out)

    ref = nerflets_ref(x, params, n=n, D=D, W=W, in_xyz=in_xyz,
                       in_dir=in_dir, skips=skips)

    assert out.shape == (n, B, 4), out.shape
    if not jnp.allclose(out, ref, atol=2e-3, rtol=2e-3):
        err = float(jnp.max(jnp.abs(out - ref)))
        raise AssertionError(
            f"Pallas kernel output mismatch vs JAX reference (max abs err {err})")
    print("KERNEL_OK")
</pallas_src>

<mosaic_0001>
module attributes {stable_mosaic.version = 11 : i64} {
  func.func @kernel(%arg0: i32, %arg1: i32, %arg2: memref<64x256xbf16, #tpu.memory_space<vmem>>, %arg3: memref<32x256xbf16, #tpu.memory_space<vmem>>, %arg4: memref<1x512x64xbf16, #tpu.memory_space<vmem>>, %arg5: memref<1x1440x256xbf16, #tpu.memory_space<vmem>>, %arg6: memref<1x128x32xbf16, #tpu.memory_space<vmem>>, %arg7: memref<1x32x128xbf16, #tpu.memory_space<vmem>>, %arg8: memref<1x1728x1xf32, #tpu.memory_space<vmem>>, %arg9: memref<32x256xf32, #tpu.memory_space<vmem>>) attributes {dimension_semantics = [#tpu.dimension_semantics<parallel>, #tpu.dimension_semantics<parallel>], iteration_bounds = array<i64: 2, 2>, scalar_prefetch = 0 : i64, scratch_operands = 0 : i64, tpu.core_type = #tpu.core_type<tc>, window_params = [{transform_indices = @transform_0, window_bounds = array<i64: 64, 256>}, {transform_indices = @transform_1, window_bounds = array<i64: 32, 256>}, {transform_indices = @transform_2, window_bounds = array<i64: 1, 512, 64>}, {transform_indices = @transform_3, window_bounds = array<i64: 1, 1440, 256>}, {transform_indices = @transform_4, window_bounds = array<i64: 1, 128, 32>}, {transform_indices = @transform_5, window_bounds = array<i64: 1, 32, 128>}, {transform_indices = @transform_6, window_bounds = array<i64: 1, 1728, 1>}, {transform_indices = @transform_7, window_bounds = array<i64: 32, 256>}]} {
    %c0 = arith.constant 0 : index
    %c0_0 = arith.constant 0 : index
    %0 = vector.load %arg2[%c0, %c0_0] : memref<64x256xbf16, #tpu.memory_space<vmem>>, vector<64x256xbf16>
    %c0_1 = arith.constant 0 : index
    %c0_2 = arith.constant 0 : index
    %1 = vector.load %arg3[%c0_1, %c0_2] : memref<32x256xbf16, #tpu.memory_space<vmem>>, vector<32x256xbf16>
    %c0_3 = arith.constant 0 : index
    %c0_4 = arith.constant 0 : index
    %c0_5 = arith.constant 0 : index
    %2 = vector.load %arg4[%c0_3, %c0_4, %c0_5] : memref<1x512x64xbf16, #tpu.memory_space<vmem>>, vector<1x256x64xbf16>
    %3 = vector.shape_cast %2 : vector<1x256x64xbf16> to vector<256x64xbf16>
    %cst = arith.constant dense<0.000000e+00> : vector<256x256xf32>
    %4 = tpu.matmul %3, %0, %cst {dimension_numbers = #tpu.dot_dimension_numbers<[1], [0], [0], [1], [0, 0, 1, 1], [], []>} : vector<256x64xbf16>, vector<64x256xbf16>, vector<256x256xf32> -> vector<256x256xf32>
    %c0_6 = arith.constant 0 : index
    %c0_7 = arith.constant 0 : index
    %c0_8 = arith.constant 0 : index
    %5 = vector.load %arg8[%c0_6, %c0_7, %c0_8] : memref<1x1728x1xf32, #tpu.memory_space<vmem>>, vector<1x256x1xf32>
    %6 = vector.shape_cast %5 : vector<1x256x1xf32> to vector<256x1xf32>
    %7 = vector.broadcast %6 : vector<256x1xf32> to vector<256x256xf32>
    %8 = arith.addf %4, %7 : vector<256x256xf32>
    %cst_9 = arith.constant 0.000000e+00 : f32
    %9 = vector.broadcast %cst_9 : f32 to vector<256x256xf32>
    %10 = arith.maximumf %8, %9 : vector<256x256xf32>
    %c0_10 = arith.constant 0 : index
    %c0_11 = arith.constant 0 : index
    %c0_12 = arith.constant 0 : index
    %11 = vector.load %arg5[%c0_10, %c0_11, %c0_12] : memref<1x1440x256xbf16, #tpu.memory_space<vmem>>, vector<1x256x256xbf16>
    %12 = vector.shape_cast %11 : vector<1x256x256xbf16> to vector<256x256xbf16>
    %13 = arith.truncf %10 : vector<256x256xf32> to vector<256x256xbf16>
    %cst_13 = arith.constant dense<0.000000e+00> : vector<256x256xf32>
    %14 = tpu.matmul %12, %13, %cst_13 {dimension_numbers = #tpu.dot_dimension_numbers<[1], [0], [0], [1], [0, 0, 1, 1], [], []>} : vector<256x256xbf16>, vector<256x256xbf16>, vector<256x256xf32> -> vector<256x256xf32>
    %c0_14 = arith.constant 0 : index
    %c256 = arith.constant 256 : index
    %c0_15 = arith.constant 0 : index
    %15 = vector.load %arg8[%c0_14, %c256, %c0_15] : memref<1x1728x1xf32, #tpu.memory_space<vmem>>, vector<1x256x1xf32>
    %16 = vector.shape_cast %15 : vector<1x256x1xf32> to vector<256x1xf32>
    %17 = vector.broadcast %16 : vector<256x1xf32> to vector<256x256xf32>
    %18 = arith.addf %14, %17 : vector<256x256xf32>
    %cst_16 = arith.constant 0.000000e+00 : f32
    %19 = vector.broadcast %cst_16 : f32 to vector<256x256xf32>
    %20 = arith.maximumf %18, %19 : vector<256x256xf32>
    %c0_17 = arith.constant 0 : index
    %c256_18 = arith.constant 256 : index
    %c0_19 = arith.constant 0 : index
    %21 = vector.load %arg5[%c0_17, %c256_18, %c0_19] : memref<1x1440x256xbf16, #tpu.memory_space<vmem>>, vector<1x256x256xbf16>
    %22 = vector.shape_cast %21 : vector<1x256x256xbf16> to vector<256x256xbf16>
    %23 = arith.truncf %20 : vector<256x256xf32> to vector<256x256xbf16>
    %cst_20 = arith.constant dense<0.000000e+00> : vector<256x256xf32>
    %24 = tpu.matmul %22, %23, %cst_20 {dimension_numbers = #tpu.dot_dimension_numbers<[1], [0], [0], [1], [0, 0, 1, 1], [], []>} : vector<256x256xbf16>, vector<256x256xbf16>, vector<256x256xf32> -> vector<256x256xf32>
    %c0_21 = arith.constant 0 : index
    %c512 = arith.constant 512 : index
    %c0_22 = arith.constant 0 : index
    %25 = vector.load %arg8[%c0_21, %c512, %c0_22] : memref<1x1728x1xf32, #tpu.memory_space<vmem>>, vector<1x256x1xf32>
    %26 = vector.shape_cast %25 : vector<1x256x1xf32> to vector<256x1xf32>
    %27 = vector.broadcast %26 : vector<256x1xf32> to vector<256x256xf32>
    %28 = arith.addf %24, %27 : vector<256x256xf32>
    %cst_23 = arith.constant 0.000000e+00 : f32
    %29 = vector.broadcast %cst_23 : f32 to vector<256x256xf32>
    %30 = arith.maximumf %28, %29 : vector<256x256xf32>
    %c0_24 = arith.constant 0 : index
    %c512_25 = arith.constant 512 : index
    %c0_26 = arith.constant 0 : index
    %31 = vector.load %arg5[%c0_24, %c512_25, %c0_26] : memref<1x1440x256xbf16, #tpu.memory_space<vmem>>, vector<1x256x256xbf16>
    %32 = vector.shape_cast %31 : vector<1x256x256xbf16> to vector<256x256xbf16>
    %33 = arith.truncf %30 : vector<256x256xf32> to vector<256x256xbf16>
    %cst_27 = arith.constant dense<0.000000e+00> : vector<256x256xf32>
    %34 = tpu.matmul %32, %33, %cst_27 {dimension_numbers = #tpu.dot_dimension_numbers<[1], [0], [0], [1], [0, 0, 1, 1], [], []>} : vector<256x256xbf16>, vector<256x256xbf16>, vector<256x256xf32> -> vector<256x256xf32>
    %c0_28 = arith.constant 0 : index
    %c768 = arith.constant 768 : index
    %c0_29 = arith.constant 0 : index
    %35 = vector.load %arg8[%c0_28, %c768, %c0_29] : memref<1x1728x1xf32, #tpu.memory_space<vmem>>, vector<1x256x1xf32>
    %36 = vector.shape_cast %35 : vector<1x256x1xf32> to vector<256x1xf32>
    %37 = vector.broadcast %36 : vector<256x1xf32> to vector<256x256xf32>
    %38 = arith.addf %34, %37 : vector<256x256xf32>
    %cst_30 = arith.constant 0.000000e+00 : f32
    %39 = vector.broadcast %cst_30 : f32 to vector<256x256xf32>
    %40 = arith.maximumf %38, %39 : vector<256x256xf32>
    %c0_31 = arith.constant 0 : index
    %c768_32 = arith.constant 768 : index
    %c0_33 = arith.constant 0 : index
    %41 = vector.load %arg5[%c0_31, %c768_32, %c0_33] : memref<1x1440x256xbf16, #tpu.memory_space<vmem>>, vector<1x256x256xbf16>
    %42 = vector.shape_cast %41 : vector<1x256x256xbf16> to vector<256x256xbf16>
    %43 = arith.truncf %40 : vector<256x256xf32> to vector<256x256xbf16>
    %cst_34 = arith.constant dense<0.000000e+00> : vector<256x256xf32>
    %44 = tpu.matmul %42, %43, %cst_34 {dimension_numbers = #tpu.dot_dimension_numbers<[1], [0], [0], [1], [0, 0, 1, 1], [], []>} : vector<256x256xbf16>, vector<256x256xbf16>, vector<256x256xf32> -> vector<256x256xf32>
    %c0_35 = arith.constant 0 : index
    %c256_36 = arith.constant 256 : index
    %c0_37 = arith.constant 0 : index
    %45 = vector.load %arg4[%c0_35, %c256_36, %c0_37] : memref<1x512x64xbf16, #tpu.memory_space<vmem>>, vector<1x256x64xbf16>
    %46 = vector.shape_cast %45 : vector<1x256x64xbf16> to vector<256x64xbf16>
    %cst_38 = arith.constant dense<0.000000e+00> : vector<256x256xf32>
    %47 = tpu.matmul %46, %0, %cst_38 {dimension_numbers = #tpu.dot_dimension_numbers<[1], [0], [0], [1], [0, 0, 1, 1], [], []>} : vector<256x64xbf16>, vector<64x256xbf16>, vector<256x256xf32> -> vector<256x256xf32>
    %48 = arith.addf %44, %47 : vector<256x256xf32>
    %c0_39 = arith.constant 0 : index
    %c1024 = arith.constant 1024 : index
    %c0_40 = arith.constant 0 : index
    %49 = vector.load %arg8[%c0_39, %c1024, %c0_40] : memref<1x1728x1xf32, #tpu.memory_space<vmem>>, vector<1x256x1xf32>
    %50 = vector.shape_cast %49 : vector<1x256x1xf32> to vector<256x1xf32>
    %51 = vector.broadcast %50 : vector<256x1xf32> to vector<256x256xf32>
    %52 = arith.addf %48, %51 : vector<256x256xf32>
    %cst_41 = arith.constant 0.000000e+00 : f32
    %53 = vector.broadcast %cst_41 : f32 to vector<256x256xf32>
    %54 = arith.maximumf %52, %53 : vector<256x256xf32>
    %c0_42 = arith.constant 0 : index
    %c1024_43 = arith.constant 1024 : index
    %c0_44 = arith.constant 0 : index
    %55 = vector.load %arg5[%c0_42, %c1024_43, %c0_44] : memref<1x1440x256xbf16, #tpu.memory_space<vmem>>, vector<1x288x256xbf16>
    %56 = vector.shape_cast %55 : vector<1x288x256xbf16> to vector<288x256xbf16>
    %57 = arith.truncf %54 : vector<256x256xf32> to vector<256x256xbf16>
    %cst_45 = arith.constant dense<0.000000e+00> : vector<288x256xf32>
    %58 = tpu.matmul %56, %57, %cst_45 {dimension_numbers = #tpu.dot_dimension_numbers<[1], [0], [0], [1], [0, 0, 1, 1], [], []>} : vector<288x256xbf16>, vector<256x256xbf16>, vector<288x256xf32> -> vector<288x256xf32>
    %c0_46 = arith.constant 0 : index
    %c1280 = arith.constant 1280 : index
    %c0_47 = arith.constant 0 : index
    %59 = vector.load %arg8[%c0_46, %c1280, %c0_47] : memref<1x1728x1xf32, #tpu.memory_space<vmem>>, vector<1x288x1xf32>
    %60 = vector.shape_cast %59 : vector<1x288x1xf32> to vector<288x1xf32>
    %61 = vector.broadcast %60 : vector<288x1xf32> to vector<288x256xf32>
    %62 = arith.addf %58, %61 : vector<288x256xf32>
    %63 = vector.extract_strided_slice %62 {offsets = [0, 0], sizes = [256, 256], strides = [1, 1]} : vector<288x256xf32> to vector<256x256xf32>
    %64 = vector.extract_strided_slice %62 {offsets = [256, 0], sizes = [32, 256], strides = [1, 1]} : vector<288x256xf32> to vector<32x256xf32>
    %c0_48 = arith.constant 0 : index
    %c1312 = arith.constant 1312 : index
    %c0_49 = arith.constant 0 : index
    %65 = vector.load %arg5[%c0_48, %c1312, %c0_49] : memref<1x1440x256xbf16, #tpu.memory_space<vmem>>, vector<1x128x256xbf16>
    %66 = vector.shape_cast %65 : vector<1x128x256xbf16> to vector<128x256xbf16>
    %67 = arith.truncf %63 : vector<256x256xf32> to vector<256x256xbf16>
    %cst_50 = arith.constant dense<0.000000e+00> : vector<128x256xf32>
    %68 = tpu.matmul %66, %67, %cst_50 {dimension_numbers = #tpu.dot_dimension_numbers<[1], [0], [0], [1], [0, 0, 1, 1], [], []>} : vector<128x256xbf16>, vector<256x256xbf16>, vector<128x256xf32> -> vector<128x256xf32>
    %c0_51 = arith.constant 0 : index
    %c0_52 = arith.constant 0 : index
    %c0_53 = arith.constant 0 : index
    %69 = vector.load %arg6[%c0_51, %c0_52, %c0_53] : memref<1x128x32xbf16, #tpu.memory_space<vmem>>, vector<1x128x32xbf16>
    %70 = vector.shape_cast %69 : vector<1x128x32xbf16> to vector<128x32xbf16>
    %cst_54 = arith.constant dense<0.000000e+00> : vector<128x256xf32>
    %71 = tpu.matmul %70, %1, %cst_54 {dimension_numbers = #tpu.dot_dimension_numbers<[1], [0], [0], [1], [0, 0, 1, 1], [], []>} : vector<128x32xbf16>, vector<32x256xbf16>, vector<128x256xf32> -> vector<128x256xf32>
    %72 = arith.addf %68, %71 : vector<128x256xf32>
    %c0_55 = arith.constant 0 : index
    %c1568 = arith.constant 1568 : index
    %c0_56 = arith.constant 0 : index
    %73 = vector.load %arg8[%c0_55, %c1568, %c0_56] : memref<1x1728x1xf32, #tpu.memory_space<vmem>>, vector<1x128x1xf32>
    %74 = vector.shape_cast %73 : vector<1x128x1xf32> to vector<128x1xf32>
    %75 = vector.broadcast %74 : vector<128x1xf32> to vector<128x256xf32>
    %76 = arith.addf %72, %75 : vector<128x256xf32>
    %cst_57 = arith.constant 0.000000e+00 : f32
    %77 = vector.broadcast %cst_57 : f32 to vector<128x256xf32>
    %78 = arith.maximumf %76, %77 : vector<128x256xf32>
    %c0_58 = arith.constant 0 : index
    %c0_59 = arith.constant 0 : index
    %c0_60 = arith.constant 0 : index
    %79 = vector.load %arg7[%c0_58, %c0_59, %c0_60] : memref<1x32x128xbf16, #tpu.memory_space<vmem>>, vector<1x32x128xbf16>
    %80 = vector.shape_cast %79 : vector<1x32x128xbf16> to vector<32x128xbf16>
    %81 = arith.truncf %78 : vector<128x256xf32> to vector<128x256xbf16>
    %cst_61 = arith.constant dense<0.000000e+00> : vector<32x256xf32>
    %82 = tpu.matmul %80, %81, %cst_61 {dimension_numbers = #tpu.dot_dimension_numbers<[1], [0], [0], [1], [0, 0, 1, 1], [], []>} : vector<32x128xbf16>, vector<128x256xbf16>, vector<32x256xf32> -> vector<32x256xf32>
    %c0_62 = arith.constant 0 : index
    %c1696 = arith.constant 1696 : index
    %c0_63 = arith.constant 0 : index
    %83 = vector.load %arg8[%c0_62, %c1696, %c0_63] : memref<1x1728x1xf32, #tpu.memory_space<vmem>>, vector<1x32x1xf32>
    %84 = vector.shape_cast %83 : vector<1x32x1xf32> to vector<32x1xf32>
    %85 = vector.broadcast %84 : vector<32x1xf32> to vector<32x256xf32>
    %86 = arith.addf %82, %85 : vector<32x256xf32>
    %87 = tpu.iota {dimensions = array<i32: 0>} : vector<32x256xi32>
    %c4_i32 = arith.constant 4 : i32
    %c0_i32 = arith.constant 0 : i32
    %88 = arith.cmpi eq, %c4_i32, %c0_i32 : i32
    %c1_i32 = arith.constant 1 : i32
    %89 = arith.select %88, %c1_i32, %c4_i32 : i32
    %90 = vector.broadcast %89 : i32 to vector<32x256xi32>
    %91 = arith.remsi %87, %90 : vector<32x256xi32>
    %c0_i32_64 = arith.constant 0 : i32
    %92 = vector.broadcast %c0_i32_64 : i32 to vector<32x256xi32>
    %93 = arith.cmpi ne, %91, %92 : vector<32x256xi32>
    %c0_i32_65 = arith.constant 0 : i32
    %94 = vector.broadcast %c0_i32_65 : i32 to vector<32x256xi32>
    %95 = arith.cmpi slt, %91, %94 : vector<32x256xi32>
    %c0_i32_66 = arith.constant 0 : i32
    %96 = arith.cmpi slt, %89, %c0_i32_66 : i32
    %97 = vector.broadcast %96 : i1 to vector<32x256xi1>
    %98 = vector.broadcast %97 : vector<32x256xi1> to vector<32x256xi1>
    %99 = arith.xori %95, %98 : vector<32x256xi1>
    %100 = arith.andi %99, %93 : vector<32x256xi1>
    %101 = vector.broadcast %89 : i32 to vector<32x256xi32>
    %102 = arith.addi %91, %101 : vector<32x256xi32>
    %103 = arith.select %100, %102, %91 : vector<32x256xi1>, vector<32x256xi32>
    %c3_i32 = arith.constant 3 : i32
    %104 = vector.broadcast %c3_i32 : i32 to vector<32x256xi32>
    %105 = arith.cmpi eq, %103, %104 : vector<32x256xi32>
    %cst_67 = arith.constant 1.000000e+00 : f32
    %106 = vector.broadcast %cst_67 : f32 to vector<32x256xf32>
    %107 = arith.subf %64, %106 : vector<32x256xf32>
    %cst_68 = arith.constant 0.000000e+00 : f32
    %108 = vector.broadcast %cst_68 : f32 to vector<32x256xf32>
    %109 = arith.maximumf %107, %108 : vector<32x256xf32>
    %110 = vector.broadcast %cst_68 : f32 to vector<32x256xf32>
    %111 = arith.subf %107, %110 : vector<32x256xf32>
    %112 = arith.cmpf one, %111, %111 : vector<32x256xf32>
    %113 = vector.broadcast %cst_68 : f32 to vector<32x256xf32>
    %114 = arith.addf %107, %113 : vector<32x256xf32>
    %115 = math.absf %111 : vector<32x256xf32>
    %cst_69 = arith.constant 0.000000e+00 : f32
    %116 = vector.broadcast %cst_69 : f32 to vector<32x256xf32>
    %117 = arith.subf %116, %115 : vector<32x256xf32>
    %118 = math.exp %117 : vector<32x256xf32>
    %119 = math.log1p %118 : vector<32x256xf32>
    %120 = arith.addf %109, %119 : vector<32x256xf32>
    %121 = arith.select %112, %114, %120 : vector<32x256xi1>, vector<32x256xf32>
    %122 = arith.negf %86 : vector<32x256xf32>
    %123 = math.exp %122 : vector<32x256xf32>
    %cst_70 = arith.constant 1.000000e+00 : f32
    %124 = vector.broadcast %cst_70 : f32 to vector<32x256xf32>
    %125 = arith.addf %124, %123 : vector<32x256xf32>
    %126 = arith.divf %124, %125 : vector<32x256xf32>
    %127 = arith.select %105, %121, %126 : vector<32x256xi1>, vector<32x256xf32>
    %c0_71 = arith.constant 0 : index
    %c0_72 = arith.constant 0 : index
    %128 = vector.load %arg9[%c0_71, %c0_72] : memref<32x256xf32, #tpu.memory_space<vmem>>, vector<32x256xf32>
    tpu.vector_store %arg9[%c0_71, %c0_72], %127 {strides = array<i32>} : memref<32x256xf32, #tpu.memory_space<vmem>>, vector<32x256xf32>,
    return
  }
  func.func @transform_0(%arg0: i32, %arg1: i32) -> (i32, i32) {
    %c0_i32 = arith.constant 0 : i32
    %c0_i32_0 = arith.constant 0 : i32
    return %c0_i32, %arg1 : i32, i32
  }
  func.func @transform_1(%arg0: i32, %arg1: i32) -> (i32, i32) {
    %c0_i32 = arith.constant 0 : i32
    %c0_i32_0 = arith.constant 0 : i32
    return %c0_i32, %arg1 : i32, i32
  }
  func.func @transform_2(%arg0: i32, %arg1: i32) -> (i32, i32, i32) {
    %c0_i32 = arith.constant 0 : i32
    %c0_i32_0 = arith.constant 0 : i32
    %c0_i32_1 = arith.constant 0 : i32
    return %arg0, %c0_i32, %c0_i32_0 : i32, i32, i32
  }
  func.func @transform_3(%arg0: i32, %arg1: i32) -> (i32, i32, i32) {
    %c0_i32 = arith.constant 0 : i32
    %c0_i32_0 = arith.constant 0 : i32
    %c0_i32_1 = arith.constant 0 : i32
    return %arg0, %c0_i32, %c0_i32_0 : i32, i32, i32
  }
  func.func @transform_4(%arg0: i32, %arg1: i32) -> (i32, i32, i32) {
    %c0_i32 = arith.constant 0 : i32
    %c0_i32_0 = arith.constant 0 : i32
    %c0_i32_1 = arith.constant 0 : i32
    return %arg0, %c0_i32, %c0_i32_0 : i32, i32, i32
  }
  func.func @transform_5(%arg0: i32, %arg1: i32) -> (i32, i32, i32) {
    %c0_i32 = arith.constant 0 : i32
    %c0_i32_0 = arith.constant 0 : i32
    %c0_i32_1 = arith.constant 0 : i32
    return %arg0, %c0_i32, %c0_i32_0 : i32, i32, i32
  }
  func.func @transform_6(%arg0: i32, %arg1: i32) -> (i32, i32, i32) {
    %c0_i32 = arith.constant 0 : i32
    %c0_i32_0 = arith.constant 0 : i32
    %c0_i32_1 = arith.constant 0 : i32
    return %arg0, %c0_i32, %c0_i32_0 : i32, i32, i32
  }
  func.func @transform_7(%arg0: i32, %arg1: i32) -> (i32, i32) {
    %c0_i32 = arith.constant 0 : i32
    return %arg0, %arg1 : i32, i32
  }
}

</mosaic_0001>

<bundles_post_ra>
// kernel: nerflets_forward.1
= control target key start
LH: loop header
LB: loop body
LE: loop exit
PB: predicated region body
PF: predicated region fallthrough
CT: control target
= control target key end

     0   :  { %s8656_s0 = inlined_call_operand.vmem [shape: bf16[64,512], index: 0, kind: input, shape index: {}]   ;;  %s8657_s1 = inlined_call_operand.vmem [shape: bf16[32,512], index: 1, kind: input, shape index: {}]   ;;  %s8658_s2 = inlined_call_operand.vmem [shape: bf16[2,512,64], index: 2, kind: input, shape index: {}]   ;;  %s8659_s3 = inlined_call_operand.vmem [shape: bf16[2,1440,256], index: 3, kind: input, shape index: {}]   ;;  %s8660_s4 = inlined_call_operand.vmem [shape: bf16[2,128,32], index: 4, kind: input, shape index: {}]   ;;  %s8661_s5 = inlined_call_operand.vmem [shape: bf16[2,32,128], index: 5, kind: input, shape index: {}]   ;;  %s8662_s6 = inlined_call_operand.vmem [shape: f32[2,1728,1], index: 6, kind: input, shape index: {}]   ;;  %s8663_s7 = inlined_call_operand.vmem [shape: f32[64,512], index: 7, kind: output, shape index: {}]  }
   0x1   :  { %8706 = sst [smem:[#allocation45_spill]] %s8656_s0 }
   0x2   :  { %s7205_s24 = smov 0   ;;  %s7207_s25 = smov 0  }
   0x3   :  { %s7209_s26 = smov 0   ;;  %s7211_s27 = smov 0  }
   0x4   :  { %s7213_s28 = smov 0   ;;  %s7215_s29 = smov 0  }
   0x5   :  { %s7217_s30 = smov 0   ;;  %s7219_s8 = smov 0  }
   0x6   :  { %s7221_s9 = smov 0  }
   0x7 LB: > { %s6160_s10 = sadd.s32 4294967295, %s7162_s9   ;;  %s26_s11 = sadd.s32 1, %s7154_s30  ;;  %s7162_s9 = sphi %s7221_s9, %s17_s9   ;;  %s7158_s8 = sphi %s7219_s8, %s8820_s8   ;;  %s7154_s30 = sphi %s7217_s30, %s8819_s30   ;;  %s7150_s29 = sphi %s7215_s29, %s8818_s29   ;;  %s7146_s28 = sphi %s7213_s28, %s8817_s28   ;;  %s7142_s27 = sphi %s7211_s27, %s8816_s27   ;;  %s7138_s26 = sphi %s7209_s26, %s8815_s26   ;;  %s7134_s25 = sphi %s7207_s25, %s8814_s25   ;;  %s7130_s24 = sphi %s7205_s24, %s8813_s24  }
   0x8   : > { %p27_p0 = scmp.ge.s32.totalorder %s26_s11, 2  ;;  %s29_s12 = sadd.s32 1, %s7158_s8 }
   0x9   : > { %s36_s13 = sadd.s32 1, %s7142_s27  ;;  %p43_p1 = scmp.ne.s32.totalorder %s7142_s27, %s7138_s26 }
   0xa   : > { %s8822_s11 = smov (%p27_p0, %s26_s11), 0  ;;  %s8824_s12 = smov (!%p27_p0, %s29_s12), %s7158_s8 }
   0xb   : > { %s33_s14 = ssub.s32 %s7154_s30, %s8822_s11  ;;  %p44_p2 = scmp.eq.s32.totalorder %s7162_s9, 0 }
   0xc   : > { %p31_p3 = scmp.ge.s32.totalorder %s8824_s12, 2  ;;  %p34_p4 = scmp.eq.s32.totalorder %s33_s14, 0 }
   0xd   : > { %p7262_p5 = por %p44_p2, %p43_p1  ;;  %s220_s16 = sadd.s32 1, %s7134_s25 }
   0xe   : > { %s8826_s12 = smov (%p31_p3, %s8824_s12), 0  ;;  %p230_p6 = scmp.ne.s32.totalorder %s7134_s25, %s7130_s24 }
   0xf   : > { %s7270_s17 = scalar_select %p34_p4, %s7142_s27, %s36_s13  }
  0x10   : > { %s215_s18 = ssub.s32 %s7158_s8, %s8826_s12  ;;  %p231_p7 = scmp.eq.s32.totalorder %s6160_s10, 3 }
  0x11   : > { %s217_s19 = sor.u32 %s215_s18, %s33_s14  ;;  %p6163_p10 = scmp.ge.s32.totalorder %s7162_s9, 4 }
  0x12   : > { %p218_p8 = scmp.eq.s32.totalorder %s217_s19, 0  ;;  %p7276_p9 = por %p231_p7, %p230_p6 }
  0x13   : > { %253 = sbr.rel (%p6163_p10) target bundleno = 47 (0x2f), region = 16 }
  0x14   : > { %s7281_s21 = scalar_select %p218_p8, %s7134_s25, %s220_s16  }
  0x1a   : > { %256 = sbr.rel (!%p7262_p5) target bundleno = 40 (0x28), region = 20  ;;  %s258_s22 = sand.u32 (%p7262_p5), 1, %s7142_s27  }
  0x1b   : > { %s6479_s23 = sshll.u32 (%p7262_p5), %s7154_s30, 3  ;;  %s6164_s13 = sshll.u32 (%p7262_p5), %s258_s22, 6 }
  0x1c   : > { %s8709_s0 = sld [smem:[#allocation45_spill]] (%p7262_p5)  ;;  %s260_s16 = scalar_lea.vmem (%p7262_p5), [#allocation2], %s6164_s13 }
  0x22   : > { %s263_s18 = scalar_lea.vmem %s8709_s0, %s6479_s23 }
  0x23   : > { %v305_v0 = vld [vmem:[%s263_s18] sm:$0xff]  ;;  %v307_v1 = vld [vmem:[%s263_s18 + $0x10] sm:$0xff] }
  0x24   : > { %v309_v2 = vld [vmem:[%s263_s18 + $0x20] sm:$0xff]  ;;  %306 = vst [vmem:[%s260_s16] sm:$0xff] %v305_v0  ;;  %308 = vst [vmem:[%s260_s16 + $0x8] sm:$0xff] %v307_v1  ;;  %v311_v3 = vld [vmem:[%s263_s18 + $0x30] sm:$0xff] }
  0x25   : > { %310 = vst [vmem:[%s260_s16 + $0x10] sm:$0xff] %v309_v2  ;;  %v313_v4 = vld [vmem:[%s263_s18 + $0x40] sm:$0xff]  ;;  %v315_v5 = vld [vmem:[%s263_s18 + $0x50] sm:$0xff]  ;;  %312 = vst [vmem:[%s260_s16 + $0x18] sm:$0xff] %v311_v3 }
  0x26   : > { %314 = vst [vmem:[%s260_s16 + $0x20] sm:$0xff] %v313_v4  ;;  %316 = vst [vmem:[%s260_s16 + $0x28] sm:$0xff] %v315_v5  ;;  %v317_v6 = vld [vmem:[%s263_s18 + $0x60] sm:$0xff]  ;;  %v319_v7 = vld [vmem:[%s263_s18 + $0x70] sm:$0xff] }
  0x27   : > { %318 = vst [vmem:[%s260_s16 + $0x30] sm:$0xff] %v317_v6  ;;  %320 = vst [vmem:[%s260_s16 + $0x38] sm:$0xff] %v319_v7 }
  0x28 PF: > { %326 = sbr.rel (!%p7262_p5) target bundleno = 47 (0x2f), region = 58  ;;  %s328_s19 = sand.u32 (%p7262_p5), 1, %s7142_s27  }
  0x29   : > { %s6480_s22 = sshll.u32 (%p7262_p5), %s7154_s30, 3  ;;  %s6167_s23 = sshll.u32 (%p7262_p5), %s328_s19, 5 }
  0x2a   : > { %s333_s10 = scalar_lea.vmem (%p7262_p5), %s8657_s1, %s6480_s22  ;;  %s330_s0 = scalar_lea.vmem (%p7262_p5), [#allocation3], %s6167_s23 }
  0x2b   : > { %v367_v8 = vld [vmem:[%s333_s10] sm:$0xff] (%p7262_p5)  ;;  %v369_v9 = vld [vmem:[%s333_s10 + $0x10] sm:$0xff] (%p7262_p5) }
  0x2c   : > { %v371_v10 = vld [vmem:[%s333_s10 + $0x20] sm:$0xff] (%p7262_p5)  ;;  %368 = vst [vmem:[%s330_s0] sm:$0xff] (%p7262_p5), %v367_v8  ;;  %370 = vst [vmem:[%s330_s0 + $0x8] sm:$0xff] (%p7262_p5), %v369_v9  ;;  %v373_v11 = vld [vmem:[%s333_s10 + $0x30] sm:$0xff] (%p7262_p5) }
  0x2d   : > { %372 = vst [vmem:[%s330_s0 + $0x10] sm:$0xff] (%p7262_p5), %v371_v10  ;;  %374 = vst [vmem:[%s330_s0 + $0x18] sm:$0xff] (%p7262_p5), %v373_v11 }
  0x2f PF: > { %p6170_p11 = scmp.ge.s32.totalorder %s7162_s9, 1  ;;  %p419_p12 = scmp.lt.s32.totalorder %s7162_s9, 5 }
  0x31   : > { %p420_p13 = pnand %p6170_p11, %p419_p12 }
  0x33   : > { %423 = sbr.rel (%p420_p13) target bundleno = 2666 (0xa6a), region = 116 }
  0x3a   : > { %s426_s15 = sand.u32 1, %s7138_s26   ;;  %p494_p0 = scmp.lt.s32.totalorder %s7150_s29, 1  ;;  %v8664_v12 = vmov 0   ;;  %vm878_vm0 = vcmask 523264   ;;  %vm5094_vm1 = vcmask 261120  }
  0x3b   : > { %s6171_s18 = sshll.u32 %s426_s15, 6  ;;  %6689 = vset.pattern.permute.xlu1 %v8664_v12  ;;  %6688 = vset.pattern.permute.xlu0 %v8664_v12 }
  0x3c   : > { %959 = vmatprep.mubr.bf16.mxu0 %v8664_v12  ;;  %s7307_s0 = scalar_lea.vmem [#allocation2], %s6171_s18 }
  0x3d   : > { %v6690_v13 = vld [vmem:[%s7307_s0 + $0x4] ss:$8 sps:$4 sm:$0xff]   ;;  %s7311_s16 = scalar_select %p494_p0, %s7150_s29, 1  ;;  %v6692_v14 = vld [vmem:[%s7307_s0] ss:$8 sps:$4 sm:$0xff]  }
  0x3e   : > { %927 = vmatprep.subr.bf16.mxu0 %v6690_v13  ;;  %v6693_v15 = vld [vmem:[%s7307_s0 + $0x14] ss:$8 sps:$4 sm:$0xff]   ;;  %v6695_v16 = vld [vmem:[%s7307_s0 + $0x10] ss:$8 sps:$4 sm:$0xff]   ;;  %v6696_v17 = vld [vmem:[%s7307_s0 + $0x24] ss:$8 sps:$4 sm:$0xff]  }
  0x3f   : > { %s6614_s19 = smul.u32 1728, %s7311_s16  ;;  %928 = vmatpush1.bf16.msra.mxu0 %v6692_v14  ;;  %s6481_s14 = sshll.u32 %s7311_s16, 8  ;;  %v6698_v22 = vld [vmem:[%s7307_s0 + $0x20] ss:$8 sps:$4 sm:$0xff]   ;;  %v6699_v23 = vld [vmem:[%s7307_s0 + $0x34] ss:$8 sps:$4 sm:$0xff]  }
  0x40   : > { %929 = vmatprep.subr.bf16.mxu0 %v6693_v15  ;;  %v6701_v26 = vld [vmem:[%s7307_s0 + $0x30] ss:$8 sps:$4 sm:$0xff]   ;;  %s6613_s22 = smul.u32 1440, %s7311_s16  ;;  %s6482_s26 = sshll.u32 %s7311_s16, 6 }
  0x41   : > { %s7320_s13 = scalar_lea.vmem %s8662_s6, %s6614_s19  ;;  %s7332_s19 = scalar_lea.vmem %s8658_s2, %s6481_s14 }
  0x42   : > { %v568_v18 = vld [vmem:[%s7320_s13 + $0x10] sm:$0xff]  ;;  %v566_v19 = vld [vmem:[%s7320_s13] sm:$0xff]  ;;  %v569_v20 = vld [vmem:[%s7320_s13 + $0x18] sm:$0xff]  ;;  %s7603_s10 = scalar_lea.vmem %s8659_s3, %s6613_s22  ;;  %s6483_s22 = sshll.u32 %s7311_s16, 4 }
  0x43   : > { %610 = vperm.xlu1 %6689, %v568_v18   ;;  %600 = vperm.xlu0 %6688, %v566_v19   ;;  %v567_v21 = vld [vmem:[%s7320_s13 + $0x8] sm:$0xff]  ;;  %v570_v25 = vld [vmem:[%s7320_s13 + $0x20] sm:$0xff]  ;;  %v573_v27 = vld [vmem:[%s7320_s13 + $0x38] sm:$0xff]  ;;  %s489_s16 = sand.u32 1, %s7130_s24  }
  0x44   : > { %930 = vmatpush1.bf16.msra.mxu0 %v6695_v16  ;;  %v571_v24 = vld [vmem:[%s7320_s13 + $0x28] sm:$0xff]  ;;  %v572_v28 = vld [vmem:[%s7320_s13 + $0x30] sm:$0xff]  ;;  %v6702_v29 = vld [vmem:[%s7332_s19] sm:$0xff]   ;;  %s6173_s24 = sshll.u32 %s489_s16, 6 }
  0x45   : > { %931 = vmatprep.subr.bf16.mxu0 %v6696_v17  ;;  %v575_v30 = vld [vmem:[%s7320_s13 + $0x48] sm:$0xff]  ;;  %v574_v31 = vld [vmem:[%s7320_s13 + $0x40] sm:$0xff]  ;;  %v577_v32 = vld [vmem:[%s7320_s13 + $0x58] sm:$0xff] }
  0x46   : > { %v576_v33 = vld [vmem:[%s7320_s13 + $0x50] sm:$0xff]  ;;  %v6703_v34 = vld [vmem:[%s7332_s19 + $0x8] sm:$0xff]   ;;  %v578_v36 = vld [vmem:[%s7320_s13 + $0x60] sm:$0xff] }
  0x47   : > { %615 = vperm.xlu1 %6689, %v569_v20   ;;  %605 = vperm.xlu0 %6688, %v567_v21   ;;  %v579_v35 = vld [vmem:[%s7320_s13 + $0x68] sm:$0xff]  ;;  %v581_v37 = vld [vmem:[%s7320_s13 + $0x78] sm:$0xff]  ;;  %v580_v38 = vld [vmem:[%s7320_s13 + $0x70] sm:$0xff] }
  0x48   : > { %932 = vmatpush1.bf16.msra.mxu0 %v6698_v22  ;;  %v6704_v39 = vld [vmem:[%s7332_s19 + $0x10] sm:$0xff]   ;;  %v583_v40 = vld [vmem:[%s7320_s13 + $0x88] sm:$0xff]  ;;  %v582_v41 = vld [vmem:[%s7320_s13 + $0x80] sm:$0xff] }
  0x49   : > { %933 = vmatprep.subr.bf16.mxu0 %v6699_v23  ;;  %v585_v42 = vld [vmem:[%s7320_s13 + $0x98] sm:$0xff]  ;;  %v584_v43 = vld [vmem:[%s7320_s13 + $0x90] sm:$0xff]  ;;  %v587_v45 = vld [vmem:[%s7320_s13 + $0xa8] sm:$0xff] }
  0x4a   : > { %v6705_v44 = vld [vmem:[%s7332_s19 + $0x18] sm:$0xff]   ;;  %v586_v46 = vld [vmem:[%s7320_s13 + $0xa0] sm:$0xff]  ;;  %v588_v48 = vld [vmem:[%s7320_s13 + $0xb0] sm:$0xff] }
  0x4b   : > { %625 = vperm.xlu1 %6689, %v571_v24   ;;  %620 = vperm.xlu0 %6688, %v570_v25   ;;  %v589_v47 = vld [vmem:[%s7320_s13 + $0xb8] sm:$0xff]  ;;  %v6706_v49 = vld [vmem:[%s7332_s19 + $0x20] sm:$0xff]   ;;  %v591_v50 = vld [vmem:[%s7320_s13 + $0xc8] sm:$0xff] }
  0x4c   : > { %934 = vmatpush1.bf16.msra.mxu0 %v6701_v26  ;;  %v590_v51 = vld [vmem:[%s7320_s13 + $0xc0] sm:$0xff]  ;;  %v593_v52 = vld [vmem:[%s7320_s13 + $0xd8] sm:$0xff]  ;;  %v592_v53 = vld [vmem:[%s7320_s13 + $0xd0] sm:$0xff] }
  0x4d   : > { %v6707_v54 = vld [vmem:[%s7332_s19 + $0x28] sm:$0xff]   ;;  %v594_v56 = vld [vmem:[%s7320_s13 + $0xe0] sm:$0xff]  ;;  %v597_v57 = vld [vmem:[%s7320_s13 + $0xf8] sm:$0xff] }
  0x4e   : > { %v595_v55 = vld [vmem:[%s7320_s13 + $0xe8] sm:$0xff]  ;;  %v596_v58 = vld [vmem:[%s7320_s13 + $0xf0] sm:$0xff]  ;;  %v1248_v61 = vld [vmem:[%s7320_s13 + $0x100] sm:$0xff] }
  0x4f   : > { %635 = vperm.xlu1 %6689, %v573_v27   ;;  %630 = vperm.xlu0 %6688, %v572_v28   ;;  %v6708_v59 = vld [vmem:[%s7332_s19 + $0x30] sm:$0xff]   ;;  %v1249_v60 = vld [vmem:[%s7320_s13 + $0x108] sm:$0xff]  ;;  %v1251_v62 = vld [vmem:[%s7320_s13 + $0x118] sm:$0xff] }
  0x50   : > { %6206 = vmatmul.mubr.msk.bf16.vlgmr.msra.gmra.mrb[0].mxu0 %vm878_vm0, %v6702_v29  ;;  %v1250_v63 = vld [vmem:[%s7320_s13 + $0x110] sm:$0xff]  ;;  %v6709_v0 = vld [vmem:[%s7332_s19 + $0x38] sm:$0xff]   ;;  %v1253_v1 = vld [vmem:[%s7320_s13 + $0x128] sm:$0xff] }
  0x51   : > { %969 = vmatprep.mubr.bf16.mxu0 %v8664_v12  ;;  %v1252_v2 = vld [vmem:[%s7320_s13 + $0x120] sm:$0xff]  ;;  %v1255_v3 = vld [vmem:[%s7320_s13 + $0x138] sm:$0xff]  ;;  %v1254_v4 = vld [vmem:[%s7320_s13 + $0x130] sm:$0xff] }
  0x52   : > { %v6710_v5 = vld [vmem:[%s7332_s19 + $0x40] sm:$0xff]   ;;  %v1257_v6 = vld [vmem:[%s7320_s13 + $0x148] sm:$0xff]  ;;  %v1259_v8 = vld [vmem:[%s7320_s13 + $0x158] sm:$0xff] }
  0x53   : > { %645 = vperm.xlu1 %6689, %v575_v30   ;;  %640 = vperm.xlu0 %6688, %v574_v31   ;;  %v1256_v7 = vld [vmem:[%s7320_s13 + $0x140] sm:$0xff]  ;;  %v1258_v9 = vld [vmem:[%s7320_s13 + $0x150] sm:$0xff]  ;;  %v6711_v10 = vld [vmem:[%s7332_s19 + $0x48] sm:$0xff]  }
  0x54   : > { %v1261_v11 = vld [vmem:[%s7320_s13 + $0x168] sm:$0xff]  ;;  %v1260_v13 = vld [vmem:[%s7320_s13 + $0x160] sm:$0xff]  ;;  %v1263_v14 = vld [vmem:[%s7320_s13 + $0x178] sm:$0xff] }
  0x55   : > { %v1262_v15 = vld [vmem:[%s7320_s13 + $0x170] sm:$0xff]  ;;  %v1265_v17 = vld [vmem:[%s7320_s13 + $0x188] sm:$0xff]  ;;  %v1264_v18 = vld [vmem:[%s7320_s13 + $0x180] sm:$0xff] }
  0x56   : > { %v6712_v16 = vld [vmem:[%s7332_s19 + $0x50] sm:$0xff]   ;;  %v1267_v19 = vld [vmem:[%s7320_s13 + $0x198] sm:$0xff]  ;;  %v1269_v22 = vld [vmem:[%s7320_s13 + $0x1a8] sm:$0xff] }
  0x57   : > { %655 = vperm.xlu1 %6689, %v577_v32   ;;  %650 = vperm.xlu0 %6688, %v576_v33   ;;  %v1266_v20 = vld [vmem:[%s7320_s13 + $0x190] sm:$0xff]  ;;  %v6713_v21 = vld [vmem:[%s7332_s19 + $0x58] sm:$0xff]   ;;  %v1268_v23 = vld [vmem:[%s7320_s13 + $0x1a0] sm:$0xff] }
  0x58   : > { %6207 = vmatmul.mubr.msk.bf16.gmra.mrb[4].mxu0 %vm878_vm0, %v6703_v34  ;;  %v1271_v24 = vld [vmem:[%s7320_s13 + $0x1b8] sm:$0xff]  ;;  %v1270_v25 = vld [vmem:[%s7320_s13 + $0x1b0] sm:$0xff]  ;;  %v6714_v26 = vld [vmem:[%s7332_s19 + $0x60] sm:$0xff]  }
  0x59   : > { %979 = vmatprep.mubr.bf16.mxu0 %v8664_v12  ;;  %v1273_v27 = vld [vmem:[%s7320_s13 + $0x1c8] sm:$0xff]  ;;  %v1272_v28 = vld [vmem:[%s7320_s13 + $0x1c0] sm:$0xff]  ;;  %v1275_v29 = vld [vmem:[%s7320_s13 + $0x1d8] sm:$0xff] }
  0x5a   : > { %v1274_v30 = vld [vmem:[%s7320_s13 + $0x1d0] sm:$0xff]  ;;  %v6715_v31 = vld [vmem:[%s7332_s19 + $0x68] sm:$0xff]   ;;  %v1276_v33 = vld [vmem:[%s7320_s13 + $0x1e0] sm:$0xff] }
  0x5b   : > { %665 = vperm.xlu1 %6689, %v579_v35   ;;  %660 = vperm.xlu0 %6688, %v578_v36   ;;  %v1277_v32 = vld [vmem:[%s7320_s13 + $0x1e8] sm:$0xff]  ;;  %v1279_v34 = vld [vmem:[%s7320_s13 + $0x1f8] sm:$0xff]  ;;  %v1278_v35 = vld [vmem:[%s7320_s13 + $0x1f0] sm:$0xff] }
  0x5c   : > { %v6716_v36 = vld [vmem:[%s7332_s19 + $0x70] sm:$0xff]  }
  0x5f   : > { %675 = vperm.xlu1 %6689, %v581_v37   ;;  %670 = vperm.xlu0 %6688, %v580_v38   ;;  %v1922_v37 = vld [vmem:[%s7320_s13 + $0x208] sm:$0xff]  ;;  %v1921_v38 = vld [vmem:[%s7320_s13 + $0x200] sm:$0xff] }
  0x60   : > { %6208 = vmatmul.mubr.msk.bf16.gmra.mrb[8].mxu0 %vm878_vm0, %v6704_v39 }
  0x61   : > { %989 = vmatprep.mubr.bf16.mxu0 %v8664_v12 }
  0x63   : > { %685 = vperm.xlu1 %6689, %v583_v40   ;;  %680 = vperm.xlu0 %6688, %v582_v41   ;;  %v1924_v41 = vld [vmem:[%s7320_s13 + $0x218] sm:$0xff] }
  0x67   : > { %695 = vperm.xlu1 %6689, %v585_v42   ;;  %690 = vperm.xlu0 %6688, %v584_v43   ;;  %v1923_v42 = vld [vmem:[%s7320_s13 + $0x210] sm:$0xff]  ;;  %v6717_v43 = vld [vmem:[%s7332_s19 + $0x78] sm:$0xff]  }
  0x68   : > { %6209 = vmatmul.mubr.msk.bf16.gmra.mrb[12].mxu0 %vm878_vm0, %v6705_v44 }
  0x69   : > { %999 = vmatprep.mubr.bf16.mxu0 %v8664_v12 }
  0x6b   : > { %705 = vperm.xlu1 %6689, %v587_v45   ;;  %700 = vperm.xlu0 %6688, %v586_v46   ;;  %v1926_v46 = vld [vmem:[%s7320_s13 + $0x228] sm:$0xff] }
  0x6f   : > { %715 = vperm.xlu1 %6689, %v589_v47   ;;  %710 = vperm.xlu0 %6688, %v588_v48   ;;  %v1925_v47 = vld [vmem:[%s7320_s13 + $0x220] sm:$0xff] }
  0x70   : > { %6210 = vmatmul.mubr.msk.bf16.gmra.mrb[16].mxu0 %vm878_vm0, %v6706_v49 }
  0x71   : > { %1009 = vmatprep.mubr.bf16.mxu0 %v8664_v12 }
  0x73   : > { %725 = vperm.xlu1 %6689, %v591_v50   ;;  %720 = vperm.xlu0 %6688, %v590_v51   ;;  %v1928_v50 = vld [vmem:[%s7320_s13 + $0x238] sm:$0xff]  ;;  %v1927_v51 = vld [vmem:[%s7320_s13 + $0x230] sm:$0xff] }
  0x77   : > { %735 = vperm.xlu1 %6689, %v593_v52   ;;  %730 = vperm.xlu0 %6688, %v592_v53  }
  0x78   : > { %6211 = vmatmul.mubr.msk.bf16.gmra.mrb[20].mxu0 %vm878_vm0, %v6707_v54  ;;  %v1930_v54 = vld [vmem:[%s7320_s13 + $0x248] sm:$0xff] }
  0x79   : > { %1019 = vmatprep.mubr.bf16.mxu0 %v8664_v12 }
  0x7b   : > { %745 = vperm.xlu1 %6689, %v595_v55   ;;  %740 = vperm.xlu0 %6688, %v594_v56   ;;  %v1929_v55 = vld [vmem:[%s7320_s13 + $0x240] sm:$0xff] }
  0x7f   : > { %755 = vperm.xlu1 %6689, %v597_v57   ;;  %750 = vperm.xlu0 %6688, %v596_v58   ;;  %v1932_v58 = vld [vmem:[%s7320_s13 + $0x258] sm:$0xff] }
  0x80   : > { %6212 = vmatmul.mubr.msk.bf16.gmra.mrb[24].mxu0 %vm878_vm0, %v6708_v59  ;;  %v1931_v59 = vld [vmem:[%s7320_s13 + $0x250] sm:$0xff] }
  0x81   : > { %1029 = vmatprep.mubr.bf16.mxu0 %v8664_v12 }
  0x83   : > { %1287 = vperm.xlu1 %6689, %v1249_v60   ;;  %1282 = vperm.xlu0 %6688, %v1248_v61  }
  0x87   : > { %1297 = vperm.xlu1 %6689, %v1251_v62   ;;  %1292 = vperm.xlu0 %6688, %v1250_v63   ;;  %v1934_v62 = vld [vmem:[%s7320_s13 + $0x268] sm:$0xff]  ;;  %v1933_v63 = vld [vmem:[%s7320_s13 + $0x260] sm:$0xff] }
  0x88   : > { %6213 = vmatmul.mubr.msk.bf16.gmra.mrb[28].mxu0 %vm878_vm0, %v6709_v0 }
  0x89   : > { %1039 = vmatprep.mubr.bf16.mxu0 %v8664_v12 }
  0x8b   : > { %1307 = vperm.xlu1 %6689, %v1253_v1   ;;  %1302 = vperm.xlu0 %6688, %v1252_v2   ;;  %v1936_v2 = vld [vmem:[%s7320_s13 + $0x278] sm:$0xff] }
  0x8f   : > { %1317 = vperm.xlu1 %6689, %v1255_v3   ;;  %1312 = vperm.xlu0 %6688, %v1254_v4   ;;  %v1935_v3 = vld [vmem:[%s7320_s13 + $0x270] sm:$0xff] }
  0x90   : > { %6214 = vmatmul.mubr.msk.bf16.gmra.mrb[32].mxu0 %vm878_vm0, %v6710_v5 }
  0x91   : > { %1049 = vmatprep.mubr.bf16.mxu0 %v8664_v12 }
  0x93   : > { %1327 = vperm.xlu1 %6689, %v1257_v6   ;;  %1322 = vperm.xlu0 %6688, %v1256_v7   ;;  %v1938_v6 = vld [vmem:[%s7320_s13 + $0x288] sm:$0xff]  ;;  %v1937_v7 = vld [vmem:[%s7320_s13 + $0x280] sm:$0xff] }
  0x97   : > { %1337 = vperm.xlu1 %6689, %v1259_v8   ;;  %1332 = vperm.xlu0 %6688, %v1258_v9  }
  0x98   : > { %6215 = vmatmul.mubr.msk.bf16.gmra.mrb[36].mxu0 %vm878_vm0, %v6711_v10  ;;  %v1940_v10 = vld [vmem:[%s7320_s13 + $0x298] sm:$0xff] }
  0x99   : > { %1059 = vmatprep.mubr.bf16.mxu0 %v8664_v12 }
  0x9b   : > { %1347 = vperm.xlu1 %6689, %v1261_v11   ;;  %1342 = vperm.xlu0 %6688, %v1260_v13   ;;  %v1939_v11 = vld [vmem:[%s7320_s13 + $0x290] sm:$0xff] }
  0x9f   : > { %1357 = vperm.xlu1 %6689, %v1263_v14   ;;  %1352 = vperm.xlu0 %6688, %v1262_v15   ;;  %v1942_v15 = vld [vmem:[%s7320_s13 + $0x2a8] sm:$0xff] }
  0xa0   : > { %6216 = vmatmul.mubr.msk.bf16.gmra.mrb[40].mxu0 %vm878_vm0, %v6712_v16  ;;  %v1941_v16 = vld [vmem:[%s7320_s13 + $0x2a0] sm:$0xff] }
  0xa1   : > { %1069 = vmatprep.mubr.bf16.mxu0 %v8664_v12 }
  0xa3   : > { %1367 = vperm.xlu1 %6689, %v1265_v17   ;;  %1362 = vperm.xlu0 %6688, %v1264_v18  }
  0xa7   : > { %1377 = vperm.xlu1 %6689, %v1267_v19   ;;  %1372 = vperm.xlu0 %6688, %v1266_v20   ;;  %v1944_v19 = vld [vmem:[%s7320_s13 + $0x2b8] sm:$0xff]  ;;  %v1943_v20 = vld [vmem:[%s7320_s13 + $0x2b0] sm:$0xff] }
  0xa8   : > { %6217 = vmatmul.mubr.msk.bf16.gmra.mrb[44].mxu0 %vm878_vm0, %v6713_v21 }
  0xa9   : > { %1079 = vmatprep.mubr.bf16.mxu0 %v8664_v12 }
  0xab   : > { %1387 = vperm.xlu1 %6689, %v1269_v22   ;;  %1382 = vperm.xlu0 %6688, %v1268_v23   ;;  %v1946_v23 = vld [vmem:[%s7320_s13 + $0x2c8] sm:$0xff] }
  0xaf   : > { %1397 = vperm.xlu1 %6689, %v1271_v24   ;;  %1392 = vperm.xlu0 %6688, %v1270_v25   ;;  %v1945_v24 = vld [vmem:[%s7320_s13 + $0x2c0] sm:$0xff] }
  0xb0   : > { %6218 = vmatmul.mubr.msk.bf16.gmra.mrb[48].mxu0 %vm878_vm0, %v6714_v26 }
  0xb1   : > { %1089 = vmatprep.mubr.bf16.mxu0 %v8664_v12 }
  0xb3   : > { %1407 = vperm.xlu1 %6689, %v1273_v27   ;;  %1402 = vperm.xlu0 %6688, %v1272_v28   ;;  %v1948_v27 = vld [vmem:[%s7320_s13 + $0x2d8] sm:$0xff]  ;;  %v1947_v28 = vld [vmem:[%s7320_s13 + $0x2d0] sm:$0xff] }
  0xb7   : > { %1417 = vperm.xlu1 %6689, %v1275_v29   ;;  %1412 = vperm.xlu0 %6688, %v1274_v30  }
  0xb8   : > { %6219 = vmatmul.mubr.msk.bf16.gmra.mrb[52].mxu0 %vm878_vm0, %v6715_v31  ;;  %v1950_v31 = vld [vmem:[%s7320_s13 + $0x2e8] sm:$0xff] }
  0xb9   : > { %1099 = vmatprep.mubr.bf16.mxu0 %v8664_v12 }
  0xbb   : > { %1427 = vperm.xlu1 %6689, %v1277_v32   ;;  %1422 = vperm.xlu0 %6688, %v1276_v33   ;;  %v1949_v32 = vld [vmem:[%s7320_s13 + $0x2e0] sm:$0xff] }
  0xbf   : > { %1437 = vperm.xlu1 %6689, %v1279_v34   ;;  %1432 = vperm.xlu0 %6688, %v1278_v35   ;;  %v1952_v35 = vld [vmem:[%s7320_s13 + $0x2f8] sm:$0xff] }
  0xc0   : > { %6220 = vmatmul.mubr.msk.bf16.gmra.mrb[56].mxu0 %vm878_vm0, %v6716_v36  ;;  %v1951_v36 = vld [vmem:[%s7320_s13 + $0x2f0] sm:$0xff] }
  0xc1   : > { %1109 = vmatprep.mubr.bf16.mxu0 %v8664_v12 }
  0xc2   : > { %v7443_v39 = vpop.permute.xlu1 %610  ;;  %v7445_v40 = vpop.permute.xlu0 %600 }
  0xc3   : > { %1960 = vperm.xlu1 %6689, %v1922_v37   ;;  %1955 = vperm.xlu0 %6688, %v1921_v38  }
  0xc6   : > { %v7450_v44 = vpop.permute.xlu1 %615  ;;  %v7452_v45 = vpop.permute.xlu0 %605 }
  0xc7   : > { %1970 = vperm.xlu1 %6689, %v1924_v41   ;;  %1965 = vperm.xlu0 %6688, %v1923_v42   ;;  %v2595_v41 = vld [vmem:[%s7320_s13 + $0x308] sm:$0xff]  ;;  %v2594_v42 = vld [vmem:[%s7320_s13 + $0x300] sm:$0xff] }
  0xc8   : > { %6221 = vmatmul.mubr.msk.bf16.gmra.mrb[60].mxu0 %vm878_vm0, %v6717_v43 }
  0xca   : > { %v7457_v48 = vpop.permute.xlu1 %625  ;;  %v7459_v49 = vpop.permute.xlu0 %620 }
  0xcb   : > { %1980 = vperm.xlu1 %6689, %v1926_v46   ;;  %1975 = vperm.xlu0 %6688, %v1925_v47   ;;  %v2597_v47 = vld [vmem:[%s7320_s13 + $0x318] sm:$0xff] }
  0xce   : > { %v7463_v52 = vpop.permute.xlu1 %635  ;;  %v7465_v53 = vpop.permute.xlu0 %630 }
  0xcf   : > { %1990 = vperm.xlu1 %6689, %v1928_v50   ;;  %1985 = vperm.xlu0 %6688, %v1927_v51   ;;  %v2596_v50 = vld [vmem:[%s7320_s13 + $0x310] sm:$0xff] }
  0xd2   : > { %v7469_v56 = vpop.permute.xlu1 %645  ;;  %v7471_v57 = vpop.permute.xlu0 %640 }
  0xd3   : > { %2000 = vperm.xlu1 %6689, %v1930_v54   ;;  %1995 = vperm.xlu0 %6688, %v1929_v55   ;;  %v2599_v55 = vld [vmem:[%s7320_s13 + $0x328] sm:$0xff] }
  0xd6   : > { %v7475_v60 = vpop.permute.xlu1 %655  ;;  %v7477_v61 = vpop.permute.xlu0 %650 }
  0xd7   : > { %2010 = vperm.xlu1 %6689, %v1932_v58   ;;  %2005 = vperm.xlu0 %6688, %v1931_v59   ;;  %v2598_v58 = vld [vmem:[%s7320_s13 + $0x320] sm:$0xff] }
  0xda   : > { %v7481_v0 = vpop.permute.xlu1 %665  ;;  %v7483_v1 = vpop.permute.xlu0 %660 }
  0xdb   : > { %2020 = vperm.xlu1 %6689, %v1934_v62   ;;  %2015 = vperm.xlu0 %6688, %v1933_v63   ;;  %v2601_v63 = vld [vmem:[%s7320_s13 + $0x338] sm:$0xff] }
  0xde   : > { %v7487_v4 = vpop.permute.xlu1 %675  ;;  %v7489_v5 = vpop.permute.xlu0 %670 }
  0xdf   : > { %2030 = vperm.xlu1 %6689, %v1936_v2   ;;  %2025 = vperm.xlu0 %6688, %v1935_v3   ;;  %v2600_v2 = vld [vmem:[%s7320_s13 + $0x330] sm:$0xff] }
  0xe2   : > { %v7493_v8 = vpop.permute.xlu1 %685  ;;  %v7495_v9 = vpop.permute.xlu0 %680 }
  0xe3   : > { %2040 = vperm.xlu1 %6689, %v1938_v6   ;;  %2035 = vperm.xlu0 %6688, %v1937_v7   ;;  %v2603_v7 = vld [vmem:[%s7320_s13 + $0x348] sm:$0xff] }
  0xe6   : > { %v7499_v13 = vpop.permute.xlu1 %695  ;;  %v7501_v14 = vpop.permute.xlu0 %690 }
  0xe7   : > { %2050 = vperm.xlu1 %6689, %v1940_v10   ;;  %2045 = vperm.xlu0 %6688, %v1939_v11   ;;  %v2602_v10 = vld [vmem:[%s7320_s13 + $0x340] sm:$0xff] }
  0xea   : > { %v7505_v17 = vpop.permute.xlu1 %705  ;;  %v7507_v18 = vpop.permute.xlu0 %700 }
  0xeb   : > { %2060 = vperm.xlu1 %6689, %v1942_v15   ;;  %2055 = vperm.xlu0 %6688, %v1941_v16   ;;  %v2605_v16 = vld [vmem:[%s7320_s13 + $0x358] sm:$0xff] }
  0xee   : > { %v7511_v21 = vpop.permute.xlu1 %715  ;;  %v7513_v22 = vpop.permute.xlu0 %710 }
  0xef   : > { %2070 = vperm.xlu1 %6689, %v1944_v19   ;;  %2065 = vperm.xlu0 %6688, %v1943_v20   ;;  %v2604_v19 = vld [vmem:[%s7320_s13 + $0x350] sm:$0xff] }
  0xf2   : > { %v7517_v25 = vpop.permute.xlu1 %725  ;;  %v7519_v26 = vpop.permute.xlu0 %720 }
  0xf3   : > { %2080 = vperm.xlu1 %6689, %v1946_v23   ;;  %2075 = vperm.xlu0 %6688, %v1945_v24   ;;  %v2607_v24 = vld [vmem:[%s7320_s13 + $0x368] sm:$0xff] }
  0xf6   : > { %v7523_v29 = vpop.permute.xlu1 %735  ;;  %v7525_v30 = vpop.permute.xlu0 %730 }
  0xf7   : > { %2090 = vperm.xlu1 %6689, %v1948_v27   ;;  %2085 = vperm.xlu0 %6688, %v1947_v28   ;;  %v2606_v27 = vld [vmem:[%s7320_s13 + $0x360] sm:$0xff] }
  0xfa   : > { %v7529_v33 = vpop.permute.xlu1 %745  ;;  %v7531_v34 = vpop.permute.xlu0 %740 }
  0xfb   : > { %2100 = vperm.xlu1 %6689, %v1950_v31   ;;  %2095 = vperm.xlu0 %6688, %v1949_v32   ;;  %v2609_v32 = vld [vmem:[%s7320_s13 + $0x378] sm:$0xff] }
  0xfe   : > { %v7535_v37 = vpop.permute.xlu1 %755  ;;  %v7537_v38 = vpop.permute.xlu0 %750 }
  0xff   : > { %2110 = vperm.xlu1 %6689, %v1952_v35   ;;  %2105 = vperm.xlu0 %6688, %v1951_v36   ;;  %v2608_v35 = vld [vmem:[%s7320_s13 + $0x370] sm:$0xff] }
 0x102   : > { %v7541_v43 = vpop.permute.xlu1 %1287  ;;  %v7543_v46 = vpop.permute.xlu0 %1282 }
 0x103   : > { %2633 = vperm.xlu1 %6689, %v2595_v41   ;;  %2628 = vperm.xlu0 %6688, %v2594_v42   ;;  %v2611_v42 = vld [vmem:[%s7320_s13 + $0x388] sm:$0xff] }
 0x106   : > { %v7547_v51 = vpop.permute.xlu1 %1297  ;;  %v7549_v54 = vpop.permute.xlu0 %1292 }
 0x107   : > { %2643 = vperm.xlu1 %6689, %v2597_v47   ;;  %2638 = vperm.xlu0 %6688, %v2596_v50   ;;  %v2610_v47 = vld [vmem:[%s7320_s13 + $0x380] sm:$0xff] }
 0x10a   : > { %v7553_v59 = vpop.permute.xlu1 %1307  ;;  %v7555_v62 = vpop.permute.xlu0 %1302 }
 0x10b   : > { %2653 = vperm.xlu1 %6689, %v2599_v55   ;;  %2648 = vperm.xlu0 %6688, %v2598_v58  }
 0x10e   : > { %v7559_v3 = vpop.permute.xlu1 %1317  ;;  %v7561_v6 = vpop.permute.xlu0 %1312 }
 0x10f   : > { %2663 = vperm.xlu1 %6689, %v2601_v63   ;;  %2658 = vperm.xlu0 %6688, %v2600_v2  }
 0x112   : > { %v7565_v11 = vpop.permute.xlu1 %1327  ;;  %v7567_v15 = vpop.permute.xlu0 %1322 }
 0x113   : > { %2673 = vperm.xlu1 %6689, %v2603_v7   ;;  %2668 = vperm.xlu0 %6688, %v2602_v10   ;;  %v2613_v7 = vld [vmem:[%s7320_s13 + $0x398] sm:$0xff]  ;;  %v2612_v10 = vld [vmem:[%s7320_s13 + $0x390] sm:$0xff] }
 0x116   : > { %v7571_v20 = vpop.permute.xlu1 %1337  ;;  %v7573_v23 = vpop.permute.xlu0 %1332 }
 0x117   : > { %2683 = vperm.xlu1 %6689, %v2605_v16   ;;  %2678 = vperm.xlu0 %6688, %v2604_v19  }
 0x11a   : > { %v7577_v28 = vpop.permute.xlu1 %1347  ;;  %v7579_v31 = vpop.permute.xlu0 %1342 }
 0x11b   : > { %2693 = vperm.xlu1 %6689, %v2607_v24   ;;  %2688 = vperm.xlu0 %6688, %v2606_v27  }
 0x11e   : > { %v7583_v36 = vpop.permute.xlu1 %1357  ;;  %v7585_v41 = vpop.permute.xlu0 %1352 }
 0x11f   : > { %8710 = vst [vmem:[#allocation5_spill] sm:$0xff] %v7583_v36  ;;  %8711 = vst [vmem:[#allocation6_spill] sm:$0xff] %v7585_v41  ;;  %2703 = vperm.xlu1 %6689, %v2609_v32   ;;  %2698 = vperm.xlu0 %6688, %v2608_v35   ;;  %v2615_v32 = vld [vmem:[%s7320_s13 + $0x3a8] sm:$0xff]  ;;  %v2616_v36 = vld [vmem:[%s7320_s13 + $0x3b0] sm:$0xff] }
 0x122   : > { %v7589_v50 = vpop.permute.xlu1 %1367  ;;  %v7591_v58 = vpop.permute.xlu0 %1362 }
 0x123   : > { %8712 = vst [vmem:[#allocation7_spill] sm:$0xff] %v7589_v50  ;;  %2713 = vperm.xlu1 %6689, %v2611_v42   ;;  %2708 = vperm.xlu0 %6688, %v2610_v47   ;;  %v961_v55 = vpop.f32.mrb[0].mxu0  ;;  %8713 = vst [vmem:[#allocation8_spill] sm:$0xff] %v7591_v58  ;;  %v2617_v58 = vld [vmem:[%s7320_s13 + $0x3b8] sm:$0xff] }
 0x124   : > { %v962_v63 = vadd.f32 %v961_v55, %v7445_v40  ;;  %v963_v2 = vpop.f32.mrb[1].mxu0  ;;  %v2614_v55 = vld [vmem:[%s7320_s13 + $0x3a0] sm:$0xff] }
 0x125   : > { %v965_v16 = vpop.f32.mrb[2].mxu0  ;;  %v964_v19 = vadd.f32 %v963_v2, %v7445_v40  ;;  %v6720_v2 = vld [vmem:[%s7603_s10 + $0x4] ss:$8 sps:$4 sm:$0xff]  }
 0x126   : > { %v966_v24 = vadd.f32 %v965_v16, %v7452_v45  ;;  %v967_v27 = vpop.f32.mrb[3].mxu0  ;;  %v1120_v35 = vmax.f32 %v962_v63, 0.0  ;;  %v7607_v40 = vpop.permute.xlu1 %1377  ;;  %1632 = vmatprep.mubr.bf16.mxu1 %v6720_v2 }
 0x127   : > { %2723 = vperm.xlu1 %6689, %v2613_v7   ;;  %2718 = vperm.xlu0 %6688, %v2612_v10   ;;  %v968_v47 = vadd.f32 %v967_v27, %v7452_v45  ;;  %v1121_v7 = vmax.f32 %v964_v19, 0.0  ;;  %v7610_v10 = vpop.permute.xlu0 %1372 }
 0x128   : > { %v1122_v42 = vmax.f32 %v966_v24, 0.0 }
 0x129   : > { %v1123_v16 = vmax.f32 %v968_v47, 0.0 }
 0x12a   : > { %v1216_v12 = vpack.c.bf16 %v1122_v42, %v1120_v35  ;;  %v7617_v47 = vpop.permute.xlu1 %1387  ;;  %v2619_v35 = vld [vmem:[%s7320_s13 + $0x3c8] sm:$0xff] }
 0x12b   : > { %2733 = vperm.xlu1 %6689, %v2615_v32   ;;  %2728 = vperm.xlu0 %6688, %v2614_v55   ;;  %v971_v50 = vpop.f32.mrb[4].mxu0  ;;  %v1217_v41 = vpack.c.bf16 %v1123_v16, %v1121_v7  ;;  %8714 = vst [vmem:[#allocation9_spill] sm:$0xff] %v7617_v47  ;;  %v7620_v42 = vpop.permute.xlu0 %1382  ;;  %v2618_v7 = vld [vmem:[%s7320_s13 + $0x3c0] sm:$0xff] }
 0x12c   : > { %v972_v63 = vadd.f32 %v971_v50, %v7443_v39  ;;  %v973_v24 = vpop.f32.mrb[5].mxu0  ;;  %8715 = vst [vmem:[#allocation10_spill] sm:$0xff] %v7620_v42 }
 0x12d   : > { %v975_v45 = vpop.f32.mrb[6].mxu0  ;;  %v974_v27 = vadd.f32 %v973_v24, %v7443_v39  ;;  %1600 = vmatprep.subr.bf16.mxu1 %v1217_v41 }
 0x12e   : > { %v976_v19 = vadd.f32 %v975_v45, %v7450_v44  ;;  %v977_v32 = vpop.f32.mrb[7].mxu0  ;;  %v1124_v50 = vmax.f32 %v972_v63, 0.0  ;;  %1601 = vmatpush1.bf16.msra.mxu1 %v1216_v12  ;;  %v7627_v63 = vpop.permute.xlu1 %1397 }
 0x12f   : > { %2743 = vperm.xlu1 %6689, %v2617_v58   ;;  %2738 = vperm.xlu0 %6688, %v2616_v36   ;;  %v978_v2 = vadd.f32 %v977_v32, %v7450_v44  ;;  %v1125_v39 = vmax.f32 %v974_v27, 0.0  ;;  %v2621_v58 = vld [vmem:[%s7320_s13 + $0x3d8] sm:$0xff]  ;;  %v2620_v36 = vld [vmem:[%s7320_s13 + $0x3d0] sm:$0xff]  ;;  %8716 = vst [vmem:[#allocation11_spill] sm:$0xff] %v7627_v63  ;;  %v7629_v44 = vpop.permute.xlu0 %1392 }
 0x130   : > { %v1126_v55 = vmax.f32 %v976_v19, 0.0 }
 0x131   : > { %v1127_v24 = vmax.f32 %v978_v2, 0.0 }
 0x132   : > { %v1218_v16 = vpack.c.bf16 %v1126_v55, %v1124_v50  ;;  %v7636_v63 = vpop.permute.xlu1 %1407 }
 0x133   : > { %2753 = vperm.xlu1 %6689, %v2619_v35   ;;  %2748 = vperm.xlu0 %6688, %v2618_v7   ;;  %v981_v41 = vpop.f32.mrb[8].mxu0  ;;  %v1219_v45 = vpack.c.bf16 %v1127_v24, %v1125_v39  ;;  %v2623_v35 = vld [vmem:[%s7320_s13 + $0x3e8] sm:$0xff]  ;;  %v2622_v7 = vld [vmem:[%s7320_s13 + $0x3e0] sm:$0xff] }
 0x134   : > { %v982_v47 = vadd.f32 %v981_v41, %v7459_v49  ;;  %v983_v42 = vpop.f32.mrb[9].mxu0 }
 0x135   : > { %v985_v19 = vpop.f32.mrb[10].mxu0  ;;  %v984_v12 = vadd.f32 %v983_v42, %v7459_v49  ;;  %1602 = vmatprep.subr.bf16.mxu1 %v1219_v45  ;;  %v2625_v42 = vld [vmem:[%s7320_s13 + $0x3f8] sm:$0xff] }
 0x136   : > { %v986_v27 = vadd.f32 %v985_v19, %v7457_v48  ;;  %v987_v32 = vpop.f32.mrb[11].mxu0  ;;  %v1128_v50 = vmax.f32 %v982_v47, 0.0  ;;  %1603 = vmatpush1.bf16.msra.mxu1 %v1218_v16 }
 0x137   : > { %2763 = vperm.xlu1 %6689, %v2621_v58   ;;  %2758 = vperm.xlu0 %6688, %v2620_v36   ;;  %v988_v2 = vadd.f32 %v987_v32, %v7457_v48  ;;  %v1129_v39 = vmax.f32 %v984_v12, 0.0  ;;  %v2624_v58 = vld [vmem:[%s7320_s13 + $0x3f0] sm:$0xff]  ;;  %v7640_v36 = vpop.permute.xlu0 %1402  ;;  %v3974_v32 = vld [vmem:[%s7320_s13 + $0x408] sm:$0xff] }
 0x138   : > { %v1130_v55 = vmax.f32 %v986_v27, 0.0 }
 0x139   : > { %v1131_v41 = vmax.f32 %v988_v2, 0.0  ;;  %v3973_v2 = vld [vmem:[%s7320_s13 + $0x400] sm:$0xff] }
 0x13a   : > { %v1220_v24 = vpack.c.bf16 %v1130_v55, %v1128_v50 }
 0x13b   : > { %2773 = vperm.xlu1 %6689, %v2623_v35   ;;  %2768 = vperm.xlu0 %6688, %v2622_v7   ;;  %v991_v49 = vpop.f32.mrb[12].mxu0  ;;  %v1221_v47 = vpack.c.bf16 %v1131_v41, %v1129_v39  ;;  %v7648_v7 = vpop.permute.xlu1 %1417 }
 0x13c   : > { %v992_v45 = vadd.f32 %v991_v49, %v7465_v53  ;;  %v993_v48 = vpop.f32.mrb[13].mxu0  ;;  %v7650_v39 = vpop.permute.xlu0 %1412 }
 0x13d   : > { %v995_v16 = vpop.f32.mrb[14].mxu0  ;;  %v994_v19 = vadd.f32 %v993_v48, %v7465_v53  ;;  %1604 = vmatprep.subr.bf16.mxu1 %v1221_v47  ;;  %v3975_v47 = vld [vmem:[%s7320_s13 + $0x410] sm:$0xff] }
 0x13e   : > { %v996_v12 = vadd.f32 %v995_v16, %v7463_v52  ;;  %v997_v27 = vpop.f32.mrb[15].mxu0  ;;  %v1132_v35 = vmax.f32 %v992_v45, 0.0  ;;  %1605 = vmatpush1.bf16.msra.mxu1 %v1220_v24 }
 0x13f   : > { %2783 = vperm.xlu1 %6689, %v2625_v42   ;;  %2778 = vperm.xlu0 %6688, %v2624_v58   ;;  %v998_v55 = vadd.f32 %v997_v27, %v7463_v52  ;;  %v1133_v53 = vmax.f32 %v994_v19, 0.0  ;;  %v3976_v58 = vld [vmem:[%s7320_s13 + $0x418] sm:$0xff]  ;;  %v7657_v19 = vpop.permute.xlu1 %1427 }
 0x140   : > { %v1134_v50 = vmax.f32 %v996_v12, 0.0  ;;  %8717 = vst [vmem:[#allocation12_spill] sm:$0xff] %v7657_v19 }
 0x141   : > { %v1135_v49 = vmax.f32 %v998_v55, 0.0 }
 0x142   : > { %v1222_v41 = vpack.c.bf16 %v1134_v50, %v1132_v35  ;;  %v7660_v35 = vpop.permute.xlu0 %1422 }
 0x143   : > { %4012 = vperm.xlu1 %6689, %v3974_v32   ;;  %4007 = vperm.xlu0 %6688, %v3973_v2   ;;  %v1001_v42 = vpop.f32.mrb[16].mxu0  ;;  %v1223_v48 = vpack.c.bf16 %v1135_v49, %v1133_v53  ;;  %v3978_v32 = vld [vmem:[%s7320_s13 + $0x428] sm:$0xff]  ;;  %v3977_v53 = vld [vmem:[%s7320_s13 + $0x420] sm:$0xff] }
 0x144   : > { %v1002_v45 = vadd.f32 %v1001_v42, %v7471_v57  ;;  %v1003_v52 = vpop.f32.mrb[17].mxu0 }
 0x145   : > { %v1005_v24 = vpop.f32.mrb[18].mxu0  ;;  %v1004_v16 = vadd.f32 %v1003_v52, %v7471_v57  ;;  %1606 = vmatprep.subr.bf16.mxu1 %v1223_v48  ;;  %v3980_v48 = vld [vmem:[%s7320_s13 + $0x438] sm:$0xff] }
 0x146   : > { %v1006_v12 = vadd.f32 %v1005_v24, %v7469_v56  ;;  %v1007_v27 = vpop.f32.mrb[19].mxu0  ;;  %v1136_v50 = vmax.f32 %v1002_v45, 0.0  ;;  %1607 = vmatpush1.bf16.msra.mxu1 %v1222_v41  ;;  %v7667_v45 = vpop.permute.xlu1 %1437 }
 0x147   : > { %4022 = vperm.xlu1 %6689, %v3976_v58   ;;  %4017 = vperm.xlu0 %6688, %v3975_v47   ;;  %v1008_v2 = vadd.f32 %v1007_v27, %v7469_v56  ;;  %v1137_v57 = vmax.f32 %v1004_v16, 0.0  ;;  %v3979_v47 = vld [vmem:[%s7320_s13 + $0x430] sm:$0xff]  ;;  %8718 = vst [vmem:[#allocation13_spill] sm:$0xff] %v7667_v45  ;;  %v7669_v56 = vpop.permute.xlu0 %1432 }
 0x148   : > { %v1138_v55 = vmax.f32 %v1006_v12, 0.0 }
 0x149   : > { %v1139_v42 = vmax.f32 %v1008_v2, 0.0 }
 0x14a   : > { %v1224_v49 = vpack.c.bf16 %v1138_v55, %v1136_v50  ;;  %v7676_v45 = vpop.permute.xlu1 %1960 }
 0x14b   : > { %4032 = vperm.xlu1 %6689, %v3978_v32   ;;  %4027 = vperm.xlu0 %6688, %v3977_v53   ;;  %v1011_v58 = vpop.f32.mrb[20].mxu0  ;;  %v1225_v52 = vpack.c.bf16 %v1139_v42, %v1137_v57  ;;  %v3982_v32 = vld [vmem:[%s7320_s13 + $0x448] sm:$0xff]  ;;  %v3981_v53 = vld [vmem:[%s7320_s13 + $0x440] sm:$0xff] }
 0x14c   : > { %v1012_v24 = vadd.f32 %v1011_v58, %v7477_v61  ;;  %v1013_v19 = vpop.f32.mrb[21].mxu0 }
 0x14d   : > { %v1015_v12 = vpop.f32.mrb[22].mxu0  ;;  %v1014_v41 = vadd.f32 %v1013_v19, %v7477_v61  ;;  %1608 = vmatprep.subr.bf16.mxu1 %v1225_v52  ;;  %v3984_v19 = vld [vmem:[%s7320_s13 + $0x458] sm:$0xff] }
 0x14e   : > { %v1016_v16 = vadd.f32 %v1015_v12, %v7475_v60  ;;  %v1017_v27 = vpop.f32.mrb[23].mxu0  ;;  %v1140_v50 = vmax.f32 %v1012_v24, 0.0  ;;  %1609 = vmatpush1.bf16.msra.mxu1 %v1224_v49 }
 0x14f   : > { %4042 = vperm.xlu1 %6689, %v3980_v48   ;;  %4037 = vperm.xlu0 %6688, %v3979_v47   ;;  %v1018_v2 = vadd.f32 %v1017_v27, %v7475_v60  ;;  %v1141_v57 = vmax.f32 %v1014_v41, 0.0  ;;  %v3983_v48 = vld [vmem:[%s7320_s13 + $0x450] sm:$0xff]  ;;  %v7680_v47 = vpop.permute.xlu0 %1955  ;;  %v3986_v27 = vld [vmem:[%s7320_s13 + $0x468] sm:$0xff] }
 0x150   : > { %v1142_v55 = vmax.f32 %v1016_v16, 0.0 }
 0x151   : > { %v1143_v58 = vmax.f32 %v1018_v2, 0.0  ;;  %v3985_v2 = vld [vmem:[%s7320_s13 + $0x460] sm:$0xff] }
 0x152   : > { %v1226_v42 = vpack.c.bf16 %v1142_v55, %v1140_v50 }
 0x153   : > { %4052 = vperm.xlu1 %6689, %v3982_v32   ;;  %4047 = vperm.xlu0 %6688, %v3981_v53   ;;  %v1021_v61 = vpop.f32.mrb[24].mxu0  ;;  %v1227_v52 = vpack.c.bf16 %v1143_v58, %v1141_v57  ;;  %v7688_v53 = vpop.permute.xlu1 %1970 }
 0x154   : > { %v1022_v24 = vadd.f32 %v1021_v61, %v7483_v1  ;;  %v1023_v60 = vpop.f32.mrb[25].mxu0  ;;  %v7690_v57 = vpop.permute.xlu0 %1965 }
 0x155   : > { %v1025_v49 = vpop.f32.mrb[26].mxu0  ;;  %v1024_v12 = vadd.f32 %v1023_v60, %v7483_v1  ;;  %1610 = vmatprep.subr.bf16.mxu1 %v1227_v52  ;;  %v3987_v52 = vld [vmem:[%s7320_s13 + $0x470] sm:$0xff] }
 0x156   : > { %v1026_v41 = vadd.f32 %v1025_v49, %v7481_v0  ;;  %v1027_v16 = vpop.f32.mrb[27].mxu0  ;;  %v1144_v32 = vmax.f32 %v1022_v24, 0.0  ;;  %1611 = vmatpush1.bf16.msra.mxu1 %v1226_v42 }
 0x157   : > { %4062 = vperm.xlu1 %6689, %v3984_v19   ;;  %4057 = vperm.xlu0 %6688, %v3983_v48   ;;  %v1028_v55 = vadd.f32 %v1027_v16, %v7481_v0  ;;  %v1145_v1 = vmax.f32 %v1024_v12, 0.0  ;;  %v3988_v48 = vld [vmem:[%s7320_s13 + $0x478] sm:$0xff]  ;;  %v7697_v12 = vpop.permute.xlu1 %1980 }
 0x158   : > { %v1146_v50 = vmax.f32 %v1026_v41, 0.0  ;;  %8719 = vst [vmem:[#allocation14_spill] sm:$0xff] %v7697_v12 }
 0x159   : > { %v1147_v61 = vmax.f32 %v1028_v55, 0.0 }
 0x15a   : > { %v1228_v58 = vpack.c.bf16 %v1146_v50, %v1144_v32  ;;  %v7700_v32 = vpop.permute.xlu0 %1975 }
 0x15b   : > { %4072 = vperm.xlu1 %6689, %v3986_v27   ;;  %4067 = vperm.xlu0 %6688, %v3985_v2   ;;  %v1031_v19 = vpop.f32.mrb[28].mxu0  ;;  %v1229_v60 = vpack.c.bf16 %v1147_v61, %v1145_v1  ;;  %v3990_v27 = vld [vmem:[%s7320_s13 + $0x488] sm:$0xff]  ;;  %v3989_v1 = vld [vmem:[%s7320_s13 + $0x480] sm:$0xff] }
 0x15c   : > { %v1032_v24 = vadd.f32 %v1031_v19, %v7489_v5  ;;  %v1033_v0 = vpop.f32.mrb[29].mxu0 }
 0x15d   : > { %v1035_v42 = vpop.f32.mrb[30].mxu0  ;;  %v1034_v49 = vadd.f32 %v1033_v0, %v7489_v5  ;;  %1612 = vmatprep.subr.bf16.mxu1 %v1229_v60  ;;  %v3992_v60 = vld [vmem:[%s7320_s13 + $0x498] sm:$0xff] }
 0x15e   : > { %v1036_v41 = vadd.f32 %v1035_v42, %v7487_v4  ;;  %v1037_v16 = vpop.f32.mrb[31].mxu0  ;;  %v1148_v50 = vmax.f32 %v1032_v24, 0.0  ;;  %1613 = vmatpush1.bf16.msra.mxu1 %v1228_v58  ;;  %v7707_v24 = vpop.permute.xlu1 %1990 }
 0x15f   : > { %4082 = vperm.xlu1 %6689, %v3988_v48   ;;  %4077 = vperm.xlu0 %6688, %v3987_v52   ;;  %v1038_v2 = vadd.f32 %v1037_v16, %v7487_v4  ;;  %v1149_v5 = vmax.f32 %v1034_v49, 0.0  ;;  %v3991_v52 = vld [vmem:[%s7320_s13 + $0x490] sm:$0xff]  ;;  %8720 = vst [vmem:[#allocation15_spill] sm:$0xff] %v7707_v24  ;;  %v7709_v4 = vpop.permute.xlu0 %1985 }
 0x160   : > { %v1150_v55 = vmax.f32 %v1036_v41, 0.0 }
 0x161   : > { %v1151_v19 = vmax.f32 %v1038_v2, 0.0 }
 0x162   : > { %v1230_v61 = vpack.c.bf16 %v1150_v55, %v1148_v50  ;;  %v7716_v24 = vpop.permute.xlu1 %2000 }
 0x163   : > { %4092 = vperm.xlu1 %6689, %v3990_v27   ;;  %4087 = vperm.xlu0 %6688, %v3989_v1   ;;  %v1041_v48 = vpop.f32.mrb[32].mxu0  ;;  %v1231_v0 = vpack.c.bf16 %v1151_v19, %v1149_v5  ;;  %v3994_v27 = vld [vmem:[%s7320_s13 + $0x4a8] sm:$0xff]  ;;  %v3993_v1 = vld [vmem:[%s7320_s13 + $0x4a0] sm:$0xff] }
 0x164   : > { %v1042_v42 = vadd.f32 %v1041_v48, %v7495_v9  ;;  %v1043_v12 = vpop.f32.mrb[33].mxu0 }
 0x165   : > { %v1045_v41 = vpop.f32.mrb[34].mxu0  ;;  %v1044_v58 = vadd.f32 %v1043_v12, %v7495_v9  ;;  %1614 = vmatprep.subr.bf16.mxu1 %v1231_v0  ;;  %v3996_v12 = vld [vmem:[%s7320_s13 + $0x4b8] sm:$0xff] }
 0x166   : > { %v1046_v49 = vadd.f32 %v1045_v41, %v7493_v8  ;;  %v1047_v16 = vpop.f32.mrb[35].mxu0  ;;  %v1152_v50 = vmax.f32 %v1042_v42, 0.0  ;;  %1615 = vmatpush1.bf16.msra.mxu1 %v1230_v61 }
 0x167   : > { %4102 = vperm.xlu1 %6689, %v3992_v60   ;;  %4097 = vperm.xlu0 %6688, %v3991_v52   ;;  %v1048_v2 = vadd.f32 %v1047_v16, %v7493_v8  ;;  %v1153_v5 = vmax.f32 %v1044_v58, 0.0  ;;  %v3995_v60 = vld [vmem:[%s7320_s13 + $0x4b0] sm:$0xff]  ;;  %v7720_v52 = vpop.permute.xlu0 %1995  ;;  %v3998_v16 = vld [vmem:[%s7320_s13 + $0x4c8] sm:$0xff] }
 0x168   : > { %v1154_v55 = vmax.f32 %v1046_v49, 0.0 }
 0x169   : > { %v1155_v48 = vmax.f32 %v1048_v2, 0.0  ;;  %v3997_v2 = vld [vmem:[%s7320_s13 + $0x4c0] sm:$0xff] }
 0x16a   : > { %v1232_v19 = vpack.c.bf16 %v1154_v55, %v1152_v50 }
 0x16b   : > { %4112 = vperm.xlu1 %6689, %v3994_v27   ;;  %4107 = vperm.xlu0 %6688, %v3993_v1   ;;  %v1051_v9 = vpop.f32.mrb[36].mxu0  ;;  %v1233_v0 = vpack.c.bf16 %v1155_v48, %v1153_v5  ;;  %v7728_v1 = vpop.permute.xlu1 %2010 }
 0x16c   : > { %v1052_v42 = vadd.f32 %v1051_v9, %v7501_v14  ;;  %v1053_v8 = vpop.f32.mrb[37].mxu0  ;;  %v7730_v5 = vpop.permute.xlu0 %2005 }
 0x16d   : > { %v1055_v61 = vpop.f32.mrb[38].mxu0  ;;  %v1054_v41 = vadd.f32 %v1053_v8, %v7501_v14  ;;  %1616 = vmatprep.subr.bf16.mxu1 %v1233_v0  ;;  %v4000_v8 = vld [vmem:[%s7320_s13 + $0x4d8] sm:$0xff]  ;;  %v3999_v0 = vld [vmem:[%s7320_s13 + $0x4d0] sm:$0xff] }
 0x16e   : > { %v1056_v58 = vadd.f32 %v1055_v61, %v7499_v13  ;;  %v1057_v49 = vpop.f32.mrb[39].mxu0  ;;  %v1156_v27 = vmax.f32 %v1052_v42, 0.0  ;;  %1617 = vmatpush1.bf16.msra.mxu1 %v1232_v19 }
 0x16f   : > { %4122 = vperm.xlu1 %6689, %v3996_v12   ;;  %4117 = vperm.xlu0 %6688, %v3995_v60   ;;  %v1058_v55 = vadd.f32 %v1057_v49, %v7499_v13  ;;  %v1157_v14 = vmax.f32 %v1054_v41, 0.0  ;;  %v7737_v41 = vpop.permute.xlu1 %2020 }
 0x170   : > { %v1158_v50 = vmax.f32 %v1056_v58, 0.0 }
 0x171   : > { %v1159_v9 = vmax.f32 %v1058_v55, 0.0 }
 0x172   : > { %v1234_v48 = vpack.c.bf16 %v1158_v50, %v1156_v27 }
 0x173   : > { %4132 = vperm.xlu1 %6689, %v3998_v16   ;;  %4127 = vperm.xlu0 %6688, %v3997_v2   ;;  %v1061_v12 = vpop.f32.mrb[40].mxu0  ;;  %v1235_v60 = vpack.c.bf16 %v1159_v9, %v1157_v14  ;;  %v7739_v16 = vpop.permute.xlu0 %2015  ;;  %v4002_v2 = vld [vmem:[%s7320_s13 + $0x4e8] sm:$0xff]  ;;  %v4001_v14 = vld [vmem:[%s7320_s13 + $0x4e0] sm:$0xff] }
 0x174   : > { %v1062_v42 = vadd.f32 %v1061_v12, %v7507_v18  ;;  %v1063_v13 = vpop.f32.mrb[41].mxu0 }
 0x175   : > { %v1065_v19 = vpop.f32.mrb[42].mxu0  ;;  %v1064_v61 = vadd.f32 %v1063_v13, %v7507_v18  ;;  %1618 = vmatprep.subr.bf16.mxu1 %v1235_v60 }
 0x176   : > { %v1066_v58 = vadd.f32 %v1065_v19, %v7505_v17  ;;  %v1067_v49 = vpop.f32.mrb[43].mxu0  ;;  %v1160_v27 = vmax.f32 %v1062_v42, 0.0  ;;  %1619 = vmatpush1.bf16.msra.mxu1 %v1234_v48  ;;  %v4004_v19 = vld [vmem:[%s7320_s13 + $0x4f8] sm:$0xff]  ;;  %v4003_v42 = vld [vmem:[%s7320_s13 + $0x4f0] sm:$0xff] }
 0x177   : > { %4142 = vperm.xlu1 %6689, %v4000_v8   ;;  %4137 = vperm.xlu0 %6688, %v3999_v0   ;;  %v1068_v55 = vadd.f32 %v1067_v49, %v7505_v17  ;;  %v1161_v18 = vmax.f32 %v1064_v61, 0.0  ;;  %v7749_v48 = vpop.permute.xlu0 %2025 }
 0x178   : > { %v1162_v50 = vmax.f32 %v1066_v58, 0.0  ;;  %v7747_v58 = vpop.permute.xlu1 %2030  ;;  %8722 = vst [vmem:[#allocation17_spill] sm:$0xff] %v7749_v48 }
 0x179   : > { %v1163_v12 = vmax.f32 %v1068_v55, 0.0  ;;  %8721 = vst [vmem:[#allocation16_spill] sm:$0xff] %v7747_v58 }
 0x17a   : > { %v1236_v9 = vpack.c.bf16 %v1162_v50, %v1160_v27 }
 0x17b   : > { %4152 = vperm.xlu1 %6689, %v4002_v2   ;;  %4147 = vperm.xlu0 %6688, %v4001_v14   ;;  %v1071_v60 = vpop.f32.mrb[44].mxu0  ;;  %v1237_v8 = vpack.c.bf16 %v1163_v12, %v1161_v18  ;;  %v4362_v14 = vld [vmem:[%s7320_s13 + $0x508] sm:$0xff]  ;;  %v4361_v18 = vld [vmem:[%s7320_s13 + $0x500] sm:$0xff] }
 0x17c   : > { %v1072_v0 = vadd.f32 %v1071_v60, %v7513_v22  ;;  %v1073_v13 = vpop.f32.mrb[45].mxu0  ;;  %v7756_v48 = vpop.permute.xlu1 %2040 }
 0x17d   : > { %v1075_v17 = vpop.f32.mrb[46].mxu0  ;;  %v1074_v61 = vadd.f32 %v1073_v13, %v7513_v22  ;;  %1620 = vmatprep.subr.bf16.mxu1 %v1237_v8  ;;  %v7758_v8 = vpop.permute.xlu0 %2035 }
 0x17e   : > { %v1076_v49 = vadd.f32 %v1075_v17, %v7511_v21  ;;  %v1077_v27 = vpop.f32.mrb[47].mxu0  ;;  %v1164_v50 = vmax.f32 %v1072_v0, 0.0  ;;  %1621 = vmatpush1.bf16.msra.mxu1 %v1236_v9  ;;  %v4363_v9 = vld [vmem:[%s7320_s13 + $0x510] sm:$0xff] }
 0x17f   : > { %4162 = vperm.xlu1 %6689, %v4004_v19   ;;  %4157 = vperm.xlu0 %6688, %v4003_v42   ;;  %v1078_v2 = vadd.f32 %v1077_v27, %v7511_v21  ;;  %v1165_v12 = vmax.f32 %v1074_v61, 0.0  ;;  %v4364_v19 = vld [vmem:[%s7320_s13 + $0x518] sm:$0xff] }
 0x180   : > { %v1166_v55 = vmax.f32 %v1076_v49, 0.0 }
 0x181   : > { %v1167_v58 = vmax.f32 %v1078_v2, 0.0  ;;  %v4365_v2 = vld [vmem:[%s7320_s13 + $0x520] sm:$0xff] }
 0x182   : > { %v1238_v60 = vpack.c.bf16 %v1166_v55, %v1164_v50  ;;  %v4366_v55 = vld [vmem:[%s7320_s13 + $0x528] sm:$0xff] }
 0x183   : > { %4404 = vperm.xlu1 %6689, %v4362_v14   ;;  %4399 = vperm.xlu0 %6688, %v4361_v18   ;;  %v1081_v22 = vpop.f32.mrb[48].mxu0  ;;  %v1239_v13 = vpack.c.bf16 %v1167_v58, %v1165_v12  ;;  %v7768_v14 = vpop.permute.xlu1 %2050 }
 0x184   : > { %v1082_v0 = vadd.f32 %v1081_v22, %v7519_v26  ;;  %v1083_v21 = vpop.f32.mrb[49].mxu0  ;;  %v7770_v18 = vpop.permute.xlu0 %2045 }
 0x185   : > { %v1085_v42 = vpop.f32.mrb[50].mxu0  ;;  %v1084_v17 = vadd.f32 %v1083_v21, %v7519_v26  ;;  %1622 = vmatprep.subr.bf16.mxu1 %v1239_v13 }
 0x186   : > { %v1086_v61 = vadd.f32 %v1085_v42, %v7517_v25  ;;  %v1087_v49 = vpop.f32.mrb[51].mxu0  ;;  %v1168_v27 = vmax.f32 %v1082_v0, 0.0  ;;  %1623 = vmatpush1.bf16.msra.mxu1 %v1238_v60  ;;  %v4367_v60 = vld [vmem:[%s7320_s13 + $0x530] sm:$0xff] }
 0x187   : > { %4414 = vperm.xlu1 %6689, %v4364_v19   ;;  %4409 = vperm.xlu0 %6688, %v4363_v9   ;;  %v1088_v58 = vadd.f32 %v1087_v49, %v7517_v25  ;;  %v1169_v26 = vmax.f32 %v1084_v17, 0.0  ;;  %v4368_v25 = vld [vmem:[%s7320_s13 + $0x538] sm:$0xff]  ;;  %v7777_v17 = vpop.permute.xlu1 %2060 }
 0x188   : > { %v1170_v50 = vmax.f32 %v1086_v61, 0.0 }
 0x189   : > { %v1171_v22 = vmax.f32 %v1088_v58, 0.0 }
 0x18a   : > { %v1240_v12 = vpack.c.bf16 %v1170_v50, %v1168_v27  ;;  %v7779_v27 = vpop.permute.xlu0 %2055 }
 0x18b   : > { %4424 = vperm.xlu1 %6689, %v4366_v55   ;;  %4419 = vperm.xlu0 %6688, %v4365_v2   ;;  %v1091_v13 = vpop.f32.mrb[52].mxu0  ;;  %v1241_v21 = vpack.c.bf16 %v1171_v22, %v1169_v26  ;;  %v4370_v2 = vld [vmem:[%s7320_s13 + $0x548] sm:$0xff]  ;;  %v4369_v26 = vld [vmem:[%s7320_s13 + $0x540] sm:$0xff] }
 0x18c   : > { %v1092_v0 = vadd.f32 %v1091_v13, %v7525_v30  ;;  %v1093_v19 = vpop.f32.mrb[53].mxu0 }
 0x18d   : > { %v1095_v9 = vpop.f32.mrb[54].mxu0  ;;  %v1094_v42 = vadd.f32 %v1093_v19, %v7525_v30  ;;  %1624 = vmatprep.subr.bf16.mxu1 %v1241_v21 }
 0x18e   : > { %v1096_v61 = vadd.f32 %v1095_v9, %v7523_v29  ;;  %v1097_v49 = vpop.f32.mrb[55].mxu0  ;;  %v1172_v50 = vmax.f32 %v1092_v0, 0.0  ;;  %1625 = vmatpush1.bf16.msra.mxu1 %v1240_v12  ;;  %v4372_v9 = vld [vmem:[%s7320_s13 + $0x558] sm:$0xff]  ;;  %v4371_v0 = vld [vmem:[%s7320_s13 + $0x550] sm:$0xff]  ;;  %v7789_v12 = vpop.permute.xlu0 %2065 }
 0x18f   : > { %4434 = vperm.xlu1 %6689, %v4368_v25   ;;  %4429 = vperm.xlu0 %6688, %v4367_v60   ;;  %v1098_v55 = vadd.f32 %v1097_v49, %v7523_v29  ;;  %v1173_v30 = vmax.f32 %v1094_v42, 0.0  ;;  %8724 = vst [vmem:[#allocation19_spill] sm:$0xff] %v7789_v12 }
 0x190   : > { %v1174_v58 = vmax.f32 %v1096_v61, 0.0  ;;  %v7787_v61 = vpop.permute.xlu1 %2070 }
 0x191   : > { %v1175_v13 = vmax.f32 %v1098_v55, 0.0  ;;  %8723 = vst [vmem:[#allocation18_spill] sm:$0xff] %v7787_v61 }
 0x192   : > { %v1242_v22 = vpack.c.bf16 %v1174_v58, %v1172_v50 }
 0x193   : > { %4444 = vperm.xlu1 %6689, %v4370_v2   ;;  %4439 = vperm.xlu0 %6688, %v4369_v26   ;;  %v1101_v21 = vpop.f32.mrb[56].mxu0  ;;  %v1243_v19 = vpack.c.bf16 %v1175_v13, %v1173_v30  ;;  %v4374_v26 = vld [vmem:[%s7320_s13 + $0x568] sm:$0xff]  ;;  %v4373_v30 = vld [vmem:[%s7320_s13 + $0x560] sm:$0xff] }
 0x194   : > { %v1102_v25 = vadd.f32 %v1101_v21, %v7531_v34  ;;  %v1103_v60 = vpop.f32.mrb[57].mxu0  ;;  %v7796_v12 = vpop.permute.xlu1 %2080 }
 0x195   : > { %v1105_v29 = vpop.f32.mrb[58].mxu0  ;;  %v1104_v42 = vadd.f32 %v1103_v60, %v7531_v34  ;;  %1626 = vmatprep.subr.bf16.mxu1 %v1243_v19  ;;  %v7798_v19 = vpop.permute.xlu0 %2075 }
 0x196   : > { %v1106_v49 = vadd.f32 %v1105_v29, %v7529_v33  ;;  %v1107_v50 = vpop.f32.mrb[59].mxu0  ;;  %v1176_v58 = vmax.f32 %v1102_v25, 0.0  ;;  %1627 = vmatpush1.bf16.msra.mxu1 %v1242_v22  ;;  %v4375_v22 = vld [vmem:[%s7320_s13 + $0x570] sm:$0xff] }
 0x197   : > { %4454 = vperm.xlu1 %6689, %v4372_v9   ;;  %4449 = vperm.xlu0 %6688, %v4371_v0   ;;  %v1108_v2 = vadd.f32 %v1107_v50, %v7529_v33  ;;  %v1177_v13 = vmax.f32 %v1104_v42, 0.0  ;;  %v4376_v9 = vld [vmem:[%s7320_s13 + $0x578] sm:$0xff] }
 0x198   : > { %v1178_v55 = vmax.f32 %v1106_v49, 0.0 }
 0x199   : > { %v1179_v61 = vmax.f32 %v1108_v2, 0.0  ;;  %v4377_v2 = vld [vmem:[%s7320_s13 + $0x580] sm:$0xff] }
 0x19a   : > { %v1244_v21 = vpack.c.bf16 %v1178_v55, %v1176_v58  ;;  %v4378_v55 = vld [vmem:[%s7320_s13 + $0x588] sm:$0xff] }
 0x19b   : > { %4464 = vperm.xlu1 %6689, %v4374_v26   ;;  %4459 = vperm.xlu0 %6688, %v4373_v30   ;;  %v1111_v34 = vpop.f32.mrb[60].mxu0  ;;  %v1245_v60 = vpack.c.bf16 %v1179_v61, %v1177_v13  ;;  %v7808_v26 = vpop.permute.xlu1 %2090 }
 0x19c   : > { %v1112_v25 = vadd.f32 %v1111_v34, %v7537_v38  ;;  %v1113_v33 = vpop.f32.mrb[61].mxu0  ;;  %v7810_v30 = vpop.permute.xlu0 %2085 }
 0x19d   : > { %v1115_v0 = vpop.f32.mrb[62].mxu0  ;;  %v1114_v29 = vadd.f32 %v1113_v33, %v7537_v38  ;;  %1628 = vmatprep.subr.bf16.mxu1 %v1245_v60  ;;  %v6718_v33 = vld [vmem:[%s7603_s10] ss:$8 sps:$4 sm:$0xff]  }
 0x19e   : > { %v1116_v42 = vadd.f32 %v1115_v0, %v7535_v37  ;;  %v1117_v49 = vpop.f32.mrb[63].mxu0  ;;  %v1180_v50 = vmax.f32 %v1112_v25, 0.0  ;;  %1629 = vmatpush1.bf16.msra.mxu1 %v1244_v21  ;;  %v4380_v25 = vld [vmem:[%s7320_s13 + $0x598] sm:$0xff] }
 0x19f   : > { %4474 = vperm.xlu1 %6689, %v4376_v9   ;;  %4469 = vperm.xlu0 %6688, %v4375_v22   ;;  %v1118_v58 = vadd.f32 %v1117_v49, %v7535_v37  ;;  %v1181_v38 = vmax.f32 %v1114_v29, 0.0  ;;  %v4379_v37 = vld [vmem:[%s7320_s13 + $0x590] sm:$0xff]  ;;  %v7814_v21 = vpop.permute.xlu1 %2100  ;;  %v4382_v22 = vld [vmem:[%s7320_s13 + $0x5a8] sm:$0xff]  ;;  %v4381_v29 = vld [vmem:[%s7320_s13 + $0x5a0] sm:$0xff] }
 0x1a0   : > { %v1182_v61 = vmax.f32 %v1116_v42, 0.0  ;;  %8725 = vst [vmem:[#allocation20_spill] sm:$0xff] %v7814_v21  ;;  %v7817_v9 = vpop.permute.xlu0 %2095  ;;  %v6721_v0 = vld [vmem:[%s7603_s10 + $0x14] ss:$8 sps:$4 sm:$0xff]  }
 0x1a1   : > { %v1183_v34 = vmax.f32 %v1118_v58, 0.0  ;;  %v4384_v42 = vld [vmem:[%s7320_s13 + $0x5b8] sm:$0xff] }
 0x1a2   : > { %v1246_v13 = vpack.c.bf16 %v1182_v61, %v1180_v50  ;;  %v4383_v50 = vld [vmem:[%s7320_s13 + $0x5b0] sm:$0xff] }
 0x1a3   : > { %4484 = vperm.xlu1 %6689, %v4378_v55   ;;  %4479 = vperm.xlu0 %6688, %v4377_v2   ;;  %v1247_v60 = vpack.c.bf16 %v1183_v34, %v1181_v38  ;;  %v7823_v49 = vpop.permute.xlu1 %2110  ;;  %v6723_v58 = vld [vmem:[%s7603_s10 + $0x10] ss:$8 sps:$4 sm:$0xff]   ;;  %v4386_v55 = vld [vmem:[%s7320_s13 + $0x5c8] sm:$0xff]  ;;  %v4385_v38 = vld [vmem:[%s7320_s13 + $0x5c0] sm:$0xff] }
 0x1a4   : > { %8726 = vst [vmem:[#allocation21_spill] sm:$0xff] %v7823_v49  ;;  %v7826_v61 = vpop.permute.xlu0 %2105  ;;  %v6724_v2 = vld [vmem:[%s7603_s10 + $0x24] ss:$8 sps:$4 sm:$0xff]  }
 0x1a5   : > { %1630 = vmatprep.subr.bf16.mxu1 %v1247_v60  ;;  %8727 = vst [vmem:[#allocation22_spill] sm:$0xff] %v7826_v61  ;;  %v4388_v60 = vld [vmem:[%s7320_s13 + $0x5d8] sm:$0xff] }
 0x1a6   : > { %1631 = vmatpush1.bf16.msra.mxu1 %v1246_v13 }
 0x1a7   : > { %4494 = vperm.xlu1 %6689, %v4380_v25   ;;  %4489 = vperm.xlu0 %6688, %v4379_v37   ;;  %v7832_v13 = vpop.permute.xlu1 %2633  ;;  %v4387_v25 = vld [vmem:[%s7320_s13 + $0x5d0] sm:$0xff]  ;;  %v6726_v37 = vld [vmem:[%s7603_s10 + $0x20] ss:$8 sps:$4 sm:$0xff]  }
 0x1a8   : > { %8728 = vst [vmem:[#allocation23_spill] sm:$0xff] %v7832_v13  ;;  %v7834_v34 = vpop.permute.xlu0 %2628  ;;  %v6768_v13 = vld [vmem:[%s7603_s10 + $0x104] ss:$8 sps:$4 sm:$0xff]  }
 0x1a9   : > { %1633 = vmatmul.mubr.bf16.vlgmr.msra.gmra.mrb[0].mxu1 %v6718_v33  ;;  %8729 = vst [vmem:[#allocation24_spill] sm:$0xff] %v7834_v34  ;;  %v4390_v33 = vld [vmem:[%s7320_s13 + $0x5e8] sm:$0xff]  ;;  %2305 = vmatprep.mubr.bf16.mxu0 %v6768_v13 }
 0x1aa   : > { %1642 = vmatprep.mubr.bf16.mxu1 %v6721_v0 }
 0x1ab   : > { %4504 = vperm.xlu1 %6689, %v4382_v22   ;;  %4499 = vperm.xlu0 %6688, %v4381_v29   ;;  %v6727_v22 = vld [vmem:[%s7603_s10 + $0x34] ss:$8 sps:$4 sm:$0xff]   ;;  %v7841_v0 = vpop.permute.xlu1 %2643  ;;  %v4389_v29 = vld [vmem:[%s7320_s13 + $0x5e0] sm:$0xff] }
 0x1ac   : > { %8730 = vst [vmem:[#allocation25_spill] sm:$0xff] %v7841_v0  ;;  %v5434_v0 = vld [vmem:[%s7320_s13 + $0x668] sm:$0xff] }
 0x1af   : > { %4514 = vperm.xlu1 %6689, %v4384_v42   ;;  %4509 = vperm.xlu0 %6688, %v4383_v50   ;;  %v7844_v42 = vpop.permute.xlu0 %2638  ;;  %v4392_v50 = vld [vmem:[%s7320_s13 + $0x5f8] sm:$0xff] }
 0x1b0   : > { %8731 = vst [vmem:[#allocation26_spill] sm:$0xff] %v7844_v42  ;;  %v6736_v42 = vld [vmem:[%s7603_s10 + $0x64] ss:$8 sps:$4 sm:$0xff]  }
 0x1b1   : > { %1643 = vmatmul.mubr.bf16.gmra.mrb[4].mxu1 %v6723_v58  ;;  %v4391_v58 = vld [vmem:[%s7320_s13 + $0x5f0] sm:$0xff] }
 0x1b2   : > { %1652 = vmatprep.mubr.bf16.mxu1 %v6724_v2  ;;  %v6729_v2 = vld [vmem:[%s7603_s10 + $0x30] ss:$8 sps:$4 sm:$0xff]  }
 0x1b3   : > { %4524 = vperm.xlu1 %6689, %v4386_v55   ;;  %4519 = vperm.xlu0 %6688, %v4385_v38   ;;  %v7848_v55 = vpop.permute.xlu1 %2653  ;;  %v7851_v38 = vpop.permute.xlu0 %2648 }
 0x1b4   : > { %8732 = vst [vmem:[#allocation27_spill] sm:$0xff] %v7848_v55  ;;  %8733 = vst [vmem:[#allocation28_spill] sm:$0xff] %v7851_v38  ;;  %v5430_v55 = vld [vmem:[%s7320_s13 + $0x648] sm:$0xff]  ;;  %v6733_v38 = vld [vmem:[%s7603_s10 + $0x54] ss:$8 sps:$4 sm:$0xff]  }
 0x1b7   : > { %4534 = vperm.xlu1 %6689, %v4388_v60   ;;  %4529 = vperm.xlu0 %6688, %v4387_v25   ;;  %v5426_v60 = vld [vmem:[%s7320_s13 + $0x628] sm:$0xff] }
 0x1b8   : > { %v6730_v25 = vld [vmem:[%s7603_s10 + $0x44] ss:$8 sps:$4 sm:$0xff]  }
 0x1b9   : > { %1653 = vmatmul.mubr.bf16.gmra.mrb[8].mxu1 %v6726_v37  ;;  %v5425_v37 = vld [vmem:[%s7320_s13 + $0x620] sm:$0xff] }
 0x1ba   : > { %1662 = vmatprep.mubr.bf16.mxu1 %v6727_v22  ;;  %v7857_v22 = vpop.permute.xlu1 %2663 }
 0x1bb   : > { %4544 = vperm.xlu1 %6689, %v4390_v33   ;;  %4539 = vperm.xlu0 %6688, %v4389_v29   ;;  %v5428_v33 = vld [vmem:[%s7320_s13 + $0x638] sm:$0xff]  ;;  %8734 = vst [vmem:[#allocation29_spill] sm:$0xff] %v7857_v22  ;;  %v5427_v29 = vld [vmem:[%s7320_s13 + $0x630] sm:$0xff] }
 0x1bf   : > { %4554 = vperm.xlu1 %6689, %v4392_v50   ;;  %4549 = vperm.xlu0 %6688, %v4391_v58   ;;  %v7860_v50 = vpop.permute.xlu0 %2658  ;;  %v6732_v58 = vld [vmem:[%s7603_s10 + $0x40] ss:$8 sps:$4 sm:$0xff]  }
 0x1c0   : > { %8735 = vst [vmem:[#allocation30_spill] sm:$0xff] %v7860_v50 }
 0x1c1   : > { %1663 = vmatmul.mubr.bf16.gmra.mrb[12].mxu1 %v6729_v2  ;;  %v5429_v2 = vld [vmem:[%s7320_s13 + $0x640] sm:$0xff] }
 0x1c2   : > { %1672 = vmatprep.mubr.bf16.mxu1 %v6730_v25 }
 0x1c3   : > { %5448 = vperm.xlu1 %6689, %v5426_v60   ;;  %5443 = vperm.xlu0 %6688, %v5425_v37   ;;  %v7866_v60 = vpop.permute.xlu1 %2673  ;;  %v7868_v25 = vpop.permute.xlu0 %2668  ;;  %v5432_v37 = vld [vmem:[%s7320_s13 + $0x658] sm:$0xff] }
 0x1c4   : > { %8736 = vst [vmem:[#allocation31_spill] sm:$0xff] %v7866_v60  ;;  %8737 = vst [vmem:[#allocation32_spill] sm:$0xff] %v7868_v25 }
 0x1c7   : > { %5458 = vperm.xlu1 %6689, %v5428_v33   ;;  %5453 = vperm.xlu0 %6688, %v5427_v29   ;;  %v5431_v33 = vld [vmem:[%s7320_s13 + $0x650] sm:$0xff]  ;;  %v7875_v22 = vpop.permute.xlu1 %2683 }
 0x1c8   : > { %v6735_v29 = vld [vmem:[%s7603_s10 + $0x50] ss:$8 sps:$4 sm:$0xff]   ;;  %8738 = vst [vmem:[#allocation33_spill] sm:$0xff] %v7875_v22  ;;  %v5438_v22 = vld [vmem:[%s7320_s13 + $0x688] sm:$0xff] }
 0x1c9   : > { %1673 = vmatmul.mubr.bf16.gmra.mrb[16].mxu1 %v6732_v58  ;;  %v7878_v58 = vpop.permute.xlu0 %2678 }
 0x1ca   : > { %1682 = vmatprep.mubr.bf16.mxu1 %v6733_v38  ;;  %8739 = vst [vmem:[#allocation34_spill] sm:$0xff] %v7878_v58  ;;  %v5436_v38 = vld [vmem:[%s7320_s13 + $0x678] sm:$0xff]  ;;  %v6742_v58 = vld [vmem:[%s7603_s10 + $0x84] ss:$8 sps:$4 sm:$0xff]  }
 0x1cb   : > { %5468 = vperm.xlu1 %6689, %v5430_v55   ;;  %5463 = vperm.xlu0 %6688, %v5429_v2   ;;  %v5433_v55 = vld [vmem:[%s7320_s13 + $0x660] sm:$0xff]  ;;  %v5435_v2 = vld [vmem:[%s7320_s13 + $0x670] sm:$0xff] }
 0x1cd   : > { %v7885_v60 = vpop.permute.xlu0 %2688 }
 0x1ce   : > { %8741 = vst [vmem:[#allocation36_spill] sm:$0xff] %v7885_v60  ;;  %v4394_v60 = vld [vmem:[%s7320_s13 + $0x608] sm:$0xff] }
 0x1cf   : > { %5478 = vperm.xlu1 %6689, %v5432_v37   ;;  %5473 = vperm.xlu0 %6688, %v5431_v33   ;;  %v7882_v37 = vpop.permute.xlu1 %2693  ;;  %v6738_v33 = vld [vmem:[%s7603_s10 + $0x60] ss:$8 sps:$4 sm:$0xff]  }
 0x1d0   : > { %8740 = vst [vmem:[#allocation35_spill] sm:$0xff] %v7882_v37 }
 0x1d1   : > { %1683 = vmatmul.mubr.bf16.gmra.mrb[20].mxu1 %v6735_v29  ;;  %v6739_v29 = vld [vmem:[%s7603_s10 + $0x74] ss:$8 sps:$4 sm:$0xff]   ;;  %v7894_v37 = vpop.permute.xlu0 %2698 }
 0x1d2   : > { %1692 = vmatprep.mubr.bf16.mxu1 %v6736_v42  ;;  %v5440_v42 = vld [vmem:[%s7320_s13 + $0x698] sm:$0xff]  ;;  %8743 = vst [vmem:[#allocation38_spill] sm:$0xff] %v7894_v37 }
 0x1d3   : > { %5488 = vperm.xlu1 %6689, %v5434_v0   ;;  %5483 = vperm.xlu0 %6688, %v5433_v55   ;;  %v5437_v0 = vld [vmem:[%s7320_s13 + $0x680] sm:$0xff]  ;;  %v7891_v55 = vpop.permute.xlu1 %2703  ;;  %v6745_v37 = vld [vmem:[%s7603_s10 + $0x94] ss:$8 sps:$4 sm:$0xff]  }
 0x1d4   : > { %8742 = vst [vmem:[#allocation37_spill] sm:$0xff] %v7891_v55  ;;  %v5606_v55 = vld [vmem:[%s7320_s13 + $0x6a8] sm:$0xff] }
 0x1d7   : > { %5498 = vperm.xlu1 %6689, %v5436_v38   ;;  %5493 = vperm.xlu0 %6688, %v5435_v2   ;;  %v5439_v38 = vld [vmem:[%s7320_s13 + $0x690] sm:$0xff] }
 0x1d8   : > { %v6741_v2 = vld [vmem:[%s7603_s10 + $0x70] ss:$8 sps:$4 sm:$0xff]  }
 0x1d9   : > { %1693 = vmatmul.mubr.bf16.gmra.mrb[24].mxu1 %v6738_v33  ;;  %v7900_v33 = vpop.permute.xlu1 %2713 }
 0x1da   : > { %1702 = vmatprep.mubr.bf16.mxu1 %v6739_v29  ;;  %8744 = vst [vmem:[#allocation39_spill] sm:$0xff] %v7900_v33  ;;  %v7902_v29 = vpop.permute.xlu0 %2708  ;;  %v5605_v33 = vld [vmem:[%s7320_s13 + $0x6a0] sm:$0xff] }
 0x1db   : > { %5508 = vperm.xlu1 %6689, %v5438_v22   ;;  %5503 = vperm.xlu0 %6688, %v5437_v0   ;;  %v4393_v22 = vld [vmem:[%s7320_s13 + $0x600] sm:$0xff]  ;;  %8745 = vst [vmem:[#allocation40_spill] sm:$0xff] %v7902_v29  ;;  %v4396_v0 = vld [vmem:[%s7320_s13 + $0x618] sm:$0xff] }
 0x1dd   : > { %v7909_v25 = vpop.permute.xlu1 %2723 }
 0x1de   : > { %8746 = vst [vmem:[#allocation41_spill] sm:$0xff] %v7909_v25  ;;  %v6748_v25 = vld [vmem:[%s7603_s10 + $0xa4] ss:$8 sps:$4 sm:$0xff]  }
 0x1df   : > { %5518 = vperm.xlu1 %6689, %v5440_v42   ;;  %5513 = vperm.xlu0 %6688, %v5439_v38   ;;  %v4395_v42 = vld [vmem:[%s7320_s13 + $0x610] sm:$0xff]  ;;  %v6744_v38 = vld [vmem:[%s7603_s10 + $0x80] ss:$8 sps:$4 sm:$0xff]  }
 0x1e1   : > { %1703 = vmatmul.mubr.bf16.gmra.mrb[28].mxu1 %v6741_v2  ;;  %v5607_v2 = vld [vmem:[%s7320_s13 + $0x6b0] sm:$0xff] }
 0x1e2   : > { %1712 = vmatprep.mubr.bf16.mxu1 %v6742_v58  ;;  %v5608_v58 = vld [vmem:[%s7320_s13 + $0x6b8] sm:$0xff] }
 0x1e3   : > { %4564 = vperm.xlu1 %6689, %v4394_v60   ;;  %4559 = vperm.xlu0 %6688, %v4393_v22   ;;  %v7912_v60 = vpop.permute.xlu0 %2718  ;;  %v7916_v22 = vpop.permute.xlu1 %2733 }
 0x1e4   : > { %8747 = vst [vmem:[#allocation42_spill] sm:$0xff] %v7912_v60  ;;  %8748 = vst [vmem:[#allocation43_spill] sm:$0xff] %v7916_v22  ;;  %v6757_v22 = vld [vmem:[%s7603_s10 + $0xd4] ss:$8 sps:$4 sm:$0xff]  }
 0x1e7   : > { %4574 = vperm.xlu1 %6689, %v4396_v0   ;;  %4569 = vperm.xlu0 %6688, %v4395_v42   ;;  %v6747_v0 = vld [vmem:[%s7603_s10 + $0x90] ss:$8 sps:$4 sm:$0xff]   ;;  %v7919_v42 = vpop.permute.xlu0 %2728 }
 0x1e8   : > { %8749 = vst [vmem:[#allocation44_spill] sm:$0xff] %v7919_v42  ;;  %v6760_v42 = vld [vmem:[%s7603_s10 + $0xe4] ss:$8 sps:$4 sm:$0xff]  }
 0x1e9   : > { %1713 = vmatmul.mubr.bf16.gmra.mrb[32].mxu1 %v6744_v38  ;;  %v6754_v38 = vld [vmem:[%s7603_s10 + $0xc4] ss:$8 sps:$4 sm:$0xff]  }
 0x1ea   : > { %1722 = vmatprep.mubr.bf16.mxu1 %v6745_v37  ;;  %v6753_v37 = vld [vmem:[%s7603_s10 + $0xb0] ss:$8 sps:$4 sm:$0xff]  }
 0x1eb   : > { %5616 = vperm.xlu1 %6689, %v5606_v55   ;;  %5611 = vperm.xlu0 %6688, %v5605_v33   ;;  %v6750_v55 = vld [vmem:[%s7603_s10 + $0xa0] ss:$8 sps:$4 sm:$0xff]   ;;  %v6751_v33 = vld [vmem:[%s7603_s10 + $0xb4] ss:$8 sps:$4 sm:$0xff]  }
 0x1ef   : > { %5626 = vperm.xlu1 %6689, %v5608_v58   ;;  %5621 = vperm.xlu0 %6688, %v5607_v2   ;;  %v6756_v58 = vld [vmem:[%s7603_s10 + $0xc0] ss:$8 sps:$4 sm:$0xff]   ;;  %v6759_v2 = vld [vmem:[%s7603_s10 + $0xd0] ss:$8 sps:$4 sm:$0xff]  }
 0x1f1   : > { %1723 = vmatmul.mubr.bf16.gmra.mrb[36].mxu1 %v6747_v0  ;;  %v6763_v0 = vld [vmem:[%s7603_s10 + $0xf4] ss:$8 sps:$4 sm:$0xff]  }
 0x1f2   : > { %1732 = vmatprep.mubr.bf16.mxu1 %v6748_v25  ;;  %v6762_v25 = vld [vmem:[%s7603_s10 + $0xe0] ss:$8 sps:$4 sm:$0xff]  }
 0x1f9   : > { %1733 = vmatmul.mubr.bf16.gmra.mrb[40].mxu1 %v6750_v55  ;;  %v6765_v55 = vld [vmem:[%s7603_s10 + $0xf0] ss:$8 sps:$4 sm:$0xff]  }
 0x1fa   : > { %1742 = vmatprep.mubr.bf16.mxu1 %v6751_v33 }
 0x201   : > { %1743 = vmatmul.mubr.bf16.gmra.mrb[44].mxu1 %v6753_v37 }
 0x202   : > { %1752 = vmatprep.mubr.bf16.mxu1 %v6754_v38 }
 0x209   : > { %1753 = vmatmul.mubr.bf16.gmra.mrb[48].mxu1 %v6756_v58 }
 0x20a   : > { %1762 = vmatprep.mubr.bf16.mxu1 %v6757_v22 }
 0x211   : > { %1763 = vmatmul.mubr.bf16.gmra.mrb[52].mxu1 %v6759_v2 }
 0x212   : > { %1772 = vmatprep.mubr.bf16.mxu1 %v6760_v42 }
 0x219   : > { %1773 = vmatmul.mubr.bf16.gmra.mrb[56].mxu1 %v6762_v25 }
 0x21a   : > { %1782 = vmatprep.mubr.bf16.mxu1 %v6763_v0 }
 0x221   : > { %1783 = vmatmul.mubr.bf16.gmra.mrb[60].mxu1 %v6765_v55 }
 0x27c   : > { %v1634_v33 = vpop.f32.mrb[0].mxu1 }
 0x27d   : > { %v1635_v60 = vadd.f32 %v1634_v33, %v7543_v46  ;;  %v1636_v37 = vpop.f32.mrb[1].mxu1 }
 0x27e   : > { %v1637_v38 = vadd.f32 %v1636_v37, %v7543_v46  ;;  %v1638_v29 = vpop.f32.mrb[2].mxu1 }
 0x27f   : > { %v1639_v22 = vadd.f32 %v1638_v29, %v7541_v43  ;;  %v1640_v58 = vpop.f32.mrb[3].mxu1  ;;  %v1793_v42 = vmax.f32 %v1635_v60, 0.0 }
 0x280   : > { %v1641_v2 = vadd.f32 %v1640_v58, %v7541_v43  ;;  %v1794_v25 = vmax.f32 %v1637_v38, 0.0 }
 0x281   : > { %v1795_v50 = vmax.f32 %v1639_v22, 0.0 }
 0x282   : > { %v1796_v0 = vmax.f32 %v1641_v2, 0.0 }
 0x283   : > { %v1889_v34 = vpack.c.bf16 %v1795_v50, %v1793_v42 }
 0x284   : > { %v1890_v55 = vpack.c.bf16 %v1796_v0, %v1794_v25  ;;  %v1644_v49 = vpop.f32.mrb[4].mxu1 }
 0x285   : > { %v1645_v33 = vadd.f32 %v1644_v49, %v7549_v54  ;;  %v1646_v61 = vpop.f32.mrb[5].mxu1 }
 0x286   : > { %v1647_v46 = vadd.f32 %v1646_v61, %v7549_v54  ;;  %v1648_v37 = vpop.f32.mrb[6].mxu1  ;;  %2273 = vmatprep.subr.bf16.mxu0 %v1890_v55 }
 0x287   : > { %v1649_v29 = vadd.f32 %v1648_v37, %v7547_v51  ;;  %v1650_v21 = vpop.f32.mrb[7].mxu1  ;;  %2274 = vmatpush1.bf16.msra.mxu0 %v1889_v34  ;;  %v1797_v60 = vmax.f32 %v1645_v33, 0.0 }
 0x288   : > { %v1651_v43 = vadd.f32 %v1650_v21, %v7547_v51  ;;  %v1798_v38 = vmax.f32 %v1647_v46, 0.0 }
 0x289   : > { %v1799_v13 = vmax.f32 %v1649_v29, 0.0 }
 0x28a   : > { %v1800_v22 = vmax.f32 %v1651_v43, 0.0 }
 0x28b   : > { %v1891_v50 = vpack.c.bf16 %v1799_v13, %v1797_v60 }
 0x28c   : > { %v1892_v58 = vpack.c.bf16 %v1800_v22, %v1798_v38  ;;  %v1654_v2 = vpop.f32.mrb[8].mxu1 }
 0x28d   : > { %v1655_v49 = vadd.f32 %v1654_v2, %v7555_v62  ;;  %v1656_v42 = vpop.f32.mrb[9].mxu1 }
 0x28e   : > { %v1657_v54 = vadd.f32 %v1656_v42, %v7555_v62  ;;  %v1658_v61 = vpop.f32.mrb[10].mxu1  ;;  %2275 = vmatprep.subr.bf16.mxu0 %v1892_v58 }
 0x28f   : > { %v1659_v25 = vadd.f32 %v1658_v61, %v7553_v59  ;;  %v1660_v0 = vpop.f32.mrb[11].mxu1  ;;  %2276 = vmatpush1.bf16.msra.mxu0 %v1891_v50  ;;  %v1801_v21 = vmax.f32 %v1655_v49, 0.0 }
 0x290   : > { %v1661_v51 = vadd.f32 %v1660_v0, %v7553_v59  ;;  %v1802_v55 = vmax.f32 %v1657_v54, 0.0 }
 0x291   : > { %v1803_v34 = vmax.f32 %v1659_v25, 0.0 }
 0x292   : > { %v1804_v33 = vmax.f32 %v1661_v51, 0.0 }
 0x293   : > { %v1893_v46 = vpack.c.bf16 %v1803_v34, %v1801_v21 }
 0x294   : > { %v1894_v37 = vpack.c.bf16 %v1804_v33, %v1802_v55  ;;  %v1664_v29 = vpop.f32.mrb[12].mxu1 }
 0x295   : > { %v1665_v43 = vadd.f32 %v1664_v29, %v7561_v6  ;;  %v1666_v60 = vpop.f32.mrb[13].mxu1 }
 0x296   : > { %v1667_v62 = vadd.f32 %v1666_v60, %v7561_v6  ;;  %v1668_v13 = vpop.f32.mrb[14].mxu1  ;;  %2277 = vmatprep.subr.bf16.mxu0 %v1894_v37 }
 0x297   : > { %v1669_v38 = vadd.f32 %v1668_v13, %v7559_v3  ;;  %v1670_v22 = vpop.f32.mrb[15].mxu1  ;;  %2278 = vmatpush1.bf16.msra.mxu0 %v1893_v46  ;;  %v1805_v50 = vmax.f32 %v1665_v43, 0.0 }
 0x298   : > { %v1671_v59 = vadd.f32 %v1670_v22, %v7559_v3  ;;  %v1806_v2 = vmax.f32 %v1667_v62, 0.0 }
 0x299   : > { %v1807_v58 = vmax.f32 %v1669_v38, 0.0 }
 0x29a   : > { %v1808_v49 = vmax.f32 %v1671_v59, 0.0 }
 0x29b   : > { %v1895_v42 = vpack.c.bf16 %v1807_v58, %v1805_v50 }
 0x29c   : > { %v1896_v54 = vpack.c.bf16 %v1808_v49, %v1806_v2  ;;  %v1674_v61 = vpop.f32.mrb[16].mxu1 }
 0x29d   : > { %v1675_v25 = vadd.f32 %v1674_v61, %v7567_v15  ;;  %v1676_v0 = vpop.f32.mrb[17].mxu1 }
 0x29e   : > { %v1677_v6 = vadd.f32 %v1676_v0, %v7567_v15  ;;  %v1678_v51 = vpop.f32.mrb[18].mxu1  ;;  %2279 = vmatprep.subr.bf16.mxu0 %v1896_v54 }
 0x29f   : > { %v1679_v21 = vadd.f32 %v1678_v51, %v7565_v11  ;;  %v1680_v34 = vpop.f32.mrb[19].mxu1  ;;  %2280 = vmatpush1.bf16.msra.mxu0 %v1895_v42  ;;  %v1809_v55 = vmax.f32 %v1675_v25, 0.0 }
 0x2a0   : > { %v1681_v3 = vadd.f32 %v1680_v34, %v7565_v11  ;;  %v1810_v46 = vmax.f32 %v1677_v6, 0.0 }
 0x2a1   : > { %v1811_v33 = vmax.f32 %v1679_v21, 0.0 }
 0x2a2   : > { %v1812_v37 = vmax.f32 %v1681_v3, 0.0 }
 0x2a3   : > { %v1897_v29 = vpack.c.bf16 %v1811_v33, %v1809_v55 }
 0x2a4   : > { %v1898_v43 = vpack.c.bf16 %v1812_v37, %v1810_v46  ;;  %v1684_v60 = vpop.f32.mrb[20].mxu1 }
 0x2a5   : > { %v1685_v62 = vadd.f32 %v1684_v60, %v7573_v23  ;;  %v1686_v13 = vpop.f32.mrb[21].mxu1 }
 0x2a6   : > { %v1687_v15 = vadd.f32 %v1686_v13, %v7573_v23  ;;  %v1688_v38 = vpop.f32.mrb[22].mxu1  ;;  %2281 = vmatprep.subr.bf16.mxu0 %v1898_v43  ;;  %v8750_v43 = vld [vmem:[#allocation6_spill] sm:$0xff] }
 0x2a7   : > { %v1689_v22 = vadd.f32 %v1688_v38, %v7571_v20  ;;  %v1690_v59 = vpop.f32.mrb[23].mxu1  ;;  %2282 = vmatpush1.bf16.msra.mxu0 %v1897_v29  ;;  %v1813_v50 = vmax.f32 %v1685_v62, 0.0 }
 0x2a8   : > { %v1691_v11 = vadd.f32 %v1690_v59, %v7571_v20  ;;  %v1814_v2 = vmax.f32 %v1687_v15, 0.0  ;;  %v8751_v15 = vld [vmem:[#allocation5_spill] sm:$0xff] }
 0x2a9   : > { %v1815_v58 = vmax.f32 %v1689_v22, 0.0 }
 0x2aa   : > { %v1816_v49 = vmax.f32 %v1691_v11, 0.0 }
 0x2ab   : > { %v1899_v42 = vpack.c.bf16 %v1815_v58, %v1813_v50 }
 0x2ac   : > { %v1900_v54 = vpack.c.bf16 %v1816_v49, %v1814_v2  ;;  %v1694_v61 = vpop.f32.mrb[24].mxu1 }
 0x2ad   : > { %v1695_v25 = vadd.f32 %v1694_v61, %v7579_v31  ;;  %v1696_v0 = vpop.f32.mrb[25].mxu1 }
 0x2ae   : > { %v1697_v23 = vadd.f32 %v1696_v0, %v7579_v31  ;;  %v1698_v6 = vpop.f32.mrb[26].mxu1  ;;  %2283 = vmatprep.subr.bf16.mxu0 %v1900_v54  ;;  %v8752_v54 = vld [vmem:[#allocation8_spill] sm:$0xff] }
 0x2af   : > { %v1699_v51 = vadd.f32 %v1698_v6, %v7577_v28  ;;  %v1700_v21 = vpop.f32.mrb[27].mxu1  ;;  %2284 = vmatpush1.bf16.msra.mxu0 %v1899_v42  ;;  %v1817_v34 = vmax.f32 %v1695_v25, 0.0  ;;  %v8753_v6 = vld [vmem:[#allocation7_spill] sm:$0xff] }
 0x2b0   : > { %v1701_v20 = vadd.f32 %v1700_v21, %v7577_v28  ;;  %v1818_v55 = vmax.f32 %v1697_v23, 0.0 }
 0x2b1   : > { %v1819_v3 = vmax.f32 %v1699_v51, 0.0 }
 0x2b2   : > { %v1820_v33 = vmax.f32 %v1701_v20, 0.0 }
 0x2b3   : > { %v1901_v46 = vpack.c.bf16 %v1819_v3, %v1817_v34 }
 0x2b4   : > { %v1902_v37 = vpack.c.bf16 %v1820_v33, %v1818_v55  ;;  %v1704_v29 = vpop.f32.mrb[28].mxu1 }
 0x2b5   : > { %v1705_v60 = vadd.f32 %v1704_v29, %v8750_v43  ;;  %v1706_v62 = vpop.f32.mrb[29].mxu1 }
 0x2b6   : > { %v1707_v31 = vadd.f32 %v1706_v62, %v8750_v43  ;;  %v1708_v13 = vpop.f32.mrb[30].mxu1  ;;  %2285 = vmatprep.subr.bf16.mxu0 %v1902_v37 }
 0x2b7   : > { %v1709_v38 = vadd.f32 %v1708_v13, %v8751_v15  ;;  %v1710_v22 = vpop.f32.mrb[31].mxu1  ;;  %2286 = vmatpush1.bf16.msra.mxu0 %v1901_v46  ;;  %v1821_v59 = vmax.f32 %v1705_v60, 0.0 }
 0x2b8   : > { %v1711_v28 = vadd.f32 %v1710_v22, %v8751_v15  ;;  %v1822_v50 = vmax.f32 %v1707_v31, 0.0 }
 0x2b9   : > { %v1823_v11 = vmax.f32 %v1709_v38, 0.0 }
 0x2ba   : > { %v1824_v58 = vmax.f32 %v1711_v28, 0.0 }
 0x2bb   : > { %v1903_v2 = vpack.c.bf16 %v1823_v11, %v1821_v59 }
 0x2bc   : > { %v1904_v49 = vpack.c.bf16 %v1824_v58, %v1822_v50  ;;  %v1714_v42 = vpop.f32.mrb[32].mxu1 }
 0x2bd   : > { %v1715_v61 = vadd.f32 %v1714_v42, %v8752_v54  ;;  %v1716_v25 = vpop.f32.mrb[33].mxu1 }
 0x2be   : > { %v1717_v0 = vadd.f32 %v1716_v25, %v8752_v54  ;;  %v1718_v23 = vpop.f32.mrb[34].mxu1  ;;  %2287 = vmatprep.subr.bf16.mxu0 %v1904_v49  ;;  %v8754_v49 = vld [vmem:[#allocation10_spill] sm:$0xff]  ;;  %v8755_v25 = vld [vmem:[#allocation9_spill] sm:$0xff] }
 0x2bf   : > { %v1719_v51 = vadd.f32 %v1718_v23, %v8753_v6  ;;  %v1720_v21 = vpop.f32.mrb[35].mxu1  ;;  %2288 = vmatpush1.bf16.msra.mxu0 %v1903_v2  ;;  %v1825_v34 = vmax.f32 %v1715_v61, 0.0 }
 0x2c0   : > { %v1721_v20 = vadd.f32 %v1720_v21, %v8753_v6  ;;  %v1826_v55 = vmax.f32 %v1717_v0, 0.0 }
 0x2c1   : > { %v1827_v3 = vmax.f32 %v1719_v51, 0.0 }
 0x2c2   : > { %v1828_v33 = vmax.f32 %v1721_v20, 0.0 }
 0x2c3   : > { %v1905_v46 = vpack.c.bf16 %v1827_v3, %v1825_v34 }
 0x2c4   : > { %v1906_v37 = vpack.c.bf16 %v1828_v33, %v1826_v55  ;;  %v1724_v29 = vpop.f32.mrb[36].mxu1 }
 0x2c5   : > { %v1725_v43 = vadd.f32 %v1724_v29, %v7610_v10  ;;  %v1726_v60 = vpop.f32.mrb[37].mxu1 }
 0x2c6   : > { %v1727_v62 = vadd.f32 %v1726_v60, %v7610_v10  ;;  %v1728_v31 = vpop.f32.mrb[38].mxu1  ;;  %2289 = vmatprep.subr.bf16.mxu0 %v1906_v37 }
 0x2c7   : > { %v1729_v13 = vadd.f32 %v1728_v31, %v7607_v40  ;;  %v1730_v15 = vpop.f32.mrb[39].mxu1  ;;  %2290 = vmatpush1.bf16.msra.mxu0 %v1905_v46  ;;  %v1829_v22 = vmax.f32 %v1725_v43, 0.0  ;;  %v8756_v43 = vld [vmem:[#allocation11_spill] sm:$0xff] }
 0x2c8   : > { %v1731_v38 = vadd.f32 %v1730_v15, %v7607_v40  ;;  %v1830_v59 = vmax.f32 %v1727_v62, 0.0 }
 0x2c9   : > { %v1831_v28 = vmax.f32 %v1729_v13, 0.0 }
 0x2ca   : > { %v1832_v11 = vmax.f32 %v1731_v38, 0.0 }
 0x2cb   : > { %v1907_v50 = vpack.c.bf16 %v1831_v28, %v1829_v22 }
 0x2cc   : > { %v1908_v58 = vpack.c.bf16 %v1832_v11, %v1830_v59  ;;  %v1734_v2 = vpop.f32.mrb[40].mxu1 }
 0x2cd   : > { %v1735_v42 = vadd.f32 %v1734_v2, %v8754_v49  ;;  %v1736_v54 = vpop.f32.mrb[41].mxu1 }
 0x2ce   : > { %v1737_v10 = vadd.f32 %v1736_v54, %v8754_v49  ;;  %v1738_v61 = vpop.f32.mrb[42].mxu1  ;;  %2291 = vmatprep.subr.bf16.mxu0 %v1908_v58 }
 0x2cf   : > { %v1739_v0 = vadd.f32 %v1738_v61, %v8755_v25  ;;  %v1740_v23 = vpop.f32.mrb[43].mxu1  ;;  %2292 = vmatpush1.bf16.msra.mxu0 %v1907_v50  ;;  %v1833_v6 = vmax.f32 %v1735_v42, 0.0 }
 0x2d0   : > { %v1741_v40 = vadd.f32 %v1740_v23, %v8755_v25  ;;  %v1834_v21 = vmax.f32 %v1737_v10, 0.0 }
 0x2d1   : > { %v1835_v51 = vmax.f32 %v1739_v0, 0.0 }
 0x2d2   : > { %v1836_v20 = vmax.f32 %v1741_v40, 0.0 }
 0x2d3   : > { %v1909_v34 = vpack.c.bf16 %v1835_v51, %v1833_v6 }
 0x2d4   : > { %v1910_v3 = vpack.c.bf16 %v1836_v20, %v1834_v21  ;;  %v1744_v55 = vpop.f32.mrb[44].mxu1 }
 0x2d5   : > { %v1745_v33 = vadd.f32 %v1744_v55, %v7629_v44  ;;  %v1746_v46 = vpop.f32.mrb[45].mxu1 }
 0x2d6   : > { %v1747_v37 = vadd.f32 %v1746_v46, %v7629_v44  ;;  %v1748_v29 = vpop.f32.mrb[46].mxu1  ;;  %2293 = vmatprep.subr.bf16.mxu0 %v1910_v3 }
 0x2d7   : > { %v1749_v60 = vadd.f32 %v1748_v29, %v8756_v43  ;;  %v1750_v62 = vpop.f32.mrb[47].mxu1  ;;  %2294 = vmatpush1.bf16.msra.mxu0 %v1909_v34  ;;  %v1837_v13 = vmax.f32 %v1745_v33, 0.0 }
 0x2d8   : > { %v1751_v31 = vadd.f32 %v1750_v62, %v8756_v43  ;;  %v1838_v38 = vmax.f32 %v1747_v37, 0.0 }
 0x2d9   : > { %v1839_v15 = vmax.f32 %v1749_v60, 0.0 }
 0x2da   : > { %v1840_v22 = vmax.f32 %v1751_v31, 0.0 }
 0x2db   : > { %v1911_v28 = vpack.c.bf16 %v1839_v15, %v1837_v13  ;;  %v8757_v15 = vld [vmem:[#allocation12_spill] sm:$0xff] }
 0x2dc   : > { %v1912_v59 = vpack.c.bf16 %v1840_v22, %v1838_v38  ;;  %v1754_v11 = vpop.f32.mrb[48].mxu1 }
 0x2dd   : > { %v1755_v50 = vadd.f32 %v1754_v11, %v7640_v36  ;;  %v1756_v58 = vpop.f32.mrb[49].mxu1 }
 0x2de   : > { %v1757_v44 = vadd.f32 %v1756_v58, %v7640_v36  ;;  %v1758_v2 = vpop.f32.mrb[50].mxu1  ;;  %2295 = vmatprep.subr.bf16.mxu0 %v1912_v59 }
 0x2df   : > { %v1759_v49 = vadd.f32 %v1758_v2, %v7636_v63  ;;  %v1760_v42 = vpop.f32.mrb[51].mxu1  ;;  %2296 = vmatpush1.bf16.msra.mxu0 %v1911_v28  ;;  %v1841_v10 = vmax.f32 %v1755_v50, 0.0 }
 0x2e0   : > { %v1761_v54 = vadd.f32 %v1760_v42, %v7636_v63  ;;  %v1842_v25 = vmax.f32 %v1757_v44, 0.0 }
 0x2e1   : > { %v1843_v61 = vmax.f32 %v1759_v49, 0.0 }
 0x2e2   : > { %v1844_v0 = vmax.f32 %v1761_v54, 0.0 }
 0x2e3   : > { %v1913_v23 = vpack.c.bf16 %v1843_v61, %v1841_v10  ;;  %v8758_v10 = vld [vmem:[#allocation13_spill] sm:$0xff] }
 0x2e4   : > { %v1914_v40 = vpack.c.bf16 %v1844_v0, %v1842_v25  ;;  %v1764_v6 = vpop.f32.mrb[52].mxu1 }
 0x2e5   : > { %v1765_v51 = vadd.f32 %v1764_v6, %v7650_v39  ;;  %v1766_v21 = vpop.f32.mrb[53].mxu1 }
 0x2e6   : > { %v1767_v36 = vadd.f32 %v1766_v21, %v7650_v39  ;;  %v1768_v20 = vpop.f32.mrb[54].mxu1  ;;  %2297 = vmatprep.subr.bf16.mxu0 %v1914_v40 }
 0x2e7   : > { %v1769_v34 = vadd.f32 %v1768_v20, %v7648_v7  ;;  %v1770_v3 = vpop.f32.mrb[55].mxu1  ;;  %2298 = vmatpush1.bf16.msra.mxu0 %v1913_v23  ;;  %v1845_v55 = vmax.f32 %v1765_v51, 0.0  ;;  %v6769_v20 = vld [vmem:[%s7603_s10 + $0x114] ss:$8 sps:$4 sm:$0xff]  }
 0x2e8   : > { %v1771_v63 = vadd.f32 %v1770_v3, %v7648_v7  ;;  %v1846_v46 = vmax.f32 %v1767_v36, 0.0  ;;  %v6766_v36 = vld [vmem:[%s7603_s10 + $0x100] ss:$8 sps:$4 sm:$0xff]   ;;  %v6772_v3 = vld [vmem:[%s7603_s10 + $0x124] ss:$8 sps:$4 sm:$0xff]  }
 0x2e9   : > { %v1847_v33 = vmax.f32 %v1769_v34, 0.0  ;;  %v6771_v34 = vld [vmem:[%s7603_s10 + $0x110] ss:$8 sps:$4 sm:$0xff]  }
 0x2ea   : > { %v1848_v37 = vmax.f32 %v1771_v63, 0.0  ;;  %v6774_v63 = vld [vmem:[%s7603_s10 + $0x120] ss:$8 sps:$4 sm:$0xff]  }
 0x2eb   : > { %v1915_v29 = vpack.c.bf16 %v1847_v33, %v1845_v55  ;;  %v6775_v55 = vld [vmem:[%s7603_s10 + $0x134] ss:$8 sps:$4 sm:$0xff]   ;;  %v6777_v33 = vld [vmem:[%s7603_s10 + $0x130] ss:$8 sps:$4 sm:$0xff]  }
 0x2ec   : > { %v1916_v43 = vpack.c.bf16 %v1848_v37, %v1846_v46  ;;  %v1774_v60 = vpop.f32.mrb[56].mxu1  ;;  %v6778_v46 = vld [vmem:[%s7603_s10 + $0x144] ss:$8 sps:$4 sm:$0xff]   ;;  %v6780_v37 = vld [vmem:[%s7603_s10 + $0x140] ss:$8 sps:$4 sm:$0xff]  }
 0x2ed   : > { %v1775_v62 = vadd.f32 %v1774_v60, %v7660_v35  ;;  %v1776_v31 = vpop.f32.mrb[57].mxu1  ;;  %v6784_v60 = vld [vmem:[%s7603_s10 + $0x164] ss:$8 sps:$4 sm:$0xff]  }
 0x2ee   : > { %v1777_v39 = vadd.f32 %v1776_v31, %v7660_v35  ;;  %v1778_v13 = vpop.f32.mrb[58].mxu1  ;;  %2299 = vmatprep.subr.bf16.mxu0 %v1916_v43  ;;  %v6783_v43 = vld [vmem:[%s7603_s10 + $0x150] ss:$8 sps:$4 sm:$0xff]   ;;  %v6787_v31 = vld [vmem:[%s7603_s10 + $0x174] ss:$8 sps:$4 sm:$0xff]  }
 0x2ef   : > { %v1779_v38 = vadd.f32 %v1778_v13, %v8757_v15  ;;  %v1780_v22 = vpop.f32.mrb[59].mxu1  ;;  %2300 = vmatpush1.bf16.msra.mxu0 %v1915_v29  ;;  %v1849_v28 = vmax.f32 %v1775_v62, 0.0  ;;  %v6781_v29 = vld [vmem:[%s7603_s10 + $0x154] ss:$8 sps:$4 sm:$0xff]   ;;  %v6786_v62 = vld [vmem:[%s7603_s10 + $0x160] ss:$8 sps:$4 sm:$0xff]  }
 0x2f0   : > { %v1781_v7 = vadd.f32 %v1780_v22, %v8757_v15  ;;  %v1850_v11 = vmax.f32 %v1777_v39, 0.0  ;;  %v6789_v39 = vld [vmem:[%s7603_s10 + $0x170] ss:$8 sps:$4 sm:$0xff]   ;;  %v6790_v13 = vld [vmem:[%s7603_s10 + $0x184] ss:$8 sps:$4 sm:$0xff]  }
 0x2f1   : > { %v1851_v59 = vmax.f32 %v1779_v38, 0.0  ;;  %v6792_v15 = vld [vmem:[%s7603_s10 + $0x180] ss:$8 sps:$4 sm:$0xff]   ;;  %v6793_v38 = vld [vmem:[%s7603_s10 + $0x194] ss:$8 sps:$4 sm:$0xff]  }
 0x2f2   : > { %v1852_v50 = vmax.f32 %v1781_v7, 0.0  ;;  %v6795_v22 = vld [vmem:[%s7603_s10 + $0x190] ss:$8 sps:$4 sm:$0xff]   ;;  %v6796_v7 = vld [vmem:[%s7603_s10 + $0x1a4] ss:$8 sps:$4 sm:$0xff]  }
 0x2f3   : > { %v1917_v58 = vpack.c.bf16 %v1851_v59, %v1849_v28  ;;  %v6798_v28 = vld [vmem:[%s7603_s10 + $0x1a0] ss:$8 sps:$4 sm:$0xff]   ;;  %v6799_v59 = vld [vmem:[%s7603_s10 + $0x1b4] ss:$8 sps:$4 sm:$0xff]  }
 0x2f4   : > { %v1918_v44 = vpack.c.bf16 %v1852_v50, %v1850_v11  ;;  %v1784_v2 = vpop.f32.mrb[60].mxu1  ;;  %v6801_v11 = vld [vmem:[%s7603_s10 + $0x1b0] ss:$8 sps:$4 sm:$0xff]   ;;  %v6802_v50 = vld [vmem:[%s7603_s10 + $0x1c4] ss:$8 sps:$4 sm:$0xff]  }
 0x2f5   : > { %v1785_v49 = vadd.f32 %v1784_v2, %v7669_v56  ;;  %v1786_v42 = vpop.f32.mrb[61].mxu1  ;;  %v6807_v2 = vld [vmem:[%s7603_s10 + $0x1d0] ss:$8 sps:$4 sm:$0xff]  }
 0x2f6   : > { %v1787_v35 = vadd.f32 %v1786_v42, %v7669_v56  ;;  %v1788_v54 = vpop.f32.mrb[62].mxu1  ;;  %2301 = vmatprep.subr.bf16.mxu0 %v1918_v44  ;;  %v6805_v44 = vld [vmem:[%s7603_s10 + $0x1d4] ss:$8 sps:$4 sm:$0xff]   ;;  %v6810_v42 = vld [vmem:[%s7603_s10 + $0x1e0] ss:$8 sps:$4 sm:$0xff]  }
 0x2f7   : > { %v1789_v61 = vadd.f32 %v1788_v54, %v8758_v10  ;;  %v1790_v25 = vpop.f32.mrb[63].mxu1  ;;  %2302 = vmatpush1.bf16.msra.mxu0 %v1917_v58  ;;  %v1853_v23 = vmax.f32 %v1785_v49, 0.0  ;;  %v6804_v58 = vld [vmem:[%s7603_s10 + $0x1c0] ss:$8 sps:$4 sm:$0xff]   ;;  %v6808_v49 = vld [vmem:[%s7603_s10 + $0x1e4] ss:$8 sps:$4 sm:$0xff]  }
 0x2f8   : > { %v1791_v0 = vadd.f32 %v1790_v25, %v8758_v10  ;;  %v1854_v6 = vmax.f32 %v1787_v35, 0.0  ;;  %v6811_v35 = vld [vmem:[%s7603_s10 + $0x1f4] ss:$8 sps:$4 sm:$0xff]   ;;  %v6813_v54 = vld [vmem:[%s7603_s10 + $0x1f0] ss:$8 sps:$4 sm:$0xff]  }
 0x2f9   : > { %v1855_v40 = vmax.f32 %v1789_v61, 0.0 }
 0x2fa   : > { %v1856_v51 = vmax.f32 %v1791_v0, 0.0 }
 0x2fb   : > { %v1919_v21 = vpack.c.bf16 %v1855_v40, %v1853_v23 }
 0x2fc   : > { %v1920_v56 = vpack.c.bf16 %v1856_v51, %v1854_v6  ;;  %v6816_v51 = vld [vmem:[%s7603_s10 + $0x204] ss:$8 sps:$4 sm:$0xff]  }
 0x2fe   : > { %2303 = vmatprep.subr.bf16.mxu0 %v1920_v56  ;;  %v6819_v56 = vld [vmem:[%s7603_s10 + $0x234] ss:$8 sps:$4 sm:$0xff]  }
 0x2ff   : > { %2304 = vmatpush1.bf16.msra.mxu0 %v1919_v21  ;;  %3008 = vmatprep.mubr.bf16.mxu1 %v6819_v56 }
 0x302   : > { %2306 = vmatmul.mubr.bf16.vlgmr.msra.gmra.mrb[64].mxu0 %v6766_v36 }
 0x303   : > { %2315 = vmatprep.mubr.bf16.mxu0 %v6769_v20 }
 0x30a   : > { %2316 = vmatmul.mubr.bf16.gmra.mrb[68].mxu0 %v6771_v34 }
 0x30b   : > { %2325 = vmatprep.mubr.bf16.mxu0 %v6772_v3 }
 0x312   : > { %2326 = vmatmul.mubr.bf16.gmra.mrb[72].mxu0 %v6774_v63 }
 0x313   : > { %2335 = vmatprep.mubr.bf16.mxu0 %v6775_v55 }
 0x31a   : > { %2336 = vmatmul.mubr.bf16.gmra.mrb[76].mxu0 %v6777_v33 }
 0x31b   : > { %2345 = vmatprep.mubr.bf16.mxu0 %v6778_v46 }
 0x322   : > { %2346 = vmatmul.mubr.bf16.gmra.mrb[80].mxu0 %v6780_v37 }
 0x323   : > { %2355 = vmatprep.mubr.bf16.mxu0 %v6781_v29 }
 0x32a   : > { %2356 = vmatmul.mubr.bf16.gmra.mrb[84].mxu0 %v6783_v43 }
 0x32b   : > { %2365 = vmatprep.mubr.bf16.mxu0 %v6784_v60 }
 0x332   : > { %2366 = vmatmul.mubr.bf16.gmra.mrb[88].mxu0 %v6786_v62 }
 0x333   : > { %2375 = vmatprep.mubr.bf16.mxu0 %v6787_v31 }
 0x33a   : > { %2376 = vmatmul.mubr.bf16.gmra.mrb[92].mxu0 %v6789_v39 }
 0x33b   : > { %2385 = vmatprep.mubr.bf16.mxu0 %v6790_v13 }
 0x342   : > { %2386 = vmatmul.mubr.bf16.gmra.mrb[96].mxu0 %v6792_v15 }
 0x343   : > { %2395 = vmatprep.mubr.bf16.mxu0 %v6793_v38 }
 0x34a   : > { %2396 = vmatmul.mubr.bf16.gmra.mrb[100].mxu0 %v6795_v22 }
 0x34b   : > { %2405 = vmatprep.mubr.bf16.mxu0 %v6796_v7 }
 0x352   : > { %2406 = vmatmul.mubr.bf16.gmra.mrb[104].mxu0 %v6798_v28 }
 0x353   : > { %2415 = vmatprep.mubr.bf16.mxu0 %v6799_v59 }
 0x35a   : > { %2416 = vmatmul.mubr.bf16.gmra.mrb[108].mxu0 %v6801_v11  ;;  %v8759_v11 = vld [vmem:[#allocation14_spill] sm:$0xff] }
 0x35b   : > { %2425 = vmatprep.mubr.bf16.mxu0 %v6802_v50 }
 0x362   : > { %2426 = vmatmul.mubr.bf16.gmra.mrb[112].mxu0 %v6804_v58 }
 0x363   : > { %2435 = vmatprep.mubr.bf16.mxu0 %v6805_v44 }
 0x36a   : > { %2436 = vmatmul.mubr.bf16.gmra.mrb[116].mxu0 %v6807_v2 }
 0x36b   : > { %2445 = vmatprep.mubr.bf16.mxu0 %v6808_v49 }
 0x372   : > { %2446 = vmatmul.mubr.bf16.gmra.mrb[120].mxu0 %v6810_v42 }
 0x373   : > { %2455 = vmatprep.mubr.bf16.mxu0 %v6811_v35 }
 0x37a   : > { %2456 = vmatmul.mubr.bf16.gmra.mrb[124].mxu0 %v6813_v54 }
 0x37b   : > { %2978 = vmatprep.mubr.bf16.mxu0 %v6816_v51 }
 0x3d5   : > { %v2307_v10 = vpop.f32.mrb[64].mxu0 }
 0x3d6   : > { %v2308_v61 = vadd.f32 %v2307_v10, %v7680_v47  ;;  %v2309_v25 = vpop.f32.mrb[65].mxu0 }
 0x3d7   : > { %v2310_v0 = vadd.f32 %v2309_v25, %v7680_v47  ;;  %v2311_v23 = vpop.f32.mrb[66].mxu0 }
 0x3d8   : > { %v2312_v40 = vadd.f32 %v2311_v23, %v7676_v45  ;;  %v2313_v6 = vpop.f32.mrb[67].mxu0  ;;  %v2466_v36 = vmax.f32 %v2308_v61, 0.0  ;;  %v8760_v23 = vld [vmem:[#allocation15_spill] sm:$0xff] }
 0x3d9   : > { %v2314_v21 = vadd.f32 %v2313_v6, %v7676_v45  ;;  %v2467_v34 = vmax.f32 %v2310_v0, 0.0 }
 0x3da   : > { %v2468_v20 = vmax.f32 %v2312_v40, 0.0 }
 0x3db   : > { %v2469_v3 = vmax.f32 %v2314_v21, 0.0 }
 0x3dc   : > { %v2562_v63 = vpack.c.bf16 %v2468_v20, %v2466_v36 }
 0x3dd   : > { %v2563_v55 = vpack.c.bf16 %v2469_v3, %v2467_v34  ;;  %v2317_v33 = vpop.f32.mrb[68].mxu0 }
 0x3de   : > { %v2318_v46 = vadd.f32 %v2317_v33, %v7690_v57  ;;  %v2319_v47 = vpop.f32.mrb[69].mxu0 }
 0x3df   : > { %v2320_v37 = vadd.f32 %v2319_v47, %v7690_v57  ;;  %v2321_v29 = vpop.f32.mrb[70].mxu0  ;;  %2946 = vmatprep.subr.bf16.mxu0 %v2563_v55  ;;  %6485 = vmatprep.subr.bf16.mxu1 %v2563_v55 }
 0x3e0   : > { %v2322_v45 = vadd.f32 %v2321_v29, %v7688_v53  ;;  %v2323_v43 = vpop.f32.mrb[71].mxu0  ;;  %2947 = vmatpush1.bf16.msra.mxu0 %v2562_v63  ;;  %6501 = vmatpush1.bf16.msra.mxu1 %v2562_v63  ;;  %v2470_v62 = vmax.f32 %v2318_v46, 0.0 }
 0x3e1   : > { %v2324_v60 = vadd.f32 %v2323_v43, %v7688_v53  ;;  %v2471_v39 = vmax.f32 %v2320_v37, 0.0 }
 0x3e2   : > { %v2472_v31 = vmax.f32 %v2322_v45, 0.0 }
 0x3e3   : > { %v2473_v13 = vmax.f32 %v2324_v60, 0.0 }
 0x3e4   : > { %v2564_v15 = vpack.c.bf16 %v2472_v31, %v2470_v62 }
 0x3e5   : > { %v2565_v38 = vpack.c.bf16 %v2473_v13, %v2471_v39  ;;  %v2327_v22 = vpop.f32.mrb[72].mxu0 }
 0x3e6   : > { %v2328_v7 = vadd.f32 %v2327_v22, %v7700_v32  ;;  %v2329_v57 = vpop.f32.mrb[73].mxu0 }
 0x3e7   : > { %v2330_v28 = vadd.f32 %v2329_v57, %v7700_v32  ;;  %v2331_v59 = vpop.f32.mrb[74].mxu0  ;;  %2948 = vmatprep.subr.bf16.mxu0 %v2565_v38  ;;  %6486 = vmatprep.subr.bf16.mxu1 %v2565_v38 }
 0x3e8   : > { %v2332_v50 = vadd.f32 %v2331_v59, %v8759_v11  ;;  %v2333_v58 = vpop.f32.mrb[75].mxu0  ;;  %2949 = vmatpush1.bf16.msra.mxu0 %v2564_v15  ;;  %6502 = vmatpush1.bf16.msra.mxu1 %v2564_v15  ;;  %v2474_v44 = vmax.f32 %v2328_v7, 0.0 }
 0x3e9   : > { %v2334_v53 = vadd.f32 %v2333_v58, %v8759_v11  ;;  %v2475_v49 = vmax.f32 %v2330_v28, 0.0 }
 0x3ea   : > { %v2476_v2 = vmax.f32 %v2332_v50, 0.0 }
 0x3eb   : > { %v2477_v42 = vmax.f32 %v2334_v53, 0.0 }
 0x3ec   : > { %v2566_v35 = vpack.c.bf16 %v2476_v2, %v2474_v44 }
 0x3ed   : > { %v2567_v54 = vpack.c.bf16 %v2477_v42, %v2475_v49  ;;  %v2337_v10 = vpop.f32.mrb[76].mxu0 }
 0x3ee   : > { %v2338_v61 = vadd.f32 %v2337_v10, %v7709_v4  ;;  %v2339_v32 = vpop.f32.mrb[77].mxu0 }
 0x3ef   : > { %v2340_v25 = vadd.f32 %v2339_v32, %v7709_v4  ;;  %v2341_v0 = vpop.f32.mrb[78].mxu0  ;;  %2950 = vmatprep.subr.bf16.mxu0 %v2567_v54  ;;  %6487 = vmatprep.subr.bf16.mxu1 %v2567_v54 }
 0x3f0   : > { %v2342_v40 = vadd.f32 %v2341_v0, %v8760_v23  ;;  %v2343_v6 = vpop.f32.mrb[79].mxu0  ;;  %2951 = vmatpush1.bf16.msra.mxu0 %v2566_v35  ;;  %6503 = vmatpush1.bf16.msra.mxu1 %v2566_v35  ;;  %v2478_v21 = vmax.f32 %v2338_v61, 0.0 }
 0x3f1   : > { %v2344_v51 = vadd.f32 %v2343_v6, %v8760_v23  ;;  %v2479_v36 = vmax.f32 %v2340_v25, 0.0  ;;  %v8761_v6 = vld [vmem:[#allocation17_spill] sm:$0xff] }
 0x3f2   : > { %v2480_v56 = vmax.f32 %v2342_v40, 0.0 }
 0x3f3   : > { %v2481_v20 = vmax.f32 %v2344_v51, 0.0 }
 0x3f4   : > { %v2568_v34 = vpack.c.bf16 %v2480_v56, %v2478_v21 }
 0x3f5   : > { %v2569_v3 = vpack.c.bf16 %v2481_v20, %v2479_v36  ;;  %v2347_v63 = vpop.f32.mrb[80].mxu0  ;;  %v8762_v36 = vld [vmem:[#allocation16_spill] sm:$0xff] }
 0x3f6   : > { %v2348_v55 = vadd.f32 %v2347_v63, %v7720_v52  ;;  %v2349_v4 = vpop.f32.mrb[81].mxu0 }
 0x3f7   : > { %v2350_v33 = vadd.f32 %v2349_v4, %v7720_v52  ;;  %v2351_v46 = vpop.f32.mrb[82].mxu0  ;;  %2952 = vmatprep.subr.bf16.mxu0 %v2569_v3  ;;  %6488 = vmatprep.subr.bf16.mxu1 %v2569_v3 }
 0x3f8   : > { %v2352_v47 = vadd.f32 %v2351_v46, %v7716_v24  ;;  %v2353_v37 = vpop.f32.mrb[83].mxu0  ;;  %2953 = vmatpush1.bf16.msra.mxu0 %v2568_v34  ;;  %6504 = vmatpush1.bf16.msra.mxu1 %v2568_v34  ;;  %v2482_v45 = vmax.f32 %v2348_v55, 0.0 }
 0x3f9   : > { %v2354_v29 = vadd.f32 %v2353_v37, %v7716_v24  ;;  %v2483_v60 = vmax.f32 %v2350_v33, 0.0 }
 0x3fa   : > { %v2484_v43 = vmax.f32 %v2352_v47, 0.0 }
 0x3fb   : > { %v2485_v62 = vmax.f32 %v2354_v29, 0.0 }
 0x3fc   : > { %v2570_v31 = vpack.c.bf16 %v2484_v43, %v2482_v45 }
 0x3fd   : > { %v2571_v39 = vpack.c.bf16 %v2485_v62, %v2483_v60  ;;  %v2357_v13 = vpop.f32.mrb[84].mxu0 }
 0x3fe   : > { %v2358_v15 = vadd.f32 %v2357_v13, %v7730_v5  ;;  %v2359_v52 = vpop.f32.mrb[85].mxu0 }
 0x3ff   : > { %v2360_v38 = vadd.f32 %v2359_v52, %v7730_v5  ;;  %v2361_v22 = vpop.f32.mrb[86].mxu0  ;;  %2954 = vmatprep.subr.bf16.mxu0 %v2571_v39  ;;  %6489 = vmatprep.subr.bf16.mxu1 %v2571_v39 }
 0x400   : > { %v2362_v7 = vadd.f32 %v2361_v22, %v7728_v1  ;;  %v2363_v57 = vpop.f32.mrb[87].mxu0  ;;  %2955 = vmatpush1.bf16.msra.mxu0 %v2570_v31  ;;  %6505 = vmatpush1.bf16.msra.mxu1 %v2570_v31  ;;  %v2486_v28 = vmax.f32 %v2358_v15, 0.0 }
 0x401   : > { %v2364_v24 = vadd.f32 %v2363_v57, %v7728_v1  ;;  %v2487_v11 = vmax.f32 %v2360_v38, 0.0 }
 0x402   : > { %v2488_v59 = vmax.f32 %v2362_v7, 0.0 }
 0x403   : > { %v2489_v50 = vmax.f32 %v2364_v24, 0.0 }
 0x404   : > { %v2572_v58 = vpack.c.bf16 %v2488_v59, %v2486_v28 }
 0x405   : > { %v2573_v53 = vpack.c.bf16 %v2489_v50, %v2487_v11  ;;  %v2367_v44 = vpop.f32.mrb[88].mxu0 }
 0x406   : > { %v2368_v2 = vadd.f32 %v2367_v44, %v7739_v16  ;;  %v2369_v5 = vpop.f32.mrb[89].mxu0 }
 0x407   : > { %v2370_v49 = vadd.f32 %v2369_v5, %v7739_v16  ;;  %v2371_v42 = vpop.f32.mrb[90].mxu0  ;;  %2956 = vmatprep.subr.bf16.mxu0 %v2573_v53  ;;  %6490 = vmatprep.subr.bf16.mxu1 %v2573_v53 }
 0x408   : > { %v2372_v35 = vadd.f32 %v2371_v42, %v7737_v41  ;;  %v2373_v54 = vpop.f32.mrb[91].mxu0  ;;  %2957 = vmatpush1.bf16.msra.mxu0 %v2572_v58  ;;  %6506 = vmatpush1.bf16.msra.mxu1 %v2572_v58  ;;  %v2490_v10 = vmax.f32 %v2368_v2, 0.0 }
 0x409   : > { %v2374_v1 = vadd.f32 %v2373_v54, %v7737_v41  ;;  %v2491_v32 = vmax.f32 %v2370_v49, 0.0 }
 0x40a   : > { %v2492_v61 = vmax.f32 %v2372_v35, 0.0 }
 0x40b   : > { %v2493_v25 = vmax.f32 %v2374_v1, 0.0 }
 0x40c   : > { %v2574_v0 = vpack.c.bf16 %v2492_v61, %v2490_v10 }
 0x40d   : > { %v2575_v23 = vpack.c.bf16 %v2493_v25, %v2491_v32  ;;  %v2377_v40 = vpop.f32.mrb[92].mxu0 }
 0x40e   : > { %v2378_v51 = vadd.f32 %v2377_v40, %v8761_v6  ;;  %v2379_v16 = vpop.f32.mrb[93].mxu0 }
 0x40f   : > { %v2380_v21 = vadd.f32 %v2379_v16, %v8761_v6  ;;  %v2381_v56 = vpop.f32.mrb[94].mxu0  ;;  %2958 = vmatprep.subr.bf16.mxu0 %v2575_v23  ;;  %6491 = vmatprep.subr.bf16.mxu1 %v2575_v23 }
 0x410   : > { %v2382_v20 = vadd.f32 %v2381_v56, %v8762_v36  ;;  %v2383_v34 = vpop.f32.mrb[95].mxu0  ;;  %2959 = vmatpush1.bf16.msra.mxu0 %v2574_v0  ;;  %6507 = vmatpush1.bf16.msra.mxu1 %v2574_v0  ;;  %v2494_v3 = vmax.f32 %v2378_v51, 0.0  ;;  %v8763_v51 = vld [vmem:[#allocation19_spill] sm:$0xff] }
 0x411   : > { %v2384_v41 = vadd.f32 %v2383_v34, %v8762_v36  ;;  %v2495_v55 = vmax.f32 %v2380_v21, 0.0  ;;  %v8764_v36 = vld [vmem:[#allocation18_spill] sm:$0xff] }
 0x412   : > { %v2496_v63 = vmax.f32 %v2382_v20, 0.0 }
 0x413   : > { %v2497_v4 = vmax.f32 %v2384_v41, 0.0 }
 0x414   : > { %v2576_v33 = vpack.c.bf16 %v2496_v63, %v2494_v3 }
 0x415   : > { %v2577_v46 = vpack.c.bf16 %v2497_v4, %v2495_v55  ;;  %v2387_v47 = vpop.f32.mrb[96].mxu0 }
 0x416   : > { %v2388_v37 = vadd.f32 %v2387_v47, %v7758_v8  ;;  %v2389_v29 = vpop.f32.mrb[97].mxu0 }
 0x417   : > { %v2390_v45 = vadd.f32 %v2389_v29, %v7758_v8  ;;  %v2391_v43 = vpop.f32.mrb[98].mxu0  ;;  %2960 = vmatprep.subr.bf16.mxu0 %v2577_v46  ;;  %6492 = vmatprep.subr.bf16.mxu1 %v2577_v46 }
 0x418   : > { %v2392_v60 = vadd.f32 %v2391_v43, %v7756_v48  ;;  %v2393_v62 = vpop.f32.mrb[99].mxu0  ;;  %2961 = vmatpush1.bf16.msra.mxu0 %v2576_v33  ;;  %6508 = vmatpush1.bf16.msra.mxu1 %v2576_v33  ;;  %v2498_v39 = vmax.f32 %v2388_v37, 0.0 }
 0x419   : > { %v2394_v31 = vadd.f32 %v2393_v62, %v7756_v48  ;;  %v2499_v15 = vmax.f32 %v2390_v45, 0.0 }
 0x41a   : > { %v2500_v13 = vmax.f32 %v2392_v60, 0.0 }
 0x41b   : > { %v2501_v52 = vmax.f32 %v2394_v31, 0.0 }
 0x41c   : > { %v2578_v38 = vpack.c.bf16 %v2500_v13, %v2498_v39 }
 0x41d   : > { %v2579_v22 = vpack.c.bf16 %v2501_v52, %v2499_v15  ;;  %v2397_v7 = vpop.f32.mrb[100].mxu0 }
 0x41e   : > { %v2398_v57 = vadd.f32 %v2397_v7, %v7770_v18  ;;  %v2399_v8 = vpop.f32.mrb[101].mxu0 }
 0x41f   : > { %v2400_v24 = vadd.f32 %v2399_v8, %v7770_v18  ;;  %v2401_v28 = vpop.f32.mrb[102].mxu0  ;;  %2962 = vmatprep.subr.bf16.mxu0 %v2579_v22  ;;  %6493 = vmatprep.subr.bf16.mxu1 %v2579_v22 }
 0x420   : > { %v2402_v59 = vadd.f32 %v2401_v28, %v7768_v14  ;;  %v2403_v11 = vpop.f32.mrb[103].mxu0  ;;  %2963 = vmatpush1.bf16.msra.mxu0 %v2578_v38  ;;  %6509 = vmatpush1.bf16.msra.mxu1 %v2578_v38  ;;  %v2502_v50 = vmax.f32 %v2398_v57, 0.0 }
 0x421   : > { %v2404_v48 = vadd.f32 %v2403_v11, %v7768_v14  ;;  %v2503_v53 = vmax.f32 %v2400_v24, 0.0 }
 0x422   : > { %v2504_v58 = vmax.f32 %v2402_v59, 0.0 }
 0x423   : > { %v2505_v44 = vmax.f32 %v2404_v48, 0.0 }
 0x424   : > { %v2580_v2 = vpack.c.bf16 %v2504_v58, %v2502_v50 }
 0x425   : > { %v2581_v5 = vpack.c.bf16 %v2505_v44, %v2503_v53  ;;  %v2407_v49 = vpop.f32.mrb[104].mxu0 }
 0x426   : > { %v2408_v42 = vadd.f32 %v2407_v49, %v7779_v27  ;;  %v2409_v18 = vpop.f32.mrb[105].mxu0 }
 0x427   : > { %v2410_v35 = vadd.f32 %v2409_v18, %v7779_v27  ;;  %v2411_v54 = vpop.f32.mrb[106].mxu0  ;;  %2964 = vmatprep.subr.bf16.mxu0 %v2581_v5  ;;  %6494 = vmatprep.subr.bf16.mxu1 %v2581_v5 }
 0x428   : > { %v2412_v1 = vadd.f32 %v2411_v54, %v7777_v17  ;;  %v2413_v10 = vpop.f32.mrb[107].mxu0  ;;  %2965 = vmatpush1.bf16.msra.mxu0 %v2580_v2  ;;  %6510 = vmatpush1.bf16.msra.mxu1 %v2580_v2  ;;  %v2506_v61 = vmax.f32 %v2408_v42, 0.0  ;;  %v8765_v42 = vld [vmem:[#allocation20_spill] sm:$0xff] }
 0x429   : > { %v2414_v14 = vadd.f32 %v2413_v10, %v7777_v17  ;;  %v2507_v25 = vmax.f32 %v2410_v35, 0.0 }
 0x42a   : > { %v2508_v32 = vmax.f32 %v2412_v1, 0.0 }
 0x42b   : > { %v2509_v0 = vmax.f32 %v2414_v14, 0.0 }
 0x42c   : > { %v2582_v23 = vpack.c.bf16 %v2508_v32, %v2506_v61 }
 0x42d   : > { %v2583_v40 = vpack.c.bf16 %v2509_v0, %v2507_v25  ;;  %v2417_v6 = vpop.f32.mrb[108].mxu0  ;;  %v8766_v0 = vld [vmem:[#allocation22_spill] sm:$0xff] }
 0x42e   : > { %v2418_v16 = vadd.f32 %v2417_v6, %v8763_v51  ;;  %v2419_v27 = vpop.f32.mrb[109].mxu0 }
 0x42f   : > { %v2420_v21 = vadd.f32 %v2419_v27, %v8763_v51  ;;  %v2421_v56 = vpop.f32.mrb[110].mxu0  ;;  %2966 = vmatprep.subr.bf16.mxu0 %v2583_v40  ;;  %6495 = vmatprep.subr.bf16.mxu1 %v2583_v40  ;;  %v8767_v51 = vld [vmem:[#allocation21_spill] sm:$0xff] }
 0x430   : > { %v2422_v20 = vadd.f32 %v2421_v56, %v8764_v36  ;;  %v2423_v34 = vpop.f32.mrb[111].mxu0  ;;  %2967 = vmatpush1.bf16.msra.mxu0 %v2582_v23  ;;  %6511 = vmatpush1.bf16.msra.mxu1 %v2582_v23  ;;  %v2510_v41 = vmax.f32 %v2418_v16, 0.0 }
 0x431   : > { %v2424_v17 = vadd.f32 %v2423_v34, %v8764_v36  ;;  %v2511_v63 = vmax.f32 %v2420_v21, 0.0 }
 0x432   : > { %v2512_v3 = vmax.f32 %v2422_v20, 0.0 }
 0x433   : > { %v2513_v55 = vmax.f32 %v2424_v17, 0.0 }
 0x434   : > { %v2584_v4 = vpack.c.bf16 %v2512_v3, %v2510_v41  ;;  %v6814_v3 = vld [vmem:[%s7603_s10 + $0x200] ss:$8 sps:$4 sm:$0xff]  }
 0x435   : > { %v2585_v33 = vpack.c.bf16 %v2513_v55, %v2511_v63  ;;  %v2427_v46 = vpop.f32.mrb[112].mxu0  ;;  %v6817_v63 = vld [vmem:[%s7603_s10 + $0x230] ss:$8 sps:$4 sm:$0xff]   ;;  %v6820_v55 = vld [vmem:[%s7603_s10 + $0x214] ss:$8 sps:$4 sm:$0xff]  }
 0x436   : > { %v2428_v47 = vadd.f32 %v2427_v46, %v7798_v19  ;;  %v2429_v37 = vpop.f32.mrb[113].mxu0  ;;  %v7085_v46 = vld [vmem:[%s7307_s0] ss:$8 sps:$4 sm:$0xff]  }
 0x437   : > { %v2430_v29 = vadd.f32 %v2429_v37, %v7798_v19  ;;  %v2431_v45 = vpop.f32.mrb[114].mxu0  ;;  %2968 = vmatprep.subr.bf16.mxu0 %v2585_v33  ;;  %6496 = vmatprep.subr.bf16.mxu1 %v2585_v33  ;;  %v7084_v33 = vld [vmem:[%s7307_s0 + $0x4] ss:$8 sps:$4 sm:$0xff]   ;;  %v6824_v37 = vld [vmem:[%s7603_s10 + $0x210] ss:$8 sps:$4 sm:$0xff]  }
 0x438   : > { %v2432_v43 = vadd.f32 %v2431_v45, %v7796_v12  ;;  %v2433_v60 = vpop.f32.mrb[115].mxu0  ;;  %2969 = vmatpush1.bf16.msra.mxu0 %v2584_v4  ;;  %6512 = vmatpush1.bf16.msra.mxu1 %v2584_v4  ;;  %v2514_v31 = vmax.f32 %v2428_v47, 0.0  ;;  %v6822_v4 = vld [vmem:[%s7603_s10 + $0x244] ss:$8 sps:$4 sm:$0xff]   ;;  %v7086_v47 = vld [vmem:[%s7307_s0 + $0x14] ss:$8 sps:$4 sm:$0xff]  }
 0x439   : > { %v2434_v62 = vadd.f32 %v2433_v60, %v7796_v12  ;;  %v2515_v13 = vmax.f32 %v2430_v29, 0.0  ;;  %v6825_v29 = vld [vmem:[%s7603_s10 + $0x240] ss:$8 sps:$4 sm:$0xff]   ;;  %v6826_v45 = vld [vmem:[%s7603_s10 + $0x224] ss:$8 sps:$4 sm:$0xff]  }
 0x43a   : > { %v2516_v39 = vmax.f32 %v2432_v43, 0.0  ;;  %v6828_v43 = vld [vmem:[%s7603_s10 + $0x254] ss:$8 sps:$4 sm:$0xff]   ;;  %v7087_v60 = vld [vmem:[%s7307_s0 + $0x10] ss:$8 sps:$4 sm:$0xff]  }
 0x43b   : > { %v2517_v15 = vmax.f32 %v2434_v62, 0.0  ;;  %v7088_v62 = vld [vmem:[%s7307_s0 + $0x24] ss:$8 sps:$4 sm:$0xff]  }
 0x43c   : > { %v2586_v52 = vpack.c.bf16 %v2516_v39, %v2514_v31  ;;  %v7089_v31 = vld [vmem:[%s7307_s0 + $0x20] ss:$8 sps:$4 sm:$0xff]   ;;  %v7090_v39 = vld [vmem:[%s7307_s0 + $0x34] ss:$8 sps:$4 sm:$0xff]  }
 0x43d   : > { %v2587_v38 = vpack.c.bf16 %v2517_v15, %v2515_v13  ;;  %v2437_v22 = vpop.f32.mrb[116].mxu0  ;;  %v6830_v13 = vld [vmem:[%s7603_s10 + $0x220] ss:$8 sps:$4 sm:$0xff]   ;;  %v6831_v15 = vld [vmem:[%s7603_s10 + $0x250] ss:$8 sps:$4 sm:$0xff]  }
 0x43e   : > { %v2438_v7 = vadd.f32 %v2437_v22, %v7810_v30  ;;  %v2439_v19 = vpop.f32.mrb[117].mxu0  ;;  %v8768_v22 = vmov 0  }
 0x43f   : > { %v2440_v57 = vadd.f32 %v2439_v19, %v7810_v30  ;;  %v2441_v8 = vpop.f32.mrb[118].mxu0  ;;  %2970 = vmatprep.subr.bf16.mxu0 %v2587_v38  ;;  %6497 = vmatprep.subr.bf16.mxu1 %v2587_v38  ;;  %v7091_v38 = vld [vmem:[%s7307_s0 + $0x30] ss:$8 sps:$4 sm:$0xff]   ;;  %v6862_v19 = vld [vmem:[%s7332_s19 + $0x80] sm:$0xff]   ;;  %s6172_s0 = sshll.u32 %s426_s15, 5 }
 0x440   : > { %v2442_v24 = vadd.f32 %v2441_v8, %v7808_v26  ;;  %v2443_v28 = vpop.f32.mrb[119].mxu0  ;;  %2971 = vmatpush1.bf16.msra.mxu0 %v2586_v52  ;;  %6513 = vmatpush1.bf16.msra.mxu1 %v2586_v52  ;;  %v2518_v59 = vmax.f32 %v2438_v7, 0.0  ;;  %v6832_v52 = vld [vmem:[%s7603_s10 + $0x264] ss:$8 sps:$4 sm:$0xff]   ;;  %v6834_v7 = vld [vmem:[%s7603_s10 + $0x260] ss:$8 sps:$4 sm:$0xff]  }
 0x441   : > { %v2444_v12 = vadd.f32 %v2443_v28, %v7808_v26  ;;  %v2519_v48 = vmax.f32 %v2440_v57, 0.0  ;;  %v6835_v57 = vld [vmem:[%s7603_s10 + $0x274] ss:$8 sps:$4 sm:$0xff]   ;;  %v6837_v8 = vld [vmem:[%s7603_s10 + $0x270] ss:$8 sps:$4 sm:$0xff]   ;;  %s8271_s13 = scalar_lea.vmem [#allocation3], %s6172_s0  ;;  %s8374_s0 = scalar_lea.vmem %s8661_s5, %s6483_s22 }
 0x442   : > { %v2520_v11 = vmax.f32 %v2442_v24, 0.0  ;;  %v6863_v24 = vld [vmem:[%s7332_s19 + $0x88] sm:$0xff]  }
 0x443   : > { %v2521_v50 = vmax.f32 %v2444_v12, 0.0  ;;  %v6838_v28 = vld [vmem:[%s7603_s10 + $0x284] ss:$8 sps:$4 sm:$0xff]   ;;  %v6840_v12 = vld [vmem:[%s7603_s10 + $0x280] ss:$8 sps:$4 sm:$0xff]  }
 0x444   : > { %v2588_v58 = vpack.c.bf16 %v2520_v11, %v2518_v59  ;;  %v6864_v59 = vld [vmem:[%s7332_s19 + $0x90] sm:$0xff]  }
 0x445   : > { %v2589_v53 = vpack.c.bf16 %v2521_v50, %v2519_v48  ;;  %v2447_v44 = vpop.f32.mrb[120].mxu0  ;;  %v6841_v11 = vld [vmem:[%s7603_s10 + $0x294] ss:$8 sps:$4 sm:$0xff]   ;;  %v6843_v48 = vld [vmem:[%s7603_s10 + $0x290] ss:$8 sps:$4 sm:$0xff]  }
 0x446   : > { %v2448_v2 = vadd.f32 %v2447_v44, %v7817_v9  ;;  %v2449_v30 = vpop.f32.mrb[121].mxu0  ;;  %v6844_v50 = vld [vmem:[%s7603_s10 + $0x2a4] ss:$8 sps:$4 sm:$0xff]   ;;  %v6849_v44 = vld [vmem:[%s7603_s10 + $0x2b0] ss:$8 sps:$4 sm:$0xff]  }
 0x447   : > { %v2450_v5 = vadd.f32 %v2449_v30, %v7817_v9  ;;  %v2451_v49 = vpop.f32.mrb[122].mxu0  ;;  %2972 = vmatprep.subr.bf16.mxu0 %v2589_v53  ;;  %6498 = vmatprep.subr.bf16.mxu1 %v2589_v53  ;;  %v6847_v53 = vld [vmem:[%s7603_s10 + $0x2b4] ss:$8 sps:$4 sm:$0xff]   ;;  %v6852_v30 = vld [vmem:[%s7603_s10 + $0x2c0] ss:$8 sps:$4 sm:$0xff]  }
 0x448   : > { %v2452_v18 = vadd.f32 %v2451_v49, %v8765_v42  ;;  %v2453_v35 = vpop.f32.mrb[123].mxu0  ;;  %2973 = vmatpush1.bf16.msra.mxu0 %v2588_v58  ;;  %6514 = vmatpush1.bf16.msra.mxu1 %v2588_v58  ;;  %v2522_v54 = vmax.f32 %v2448_v2, 0.0  ;;  %v6846_v58 = vld [vmem:[%s7603_s10 + $0x2a0] ss:$8 sps:$4 sm:$0xff]   ;;  %v6850_v2 = vld [vmem:[%s7603_s10 + $0x2c4] ss:$8 sps:$4 sm:$0xff]  }
 0x449   : > { %v2454_v26 = vadd.f32 %v2453_v35, %v8765_v42  ;;  %v2523_v10 = vmax.f32 %v2450_v5, 0.0  ;;  %v6853_v5 = vld [vmem:[%s7603_s10 + $0x2d4] ss:$8 sps:$4 sm:$0xff]   ;;  %v6855_v49 = vld [vmem:[%s7603_s10 + $0x2d0] ss:$8 sps:$4 sm:$0xff]  }
 0x44a   : > { %v2524_v1 = vmax.f32 %v2452_v18, 0.0  ;;  %v6856_v42 = vld [vmem:[%s7603_s10 + $0x2e4] ss:$8 sps:$4 sm:$0xff]   ;;  %v6858_v18 = vld [vmem:[%s7603_s10 + $0x2e0] ss:$8 sps:$4 sm:$0xff]  }
 0x44b   : > { %v2525_v14 = vmax.f32 %v2454_v26, 0.0  ;;  %v6859_v35 = vld [vmem:[%s7603_s10 + $0x2f4] ss:$8 sps:$4 sm:$0xff]  }
 0x44c   : > { %v2590_v61 = vpack.c.bf16 %v2524_v1, %v2522_v54  ;;  %v6865_v26 = vld [vmem:[%s7332_s19 + $0x98] sm:$0xff]   ;;  %v6866_v1 = vld [vmem:[%s7332_s19 + $0xa0] sm:$0xff]  }
 0x44d   : > { %v2591_v32 = vpack.c.bf16 %v2525_v14, %v2523_v10  ;;  %v2457_v25 = vpop.f32.mrb[124].mxu0  ;;  %v6861_v54 = vld [vmem:[%s7603_s10 + $0x2f0] ss:$8 sps:$4 sm:$0xff]   ;;  %v6867_v10 = vld [vmem:[%s7332_s19 + $0xa8] sm:$0xff]  }
 0x44e   : > { %v2458_v23 = vadd.f32 %v2457_v25, %v8766_v0  ;;  %v2459_v9 = vpop.f32.mrb[125].mxu0  ;;  %v6868_v14 = vld [vmem:[%s7332_s19 + $0xb0] sm:$0xff]   ;;  %v6871_v25 = vld [vmem:[%s7332_s19 + $0xc8] sm:$0xff]  }
 0x44f   : > { %v2460_v40 = vadd.f32 %v2459_v9, %v8766_v0  ;;  %v2461_v6 = vpop.f32.mrb[126].mxu0  ;;  %2974 = vmatprep.subr.bf16.mxu0 %v2591_v32  ;;  %6499 = vmatprep.subr.bf16.mxu1 %v2591_v32  ;;  %v6870_v32 = vld [vmem:[%s7332_s19 + $0xc0] sm:$0xff]   ;;  %v6872_v0 = vld [vmem:[%s7332_s19 + $0xd0] sm:$0xff]  }
 0x450   : > { %v2462_v16 = vadd.f32 %v2461_v6, %v8767_v51  ;;  %v2463_v27 = vpop.f32.mrb[127].mxu0  ;;  %2975 = vmatpush1.bf16.msra.mxu0 %v2590_v61  ;;  %6515 = vmatpush1.bf16.msra.mxu1 %v2590_v61  ;;  %v2526_v56 = vmax.f32 %v2458_v23, 0.0  ;;  %v6869_v61 = vld [vmem:[%s7332_s19 + $0xb8] sm:$0xff]   ;;  %v6874_v9 = vld [vmem:[%s7332_s19 + $0xe0] sm:$0xff]   ;;  %v6876_v6 = vld [vmem:[%s7332_s19 + $0xf0] sm:$0xff]  }
 0x451   : > { %v2464_v21 = vadd.f32 %v2463_v27, %v8767_v51  ;;  %v2527_v20 = vmax.f32 %v2460_v40, 0.0  ;;  %v6873_v23 = vld [vmem:[%s7332_s19 + $0xd8] sm:$0xff]   ;;  %v6875_v40 = vld [vmem:[%s7332_s19 + $0xe8] sm:$0xff]  }
 0x452   : > { %v2528_v36 = vmax.f32 %v2462_v16, 0.0  ;;  %v6877_v51 = vld [vmem:[%s7332_s19 + $0xf8] sm:$0xff]   ;;  %v6880_v16 = vld [vmem:[%s7603_s10 + $0x304] ss:$8 sps:$4 sm:$0xff]   ;;  %s8301_s19 = scalar_lea.vmem %s8660_s4, %s6482_s26  ;;  %s6484_s26 = sshll.u32 (%p7276_p9), %s7150_s29, 4 }
 0x453   : > { %v2529_v34 = vmax.f32 %v2464_v21, 0.0 }
 0x454   : > { %v2592_v17 = vpack.c.bf16 %v2528_v36, %v2526_v56  ;;  %v8769_v56 = vld [vmem:[#allocation24_spill] sm:$0xff] }
 0x455   : > { %v2593_v41 = vpack.c.bf16 %v2529_v34, %v2527_v20  ;;  %v8770_v20 = vld [vmem:[#allocation30_spill] sm:$0xff] }
 0x457   : > { %2976 = vmatprep.subr.bf16.mxu0 %v2593_v41  ;;  %6500 = vmatprep.subr.bf16.mxu1 %v2593_v41 }
 0x458   : > { %2977 = vmatpush1.bf16.msra.mxu0 %v2592_v17  ;;  %6516 = vmatpush1.bf16.msra.mxu1 %v2592_v17 }
 0x459   : > { %3427 = vmatprep.subr.bf16.mxu0 %v7084_v33  ;;  %v8771_v33 = vld [vmem:[#allocation23_spill] sm:$0xff] }
 0x45b   : > { %2979 = vmatmul.mubr.bf16.vlgmr.msra.gmra.mrb[128].mxu0 %v6814_v3  ;;  %3009 = vmatmul.mubr.bf16.vlgmr.msra.gmra.mrb[64].mxu1 %v6817_v63 }
 0x45c   : > { %2988 = vmatprep.mubr.bf16.mxu0 %v6820_v55  ;;  %3018 = vmatprep.mubr.bf16.mxu1 %v6822_v4 }
 0x45d   : > { %3428 = vmatpush1.bf16.msra.mxu0 %v7085_v46 }
 0x45e   : > { %3429 = vmatprep.subr.bf16.mxu0 %v7086_v47  ;;  %v8772_v47 = vld [vmem:[#allocation29_spill] sm:$0xff] }
 0x461   : > { %3430 = vmatpush1.bf16.msra.mxu0 %v7087_v60 }
 0x462   : > { %3431 = vmatprep.subr.bf16.mxu0 %v7088_v62 }
 0x463   : > { %2989 = vmatmul.mubr.bf16.gmra.mrb[132].mxu0 %v6824_v37  ;;  %3019 = vmatmul.mubr.bf16.gmra.mrb[68].mxu1 %v6825_v29 }
 0x464   : > { %2998 = vmatprep.mubr.bf16.mxu0 %v6826_v45  ;;  %3028 = vmatprep.mubr.bf16.mxu1 %v6828_v43 }
 0x465   : > { %3432 = vmatpush1.bf16.msra.mxu0 %v7089_v31 }
 0x466   : > { %3433 = vmatprep.subr.bf16.mxu0 %v7090_v39 }
 0x469   : > { %3434 = vmatpush1.bf16.msra.mxu0 %v7091_v38 }
 0x46b   : > { %2999 = vmatmul.mubr.bf16.gmra.mrb[136].mxu0 %v6830_v13  ;;  %3029 = vmatmul.mubr.bf16.gmra.mrb[72].mxu1 %v6831_v15 }
 0x46c   : > { %3038 = vmatprep.mubr.bf16.mxu1 %v6832_v52  ;;  %3459 = vmatprep.mubr.bf16.mxu0 %v8768_v22 }
 0x473   : > { %3039 = vmatmul.mubr.bf16.gmra.mrb[76].mxu1 %v6834_v7  ;;  %6334 = vmatmul.mubr.msk.bf16.vlgmr.msra.gmra.mrb[140].mxu0 %vm878_vm0, %v6862_v19 }
 0x474   : > { %3048 = vmatprep.mubr.bf16.mxu1 %v6835_v57  ;;  %3469 = vmatprep.mubr.bf16.mxu0 %v8768_v22 }
 0x47b   : > { %3049 = vmatmul.mubr.bf16.gmra.mrb[80].mxu1 %v6837_v8  ;;  %6335 = vmatmul.mubr.msk.bf16.gmra.mrb[144].mxu0 %vm878_vm0, %v6863_v24 }
 0x47c   : > { %3058 = vmatprep.mubr.bf16.mxu1 %v6838_v28  ;;  %3479 = vmatprep.mubr.bf16.mxu0 %v8768_v22 }
 0x483   : > { %3059 = vmatmul.mubr.bf16.gmra.mrb[84].mxu1 %v6840_v12  ;;  %6336 = vmatmul.mubr.msk.bf16.gmra.mrb[148].mxu0 %vm878_vm0, %v6864_v59  ;;  %v8773_v59 = vld [vmem:[#allocation26_spill] sm:$0xff] }
 0x484   : > { %3068 = vmatprep.mubr.bf16.mxu1 %v6841_v11  ;;  %3489 = vmatprep.mubr.bf16.mxu0 %v8768_v22 }
 0x48b   : > { %3069 = vmatmul.mubr.bf16.gmra.mrb[88].mxu1 %v6843_v48  ;;  %6337 = vmatmul.mubr.msk.bf16.gmra.mrb[152].mxu0 %vm878_vm0, %v6865_v26  ;;  %v8774_v48 = vld [vmem:[#allocation32_spill] sm:$0xff] }
 0x48c   : > { %3078 = vmatprep.mubr.bf16.mxu1 %v6844_v50  ;;  %3499 = vmatprep.mubr.bf16.mxu0 %v8768_v22 }
 0x493   : > { %3079 = vmatmul.mubr.bf16.gmra.mrb[92].mxu1 %v6846_v58  ;;  %6338 = vmatmul.mubr.msk.bf16.gmra.mrb[156].mxu0 %vm878_vm0, %v6866_v1 }
 0x494   : > { %3088 = vmatprep.mubr.bf16.mxu1 %v6847_v53  ;;  %3509 = vmatprep.mubr.bf16.mxu0 %v8768_v22 }
 0x49b   : > { %3089 = vmatmul.mubr.bf16.gmra.mrb[96].mxu1 %v6849_v44  ;;  %6339 = vmatmul.mubr.msk.bf16.gmra.mrb[160].mxu0 %vm878_vm0, %v6867_v10 }
 0x49c   : > { %3098 = vmatprep.mubr.bf16.mxu1 %v6850_v2  ;;  %3519 = vmatprep.mubr.bf16.mxu0 %v8768_v22 }
 0x4a3   : > { %3099 = vmatmul.mubr.bf16.gmra.mrb[100].mxu1 %v6852_v30  ;;  %6340 = vmatmul.mubr.msk.bf16.gmra.mrb[164].mxu0 %vm878_vm0, %v6868_v14 }
 0x4a4   : > { %3108 = vmatprep.mubr.bf16.mxu1 %v6853_v5  ;;  %3529 = vmatprep.mubr.bf16.mxu0 %v8768_v22 }
 0x4ab   : > { %3109 = vmatmul.mubr.bf16.gmra.mrb[104].mxu1 %v6855_v49  ;;  %6341 = vmatmul.mubr.msk.bf16.gmra.mrb[168].mxu0 %vm878_vm0, %v6869_v61  ;;  %v8775_v49 = vld [vmem:[#allocation25_spill] sm:$0xff] }
 0x4ac   : > { %3118 = vmatprep.mubr.bf16.mxu1 %v6856_v42  ;;  %3539 = vmatprep.mubr.bf16.mxu0 %v8768_v22 }
 0x4b3   : > { %3119 = vmatmul.mubr.bf16.gmra.mrb[108].mxu1 %v6858_v18  ;;  %6342 = vmatmul.mubr.msk.bf16.gmra.mrb[172].mxu0 %vm878_vm0, %v6870_v32  ;;  %v8776_v18 = vld [vmem:[#allocation31_spill] sm:$0xff] }
 0x4b4   : > { %3128 = vmatprep.mubr.bf16.mxu1 %v6859_v35  ;;  %3549 = vmatprep.mubr.bf16.mxu0 %v8768_v22 }
 0x4bb   : > { %3129 = vmatmul.mubr.bf16.gmra.mrb[112].mxu1 %v6861_v54  ;;  %6343 = vmatmul.mubr.msk.bf16.gmra.mrb[176].mxu0 %vm878_vm0, %v6871_v25 }
 0x4bc   : > { %3559 = vmatprep.mubr.bf16.mxu0 %v8768_v22 }
 0x4c3   : > { %6344 = vmatmul.mubr.msk.bf16.gmra.mrb[180].mxu0 %vm878_vm0, %v6872_v0 }
 0x4c4   : > { %3569 = vmatprep.mubr.bf16.mxu0 %v8768_v22 }
 0x4cb   : > { %6345 = vmatmul.mubr.msk.bf16.gmra.mrb[184].mxu0 %vm878_vm0, %v6873_v23 }
 0x4cc   : > { %3579 = vmatprep.mubr.bf16.mxu0 %v8768_v22 }
 0x4d3   : > { %6346 = vmatmul.mubr.msk.bf16.gmra.mrb[188].mxu0 %vm878_vm0, %v6874_v9 }
 0x4d4   : > { %3589 = vmatprep.mubr.bf16.mxu0 %v8768_v22 }
 0x4db   : > { %6347 = vmatmul.mubr.msk.bf16.gmra.mrb[192].mxu0 %vm878_vm0, %v6875_v40 }
 0x4dc   : > { %3599 = vmatprep.mubr.bf16.mxu0 %v8768_v22 }
 0x4e3   : > { %6348 = vmatmul.mubr.msk.bf16.gmra.mrb[196].mxu0 %vm878_vm0, %v6876_v6 }
 0x4e4   : > { %3609 = vmatprep.mubr.bf16.mxu0 %v8768_v22 }
 0x4eb   : > { %6349 = vmatmul.mubr.msk.bf16.gmra.mrb[200].mxu0 %vm878_vm0, %v6877_v51 }
 0x4ec   : > { %3812 = vmatprep.mubr.bf16.mxu0 %v6880_v16 }
 0x52e   : > { %v2980_v27 = vpop.f32.mrb[128].mxu0  ;;  %v3010_v21 = vpop.f32.mrb[64].mxu1 }
 0x52f   : > { %v2981_v36 = vadd.f32 %v2980_v27, %v8769_v56  ;;  %v3011_v34 = vadd.f32 %v3010_v21, %v8770_v20  ;;  %v2982_v17 = vpop.f32.mrb[129].mxu0  ;;  %v3012_v41 = vpop.f32.mrb[65].mxu1 }
 0x530   : > { %v2983_v3 = vadd.f32 %v2982_v17, %v8769_v56  ;;  %v3013_v63 = vadd.f32 %v3012_v41, %v8770_v20  ;;  %v2984_v55 = vpop.f32.mrb[130].mxu0  ;;  %v3014_v4 = vpop.f32.mrb[66].mxu1 }
 0x531   : > { %v2985_v46 = vadd.f32 %v2984_v55, %v8771_v33  ;;  %v3015_v37 = vadd.f32 %v3014_v4, %v8772_v47  ;;  %v2986_v29 = vpop.f32.mrb[131].mxu0  ;;  %v3016_v45 = vpop.f32.mrb[67].mxu1  ;;  %v3139_v62 = vmax.f32 %v2981_v36, 0.0  ;;  %v3151_v31 = vmax.f32 %v3011_v34, 0.0  ;;  %v8777_v36 = vld [vmem:[#allocation28_spill] sm:$0xff]  ;;  %v8778_v34 = vld [vmem:[#allocation34_spill] sm:$0xff] }
 0x532   : > { %v2987_v43 = vadd.f32 %v2986_v29, %v8771_v33  ;;  %v3017_v60 = vadd.f32 %v3016_v45, %v8772_v47  ;;  %v3140_v15 = vmax.f32 %v2983_v3, 0.0  ;;  %v3152_v52 = vmax.f32 %v3013_v63, 0.0 }
 0x533   : > { %v3141_v39 = vmax.f32 %v2985_v46, 0.0  ;;  %v3153_v13 = vmax.f32 %v3015_v37, 0.0  ;;  %v8779_v46 = vld [vmem:[#allocation27_spill] sm:$0xff]  ;;  %v8780_v37 = vld [vmem:[#allocation33_spill] sm:$0xff] }
 0x534   : > { %v3142_v38 = vmax.f32 %v2987_v43, 0.0  ;;  %v3154_v7 = vmax.f32 %v3017_v60, 0.0 }
 0x535   : > { %v3235_v19 = vpack.c.bf16 %v3141_v39, %v3139_v62  ;;  %v8190_v57 = vpack.c.bf16 %v3153_v13, %v3151_v31 }
 0x536   : > { %v3236_v8 = vpack.c.bf16 %v3142_v38, %v3140_v15  ;;  %v8192_v24 = vpack.c.bf16 %v3154_v7, %v3152_v52  ;;  %v2990_v28 = vpop.f32.mrb[132].mxu0  ;;  %v3020_v12 = vpop.f32.mrb[68].mxu1 }
 0x537   : > { %v2991_v11 = vadd.f32 %v2990_v28, %v8773_v59  ;;  %v3021_v50 = vadd.f32 %v3020_v12, %v8774_v48  ;;  %v2992_v58 = vpop.f32.mrb[133].mxu0  ;;  %v3022_v53 = vpop.f32.mrb[69].mxu1 }
 0x538   : > { %v2993_v44 = vadd.f32 %v2992_v58, %v8773_v59  ;;  %v3023_v2 = vadd.f32 %v3022_v53, %v8774_v48  ;;  %v2994_v30 = vpop.f32.mrb[134].mxu0  ;;  %v3024_v5 = vpop.f32.mrb[70].mxu1  ;;  %3780 = vmatprep.subr.bf16.mxu0 %v3236_v8  ;;  %v8781_v48 = vld [vmem:[#allocation36_spill] sm:$0xff] }
 0x539   : > { %v2995_v42 = vadd.f32 %v2994_v30, %v8775_v49  ;;  %v3025_v35 = vadd.f32 %v3024_v5, %v8776_v18  ;;  %v2996_v26 = vpop.f32.mrb[135].mxu0  ;;  %v3026_v54 = vpop.f32.mrb[71].mxu1  ;;  %3781 = vmatpush1.bf16.msra.mxu0 %v3235_v19  ;;  %v3143_v14 = vmax.f32 %v2991_v11, 0.0  ;;  %v3155_v61 = vmax.f32 %v3021_v50, 0.0 }
 0x53a   : > { %v2997_v1 = vadd.f32 %v2996_v26, %v8775_v49  ;;  %v3027_v10 = vadd.f32 %v3026_v54, %v8776_v18  ;;  %v3144_v0 = vmax.f32 %v2993_v44, 0.0  ;;  %v3156_v23 = vmax.f32 %v3023_v2, 0.0  ;;  %v8782_v2 = vld [vmem:[#allocation35_spill] sm:$0xff] }
 0x53b   : > { %v3145_v32 = vmax.f32 %v2995_v42, 0.0  ;;  %v3157_v25 = vmax.f32 %v3025_v35, 0.0 }
 0x53c   : > { %v3146_v9 = vmax.f32 %v2997_v1, 0.0  ;;  %v3158_v40 = vmax.f32 %v3027_v10, 0.0 }
 0x53d   : > { %v3237_v6 = vpack.c.bf16 %v3145_v32, %v3143_v14  ;;  %v3243_v51 = vpack.c.bf16 %v3157_v25, %v3155_v61  ;;  %v8783_v14 = vld [vmem:[#allocation38_spill] sm:$0xff] }
 0x53e   : > { %v3238_v16 = vpack.c.bf16 %v3146_v9, %v3144_v0  ;;  %v3244_v27 = vpack.c.bf16 %v3158_v40, %v3156_v23  ;;  %v3000_v21 = vpop.f32.mrb[136].mxu0  ;;  %v3030_v56 = vpop.f32.mrb[72].mxu1  ;;  %v8784_v23 = vld [vmem:[#allocation37_spill] sm:$0xff] }
 0x53f   : > { %v3001_v20 = vadd.f32 %v3000_v21, %v8777_v36  ;;  %v3031_v17 = vadd.f32 %v3030_v56, %v8778_v34  ;;  %v3002_v41 = vpop.f32.mrb[137].mxu0  ;;  %v3032_v3 = vpop.f32.mrb[73].mxu1 }
 0x540   : > { %v3003_v63 = vadd.f32 %v3002_v41, %v8777_v36  ;;  %v3033_v55 = vadd.f32 %v3032_v3, %v8778_v34  ;;  %v3004_v4 = vpop.f32.mrb[138].mxu0  ;;  %v3034_v33 = vpop.f32.mrb[74].mxu1  ;;  %3782 = vmatprep.subr.bf16.mxu0 %v3238_v16 }
 0x541   : > { %v3005_v47 = vadd.f32 %v3004_v4, %v8779_v46  ;;  %v3035_v29 = vadd.f32 %v3034_v33, %v8780_v37  ;;  %v3006_v45 = vpop.f32.mrb[139].mxu0  ;;  %v3036_v43 = vpop.f32.mrb[75].mxu1  ;;  %3783 = vmatpush1.bf16.msra.mxu0 %v3237_v6  ;;  %v3147_v31 = vmax.f32 %v3001_v20, 0.0  ;;  %v3159_v39 = vmax.f32 %v3031_v17, 0.0  ;;  %v8785_v20 = vld [vmem:[#allocation40_spill] sm:$0xff] }
 0x542   : > { %v3007_v60 = vadd.f32 %v3006_v45, %v8779_v46  ;;  %v3037_v62 = vadd.f32 %v3036_v43, %v8780_v37  ;;  %v3148_v52 = vmax.f32 %v3003_v63, 0.0  ;;  %v3160_v38 = vmax.f32 %v3033_v55, 0.0  ;;  %v8786_v63 = vld [vmem:[#allocation39_spill] sm:$0xff] }
 0x543   : > { %v3149_v13 = vmax.f32 %v3005_v47, 0.0  ;;  %v3161_v15 = vmax.f32 %v3035_v29, 0.0 }
 0x544   : > { %v3150_v7 = vmax.f32 %v3007_v60, 0.0  ;;  %v3162_v19 = vmax.f32 %v3037_v62, 0.0  ;;  %v8787_v60 = vld [vmem:[#allocation42_spill] sm:$0xff] }
 0x545   : > { %v3239_v8 = vpack.c.bf16 %v3149_v13, %v3147_v31  ;;  %v3245_v28 = vpack.c.bf16 %v3161_v15, %v3159_v39  ;;  %v8788_v15 = vld [vmem:[#allocation41_spill] sm:$0xff] }
 0x546   : > { %v3240_v12 = vpack.c.bf16 %v3150_v7, %v3148_v52  ;;  %v3246_v59 = vpack.c.bf16 %v3162_v19, %v3160_v38  ;;  %v3040_v11 = vpop.f32.mrb[76].mxu1 }
 0x547   : > { %v3041_v50 = vadd.f32 %v3040_v11, %v8781_v48  ;;  %v3042_v58 = vpop.f32.mrb[77].mxu1 }
 0x548   : > { %v3043_v53 = vadd.f32 %v3042_v58, %v8781_v48  ;;  %v3044_v44 = vpop.f32.mrb[78].mxu1  ;;  %3784 = vmatprep.subr.bf16.mxu0 %v3240_v12 }
 0x549   : > { %v3045_v30 = vadd.f32 %v3044_v44, %v8782_v2  ;;  %v3046_v5 = vpop.f32.mrb[79].mxu1  ;;  %3785 = vmatpush1.bf16.msra.mxu0 %v3239_v8  ;;  %v3163_v42 = vmax.f32 %v3041_v50, 0.0  ;;  %v8789_v50 = vld [vmem:[#allocation44_spill] sm:$0xff] }
 0x54a   : > { %v3047_v49 = vadd.f32 %v3046_v5, %v8782_v2  ;;  %3786 = vmatprep.subr.bf16.mxu0 %v8192_v24  ;;  %v3164_v35 = vmax.f32 %v3043_v53, 0.0 }
 0x54b   : > { %v3165_v18 = vmax.f32 %v3045_v30, 0.0  ;;  %v8790_v30 = vld [vmem:[#allocation43_spill] sm:$0xff] }
 0x54c   : > { %v3166_v26 = vmax.f32 %v3047_v49, 0.0 }
 0x54d   : > { %v3247_v54 = vpack.c.bf16 %v3165_v18, %v3163_v42  ;;  %3787 = vmatpush1.bf16.msra.mxu0 %v8190_v57 }
 0x54e   : > { %v3248_v1 = vpack.c.bf16 %v3166_v26, %v3164_v35  ;;  %v3050_v10 = vpop.f32.mrb[80].mxu1  ;;  %3788 = vmatprep.subr.bf16.mxu0 %v3244_v27 }
 0x54f   : > { %v3051_v61 = vadd.f32 %v3050_v10, %v8783_v14  ;;  %v3052_v32 = vpop.f32.mrb[81].mxu1  ;;  %v2739_v10 = vpop.permute.xlu0 %2738 }
 0x550   : > { %v3053_v25 = vadd.f32 %v3052_v32, %v8783_v14  ;;  %v3054_v0 = vpop.f32.mrb[82].mxu1 }
 0x551   : > { %v3055_v9 = vadd.f32 %v3054_v0, %v8784_v23  ;;  %v3056_v40 = vpop.f32.mrb[83].mxu1  ;;  %3789 = vmatpush1.bf16.msra.mxu0 %v3243_v51  ;;  %v3167_v6 = vmax.f32 %v3051_v61, 0.0  ;;  %v2744_v0 = vpop.permute.xlu1 %2743 }
 0x552   : > { %v3057_v24 = vadd.f32 %v3056_v40, %v8784_v23  ;;  %3790 = vmatprep.subr.bf16.mxu0 %v3246_v59  ;;  %v3168_v21 = vmax.f32 %v3053_v25, 0.0 }
 0x553   : > { %v3169_v16 = vmax.f32 %v3055_v9, 0.0 }
 0x554   : > { %v3170_v57 = vmax.f32 %v3057_v24, 0.0 }
 0x555   : > { %v3249_v56 = vpack.c.bf16 %v3169_v16, %v3167_v6  ;;  %3791 = vmatpush1.bf16.msra.mxu0 %v3245_v28 }
 0x556   : > { %v3250_v27 = vpack.c.bf16 %v3170_v57, %v3168_v21  ;;  %v3060_v36 = vpop.f32.mrb[84].mxu1  ;;  %3792 = vmatprep.subr.bf16.mxu0 %v3248_v1 }
 0x557   : > { %v3061_v34 = vadd.f32 %v3060_v36, %v8785_v20  ;;  %v3062_v17 = vpop.f32.mrb[85].mxu1  ;;  %v2749_v36 = vpop.permute.xlu0 %2748 }
 0x558   : > { %v3063_v41 = vadd.f32 %v3062_v17, %v8785_v20  ;;  %v3064_v3 = vpop.f32.mrb[86].mxu1 }
 0x559   : > { %v3065_v51 = vadd.f32 %v3064_v3, %v8786_v63  ;;  %v3066_v55 = vpop.f32.mrb[87].mxu1  ;;  %3793 = vmatpush1.bf16.msra.mxu0 %v3247_v54  ;;  %v3171_v33 = vmax.f32 %v3061_v34, 0.0  ;;  %v2754_v3 = vpop.permute.xlu1 %2753 }
 0x55a   : > { %v3067_v4 = vadd.f32 %v3066_v55, %v8786_v63  ;;  %3794 = vmatprep.subr.bf16.mxu0 %v3250_v27  ;;  %v3172_v47 = vmax.f32 %v3063_v41, 0.0 }
 0x55b   : > { %v3173_v46 = vmax.f32 %v3065_v51, 0.0 }
 0x55c   : > { %v3174_v37 = vmax.f32 %v3067_v4, 0.0 }
 0x55d   : > { %v3251_v29 = vpack.c.bf16 %v3173_v46, %v3171_v33  ;;  %3795 = vmatpush1.bf16.msra.mxu0 %v3249_v56 }
 0x55e   : > { %v3252_v45 = vpack.c.bf16 %v3174_v37, %v3172_v47  ;;  %v3070_v43 = vpop.f32.mrb[88].mxu1 }
 0x55f   : > { %v3071_v62 = vadd.f32 %v3070_v43, %v8787_v60  ;;  %v3072_v31 = vpop.f32.mrb[89].mxu1  ;;  %v2759_v43 = vpop.permute.xlu0 %2758 }
 0x560   : > { %v3073_v39 = vadd.f32 %v3072_v31, %v8787_v60  ;;  %v3074_v13 = vpop.f32.mrb[90].mxu1  ;;  %3796 = vmatprep.subr.bf16.mxu0 %v3252_v45 }
 0x561   : > { %v3075_v52 = vadd.f32 %v3074_v13, %v8788_v15  ;;  %v3076_v38 = vpop.f32.mrb[91].mxu1  ;;  %3797 = vmatpush1.bf16.msra.mxu0 %v3251_v29  ;;  %v3175_v19 = vmax.f32 %v3071_v62, 0.0  ;;  %v2764_v13 = vpop.permute.xlu1 %2763 }
 0x562   : > { %v3077_v7 = vadd.f32 %v3076_v38, %v8788_v15  ;;  %v3176_v28 = vmax.f32 %v3073_v39, 0.0 }
 0x563   : > { %v3177_v8 = vmax.f32 %v3075_v52, 0.0 }
 0x564   : > { %v3178_v12 = vmax.f32 %v3077_v7, 0.0 }
 0x565   : > { %v3253_v59 = vpack.c.bf16 %v3177_v8, %v3175_v19 }
 0x566   : > { %v3254_v11 = vpack.c.bf16 %v3178_v12, %v3176_v28  ;;  %v3080_v48 = vpop.f32.mrb[92].mxu1 }
 0x567   : > { %v3081_v58 = vadd.f32 %v3080_v48, %v8789_v50  ;;  %v3082_v53 = vpop.f32.mrb[93].mxu1  ;;  %v2769_v48 = vpop.permute.xlu0 %2768 }
 0x568   : > { %v3083_v44 = vadd.f32 %v3082_v53, %v8789_v50  ;;  %v3084_v2 = vpop.f32.mrb[94].mxu1  ;;  %3798 = vmatprep.subr.bf16.mxu0 %v3254_v11 }
 0x569   : > { %v3085_v5 = vadd.f32 %v3084_v2, %v8790_v30  ;;  %v3086_v49 = vpop.f32.mrb[95].mxu1  ;;  %3799 = vmatpush1.bf16.msra.mxu0 %v3253_v59  ;;  %v3179_v18 = vmax.f32 %v3081_v58, 0.0  ;;  %v2774_v2 = vpop.permute.xlu1 %2773 }
 0x56a   : > { %v3087_v42 = vadd.f32 %v3086_v49, %v8790_v30  ;;  %v3180_v26 = vmax.f32 %v3083_v44, 0.0 }
 0x56b   : > { %v3181_v35 = vmax.f32 %v3085_v5, 0.0 }
 0x56c   : > { %v3182_v54 = vmax.f32 %v3087_v42, 0.0 }
 0x56d   : > { %v3255_v1 = vpack.c.bf16 %v3181_v35, %v3179_v18 }
 0x56e   : > { %v3256_v14 = vpack.c.bf16 %v3182_v54, %v3180_v26  ;;  %v3090_v61 = vpop.f32.mrb[96].mxu1 }
 0x56f   : > { %v3091_v32 = vadd.f32 %v3090_v61, %v2739_v10  ;;  %v3092_v25 = vpop.f32.mrb[97].mxu1 }
 0x570   : > { %v3093_v23 = vadd.f32 %v3092_v25, %v2739_v10  ;;  %v3094_v9 = vpop.f32.mrb[98].mxu1  ;;  %3800 = vmatprep.subr.bf16.mxu0 %v3256_v14  ;;  %v2779_v14 = vpop.permute.xlu0 %2778 }
 0x571   : > { %v3095_v40 = vadd.f32 %v3094_v9, %v2744_v0  ;;  %v3096_v24 = vpop.f32.mrb[99].mxu1  ;;  %3801 = vmatpush1.bf16.msra.mxu0 %v3255_v1  ;;  %v3183_v16 = vmax.f32 %v3091_v32, 0.0 }
 0x572   : > { %v3097_v6 = vadd.f32 %v3096_v24, %v2744_v0  ;;  %v3184_v57 = vmax.f32 %v3093_v23, 0.0  ;;  %v2784_v23 = vpop.permute.xlu1 %2783 }
 0x573   : > { %v3185_v21 = vmax.f32 %v3095_v40, 0.0 }
 0x574   : > { %v3186_v56 = vmax.f32 %v3097_v6, 0.0 }
 0x575   : > { %v3257_v27 = vpack.c.bf16 %v3185_v21, %v3183_v16 }
 0x576   : > { %v3258_v20 = vpack.c.bf16 %v3186_v56, %v3184_v57  ;;  %v3100_v34 = vpop.f32.mrb[100].mxu1 }
 0x577   : > { %v3101_v17 = vadd.f32 %v3100_v34, %v2749_v36  ;;  %v3102_v41 = vpop.f32.mrb[101].mxu1  ;;  %v6878_v34 = vld [vmem:[%s7603_s10 + $0x300] ss:$8 sps:$4 sm:$0xff]  }
 0x578   : > { %v3103_v63 = vadd.f32 %v3102_v41, %v2749_v36  ;;  %v3104_v51 = vpop.f32.mrb[102].mxu1  ;;  %3802 = vmatprep.subr.bf16.mxu0 %v3258_v20  ;;  %v6883_v41 = vld [vmem:[%s7603_s10 + $0x310] ss:$8 sps:$4 sm:$0xff]  }
 0x579   : > { %v3105_v55 = vadd.f32 %v3104_v51, %v2754_v3  ;;  %v3106_v4 = vpop.f32.mrb[103].mxu1  ;;  %3803 = vmatpush1.bf16.msra.mxu0 %v3257_v27  ;;  %v3187_v46 = vmax.f32 %v3101_v17, 0.0  ;;  %v6881_v17 = vld [vmem:[%s7603_s10 + $0x314] ss:$8 sps:$4 sm:$0xff]  }
 0x57a   : > { %v3107_v33 = vadd.f32 %v3106_v4, %v2754_v3  ;;  %v3188_v37 = vmax.f32 %v3103_v63, 0.0  ;;  %v6884_v3 = vld [vmem:[%s7603_s10 + $0x324] ss:$8 sps:$4 sm:$0xff]   ;;  %v6886_v63 = vld [vmem:[%s7603_s10 + $0x320] ss:$8 sps:$4 sm:$0xff]  }
 0x57b   : > { %v3189_v47 = vmax.f32 %v3105_v55, 0.0  ;;  %v6887_v51 = vld [vmem:[%s7603_s10 + $0x334] ss:$8 sps:$4 sm:$0xff]   ;;  %v6889_v55 = vld [vmem:[%s7603_s10 + $0x330] ss:$8 sps:$4 sm:$0xff]  }
 0x57c   : > { %v3190_v29 = vmax.f32 %v3107_v33, 0.0  ;;  %v6890_v4 = vld [vmem:[%s7603_s10 + $0x344] ss:$8 sps:$4 sm:$0xff]   ;;  %v6892_v33 = vld [vmem:[%s7603_s10 + $0x340] ss:$8 sps:$4 sm:$0xff]  }
 0x57d   : > { %v3259_v45 = vpack.c.bf16 %v3189_v47, %v3187_v46  ;;  %v6893_v46 = vld [vmem:[%s7603_s10 + $0x354] ss:$8 sps:$4 sm:$0xff]   ;;  %v6895_v47 = vld [vmem:[%s7603_s10 + $0x350] ss:$8 sps:$4 sm:$0xff]  }
 0x57e   : > { %v3260_v60 = vpack.c.bf16 %v3190_v29, %v3188_v37  ;;  %v3110_v62 = vpop.f32.mrb[104].mxu1  ;;  %v6896_v37 = vld [vmem:[%s7603_s10 + $0x364] ss:$8 sps:$4 sm:$0xff]   ;;  %v6898_v29 = vld [vmem:[%s7603_s10 + $0x360] ss:$8 sps:$4 sm:$0xff]  }
 0x57f   : > { %v3111_v31 = vadd.f32 %v3110_v62, %v2759_v43  ;;  %v3112_v39 = vpop.f32.mrb[105].mxu1  ;;  %v6904_v62 = vld [vmem:[%s7603_s10 + $0x380] ss:$8 sps:$4 sm:$0xff]  }
 0x580   : > { %v3113_v15 = vadd.f32 %v3112_v39, %v2759_v43  ;;  %v3114_v52 = vpop.f32.mrb[106].mxu1  ;;  %3804 = vmatprep.subr.bf16.mxu0 %v3260_v60  ;;  %v6901_v43 = vld [vmem:[%s7603_s10 + $0x370] ss:$8 sps:$4 sm:$0xff]   ;;  %v6902_v60 = vld [vmem:[%s7603_s10 + $0x384] ss:$8 sps:$4 sm:$0xff]  }
 0x581   : > { %v3115_v38 = vadd.f32 %v3114_v52, %v2764_v13  ;;  %v3116_v7 = vpop.f32.mrb[107].mxu1  ;;  %3805 = vmatpush1.bf16.msra.mxu0 %v3259_v45  ;;  %v3191_v8 = vmax.f32 %v3111_v31, 0.0  ;;  %v6899_v45 = vld [vmem:[%s7603_s10 + $0x374] ss:$8 sps:$4 sm:$0xff]   ;;  %v6907_v39 = vld [vmem:[%s7603_s10 + $0x390] ss:$8 sps:$4 sm:$0xff]  }
 0x582   : > { %v3117_v19 = vadd.f32 %v3116_v7, %v2764_v13  ;;  %v3192_v12 = vmax.f32 %v3113_v15, 0.0  ;;  %v6905_v31 = vld [vmem:[%s7603_s10 + $0x394] ss:$8 sps:$4 sm:$0xff]   ;;  %v6908_v13 = vld [vmem:[%s7603_s10 + $0x3a4] ss:$8 sps:$4 sm:$0xff]  }
 0x583   : > { %v3193_v28 = vmax.f32 %v3115_v38, 0.0  ;;  %v6910_v15 = vld [vmem:[%s7603_s10 + $0x3a0] ss:$8 sps:$4 sm:$0xff]   ;;  %v6911_v52 = vld [vmem:[%s7603_s10 + $0x3b4] ss:$8 sps:$4 sm:$0xff]  }
 0x584   : > { %v3194_v59 = vmax.f32 %v3117_v19, 0.0  ;;  %v6913_v38 = vld [vmem:[%s7603_s10 + $0x3b0] ss:$8 sps:$4 sm:$0xff]   ;;  %v6914_v7 = vld [vmem:[%s7603_s10 + $0x3c4] ss:$8 sps:$4 sm:$0xff]  }
 0x585   : > { %v3261_v11 = vpack.c.bf16 %v3193_v28, %v3191_v8  ;;  %v6916_v19 = vld [vmem:[%s7603_s10 + $0x3c0] ss:$8 sps:$4 sm:$0xff]   ;;  %v6917_v8 = vld [vmem:[%s7603_s10 + $0x3d4] ss:$8 sps:$4 sm:$0xff]   ;;  %v6919_v28 = vld [vmem:[%s7603_s10 + $0x3d0] ss:$8 sps:$4 sm:$0xff]  }
 0x586   : > { %v3262_v50 = vpack.c.bf16 %v3194_v59, %v3192_v12  ;;  %v3120_v58 = vpop.f32.mrb[108].mxu1  ;;  %v6920_v12 = vld [vmem:[%s7603_s10 + $0x3e4] ss:$8 sps:$4 sm:$0xff]   ;;  %v6922_v59 = vld [vmem:[%s7603_s10 + $0x3e0] ss:$8 sps:$4 sm:$0xff]  }
 0x587   : > { %v3121_v53 = vadd.f32 %v3120_v58, %v2769_v48  ;;  %v3122_v44 = vpop.f32.mrb[109].mxu1 }
 0x588   : > { %v3123_v30 = vadd.f32 %v3122_v44, %v2769_v48  ;;  %v3124_v5 = vpop.f32.mrb[110].mxu1  ;;  %3806 = vmatprep.subr.bf16.mxu0 %v3262_v50  ;;  %v6925_v48 = vld [vmem:[%s7603_s10 + $0x3f0] ss:$8 sps:$4 sm:$0xff]   ;;  %v4008_v50 = vpop.permute.xlu0 %4007 }
 0x589   : > { %v3125_v49 = vadd.f32 %v3124_v5, %v2774_v2  ;;  %v3126_v42 = vpop.f32.mrb[111].mxu1  ;;  %3807 = vmatpush1.bf16.msra.mxu0 %v3261_v11  ;;  %v3195_v35 = vmax.f32 %v3121_v53, 0.0  ;;  %v6923_v11 = vld [vmem:[%s7603_s10 + $0x3f4] ss:$8 sps:$4 sm:$0xff]  }
 0x58a   : > { %v3127_v18 = vadd.f32 %v3126_v42, %v2774_v2  ;;  %v3196_v54 = vmax.f32 %v3123_v30, 0.0  ;;  %v4013_v2 = vpop.permute.xlu1 %4012 }
 0x58b   : > { %v3197_v26 = vmax.f32 %v3125_v49, 0.0 }
 0x58c   : > { %v3198_v1 = vmax.f32 %v3127_v18, 0.0  ;;  %v6928_v18 = vld [vmem:[%s7603_s10 + $0x404] ss:$8 sps:$4 sm:$0xff]  }
 0x58d   : > { %v3263_v10 = vpack.c.bf16 %v3197_v26, %v3195_v35  ;;  %4789 = vmatprep.mubr.bf16.mxu1 %v6928_v18 }
 0x58e   : > { %v3264_v61 = vpack.c.bf16 %v3198_v1, %v3196_v54  ;;  %v3130_v32 = vpop.f32.mrb[112].mxu1 }
 0x58f   : > { %v3131_v25 = vadd.f32 %v3130_v32, %v2779_v14  ;;  %v3132_v0 = vpop.f32.mrb[113].mxu1 }
 0x590   : > { %v3133_v9 = vadd.f32 %v3132_v0, %v2779_v14  ;;  %v3134_v40 = vpop.f32.mrb[114].mxu1  ;;  %3808 = vmatprep.subr.bf16.mxu0 %v3264_v61  ;;  %v4018_v61 = vpop.permute.xlu0 %4017 }
 0x591   : > { %v3135_v24 = vadd.f32 %v3134_v40, %v2784_v23  ;;  %v3136_v6 = vpop.f32.mrb[115].mxu1  ;;  %3809 = vmatpush1.bf16.msra.mxu0 %v3263_v10  ;;  %v3199_v21 = vmax.f32 %v3131_v25, 0.0 }
 0x592   : > { %v3137_v16 = vadd.f32 %v3136_v6, %v2784_v23  ;;  %v3200_v56 = vmax.f32 %v3133_v9, 0.0  ;;  %v4023_v9 = vpop.permute.xlu1 %4022 }
 0x593   : > { %v3201_v57 = vmax.f32 %v3135_v24, 0.0 }
 0x594   : > { %v3202_v27 = vmax.f32 %v3137_v16, 0.0 }
 0x595   : > { %v3265_v36 = vpack.c.bf16 %v3201_v57, %v3199_v21 }
 0x596   : > { %v3266_v20 = vpack.c.bf16 %v3202_v27, %v3200_v56 }
 0x598   : > { %3810 = vmatprep.subr.bf16.mxu0 %v3266_v20 }
 0x599   : > { %3811 = vmatpush1.bf16.msra.mxu0 %v3265_v36 }
 0x59c   : > { %3813 = vmatmul.mubr.bf16.vlgmr.msra.gmra.mrb[140].mxu0 %v6878_v34  ;;  %v4028_v34 = vpop.permute.xlu0 %4027 }
 0x59d   : > { %3822 = vmatprep.mubr.bf16.mxu0 %v6881_v17 }
 0x5a4   : > { %3823 = vmatmul.mubr.bf16.gmra.mrb[144].mxu0 %v6883_v41 }
 0x5a5   : > { %3832 = vmatprep.mubr.bf16.mxu0 %v6884_v3 }
 0x5ac   : > { %3833 = vmatmul.mubr.bf16.gmra.mrb[148].mxu0 %v6886_v63 }
 0x5ad   : > { %3842 = vmatprep.mubr.bf16.mxu0 %v6887_v51  ;;  %v4033_v51 = vpop.permute.xlu1 %4032 }
 0x5b4   : > { %3843 = vmatmul.mubr.bf16.gmra.mrb[152].mxu0 %v6889_v55 }
 0x5b5   : > { %3852 = vmatprep.mubr.bf16.mxu0 %v6890_v4 }
 0x5bc   : > { %3853 = vmatmul.mubr.bf16.gmra.mrb[156].mxu0 %v6892_v33 }
 0x5bd   : > { %3862 = vmatprep.mubr.bf16.mxu0 %v6893_v46 }
 0x5c4   : > { %3863 = vmatmul.mubr.bf16.gmra.mrb[160].mxu0 %v6895_v47 }
 0x5c5   : > { %3872 = vmatprep.mubr.bf16.mxu0 %v6896_v37 }
 0x5cc   : > { %3873 = vmatmul.mubr.bf16.gmra.mrb[164].mxu0 %v6898_v29 }
 0x5cd   : > { %3882 = vmatprep.mubr.bf16.mxu0 %v6899_v45 }
 0x5d4   : > { %3883 = vmatmul.mubr.bf16.gmra.mrb[168].mxu0 %v6901_v43 }
 0x5d5   : > { %3892 = vmatprep.mubr.bf16.mxu0 %v6902_v60 }
 0x5dc   : > { %3893 = vmatmul.mubr.bf16.gmra.mrb[172].mxu0 %v6904_v62  ;;  %v4038_v62 = vpop.permute.xlu0 %4037 }
 0x5dd   : > { %3902 = vmatprep.mubr.bf16.mxu0 %v6905_v31 }
 0x5e4   : > { %3903 = vmatmul.mubr.bf16.gmra.mrb[176].mxu0 %v6907_v39 }
 0x5e5   : > { %3912 = vmatprep.mubr.bf16.mxu0 %v6908_v13 }
 0x5ec   : > { %3913 = vmatmul.mubr.bf16.gmra.mrb[180].mxu0 %v6910_v15 }
 0x5ed   : > { %3922 = vmatprep.mubr.bf16.mxu0 %v6911_v52  ;;  %v4043_v52 = vpop.permute.xlu1 %4042 }
 0x5f4   : > { %3923 = vmatmul.mubr.bf16.gmra.mrb[184].mxu0 %v6913_v38 }
 0x5f5   : > { %3932 = vmatprep.mubr.bf16.mxu0 %v6914_v7 }
 0x5fc   : > { %3933 = vmatmul.mubr.bf16.gmra.mrb[188].mxu0 %v6916_v19 }
 0x5fd   : > { %3942 = vmatprep.mubr.bf16.mxu0 %v6917_v8 }
 0x604   : > { %3943 = vmatmul.mubr.bf16.gmra.mrb[192].mxu0 %v6919_v28 }
 0x605   : > { %3952 = vmatprep.mubr.bf16.mxu0 %v6920_v12 }
 0x60c   : > { %3953 = vmatmul.mubr.bf16.gmra.mrb[196].mxu0 %v6922_v59 }
 0x60d   : > { %3962 = vmatprep.mubr.bf16.mxu0 %v6923_v11 }
 0x614   : > { %3963 = vmatmul.mubr.bf16.gmra.mrb[200].mxu0 %v6925_v48 }
 0x615   : > { %5673 = vmatprep.mubr.bf16.mxu0 %v8768_v22 }
 0x66f   : > { %v3814_v58 = vpop.f32.mrb[140].mxu0 }
 0x670   : > { %v4165_v53 = vadd.f32 %v4008_v50, %v3814_v58  ;;  %v3816_v44 = vpop.f32.mrb[141].mxu0  ;;  %v4048_v58 = vpop.permute.xlu0 %4047 }
 0x671   : > { %v4166_v30 = vadd.f32 %v4008_v50, %v3816_v44  ;;  %v3818_v5 = vpop.f32.mrb[142].mxu0 }
 0x672   : > { %v4167_v49 = vadd.f32 %v4013_v2, %v3818_v5  ;;  %v3820_v42 = vpop.f32.mrb[143].mxu0  ;;  %v4229_v26 = vmax.f32 %v4165_v53, 0.0  ;;  %v4053_v5 = vpop.permute.xlu1 %4052 }
 0x673   : > { %v4168_v35 = vadd.f32 %v4013_v2, %v3820_v42  ;;  %v4230_v1 = vmax.f32 %v4166_v30, 0.0 }
 0x674   : > { %v4231_v54 = vmax.f32 %v4167_v49, 0.0 }
 0x675   : > { %v4232_v10 = vmax.f32 %v4168_v35, 0.0 }
 0x676   : > { %v4329_v14 = vpack.c.bf16 %v4231_v54, %v4229_v26 }
 0x677   : > { %v4330_v32 = vpack.c.bf16 %v4232_v10, %v4230_v1  ;;  %v3824_v25 = vpop.f32.mrb[144].mxu0 }
 0x678   : > { %v4169_v0 = vadd.f32 %v4018_v61, %v3824_v25  ;;  %v3826_v23 = vpop.f32.mrb[145].mxu0 }
 0x679   : > { %v4170_v40 = vadd.f32 %v4018_v61, %v3826_v23  ;;  %v3828_v24 = vpop.f32.mrb[146].mxu0  ;;  %4757 = vmatprep.subr.bf16.mxu1 %v4330_v32  ;;  %v4058_v32 = vpop.permute.xlu0 %4057 }
 0x67a   : > { %v4171_v6 = vadd.f32 %v4023_v9, %v3828_v24  ;;  %v3830_v16 = vpop.f32.mrb[147].mxu0  ;;  %4758 = vmatpush1.bf16.msra.mxu1 %v4329_v14  ;;  %v4233_v57 = vmax.f32 %v4169_v0, 0.0 }
 0x67b   : > { %v4172_v21 = vadd.f32 %v4023_v9, %v3830_v16  ;;  %v4234_v27 = vmax.f32 %v4170_v40, 0.0  ;;  %v4063_v40 = vpop.permute.xlu1 %4062 }
 0x67c   : > { %v4235_v56 = vmax.f32 %v4171_v6, 0.0 }
 0x67d   : > { %v4236_v36 = vmax.f32 %v4172_v21, 0.0 }
 0x67e   : > { %v4331_v20 = vpack.c.bf16 %v4235_v56, %v4233_v57 }
 0x67f   : > { %v4332_v17 = vpack.c.bf16 %v4236_v36, %v4234_v27  ;;  %v3834_v41 = vpop.f32.mrb[148].mxu0 }
 0x680   : > { %v4173_v3 = vadd.f32 %v4028_v34, %v3834_v41  ;;  %v3836_v63 = vpop.f32.mrb[149].mxu0 }
 0x681   : > { %v4174_v55 = vadd.f32 %v4028_v34, %v3836_v63  ;;  %v3838_v4 = vpop.f32.mrb[150].mxu0  ;;  %4759 = vmatprep.subr.bf16.mxu1 %v4332_v17  ;;  %v4068_v17 = vpop.permute.xlu0 %4067 }
 0x682   : > { %v4175_v33 = vadd.f32 %v4033_v51, %v3838_v4  ;;  %v3840_v46 = vpop.f32.mrb[151].mxu0  ;;  %4760 = vmatpush1.bf16.msra.mxu1 %v4331_v20  ;;  %v4237_v37 = vmax.f32 %v4173_v3, 0.0 }
 0x683   : > { %v4176_v47 = vadd.f32 %v4033_v51, %v3840_v46  ;;  %v4238_v45 = vmax.f32 %v4174_v55, 0.0  ;;  %v4073_v55 = vpop.permute.xlu1 %4072 }
 0x684   : > { %v4239_v29 = vmax.f32 %v4175_v33, 0.0 }
 0x685   : > { %v4240_v43 = vmax.f32 %v4176_v47, 0.0 }
 0x686   : > { %v4333_v60 = vpack.c.bf16 %v4239_v29, %v4237_v37 }
 0x687   : > { %v4334_v31 = vpack.c.bf16 %v4240_v43, %v4238_v45  ;;  %v3844_v39 = vpop.f32.mrb[152].mxu0 }
 0x688   : > { %v4177_v13 = vadd.f32 %v4038_v62, %v3844_v39  ;;  %v3846_v15 = vpop.f32.mrb[153].mxu0 }
 0x689   : > { %v4178_v38 = vadd.f32 %v4038_v62, %v3846_v15  ;;  %v3848_v7 = vpop.f32.mrb[154].mxu0  ;;  %4761 = vmatprep.subr.bf16.mxu1 %v4334_v31  ;;  %v4078_v31 = vpop.permute.xlu0 %4077 }
 0x68a   : > { %v4179_v19 = vadd.f32 %v4043_v52, %v3848_v7  ;;  %v3850_v8 = vpop.f32.mrb[155].mxu0  ;;  %4762 = vmatpush1.bf16.msra.mxu1 %v4333_v60  ;;  %v4241_v12 = vmax.f32 %v4177_v13, 0.0 }
 0x68b   : > { %v4180_v28 = vadd.f32 %v4043_v52, %v3850_v8  ;;  %v4242_v11 = vmax.f32 %v4178_v38, 0.0  ;;  %v4083_v38 = vpop.permute.xlu1 %4082 }
 0x68c   : > { %v4243_v59 = vmax.f32 %v4179_v19, 0.0 }
 0x68d   : > { %v4244_v48 = vmax.f32 %v4180_v28, 0.0 }
 0x68e   : > { %v4335_v50 = vpack.c.bf16 %v4243_v59, %v4241_v12 }
 0x68f   : > { %v4336_v53 = vpack.c.bf16 %v4244_v48, %v4242_v11  ;;  %v3854_v44 = vpop.f32.mrb[156].mxu0 }
 0x690   : > { %v4181_v2 = vadd.f32 %v4048_v58, %v3854_v44  ;;  %v3856_v30 = vpop.f32.mrb[157].mxu0 }
 0x691   : > { %v4182_v49 = vadd.f32 %v4048_v58, %v3856_v30  ;;  %v3858_v42 = vpop.f32.mrb[158].mxu0  ;;  %4763 = vmatprep.subr.bf16.mxu1 %v4336_v53  ;;  %v4088_v53 = vpop.permute.xlu0 %4087 }
 0x692   : > { %v4183_v18 = vadd.f32 %v4053_v5, %v3858_v42  ;;  %v3860_v35 = vpop.f32.mrb[159].mxu0  ;;  %4764 = vmatpush1.bf16.msra.mxu1 %v4335_v50  ;;  %v4245_v54 = vmax.f32 %v4181_v2, 0.0 }
 0x693   : > { %v4184_v26 = vadd.f32 %v4053_v5, %v3860_v35  ;;  %v4246_v10 = vmax.f32 %v4182_v49, 0.0  ;;  %v4093_v49 = vpop.permute.xlu1 %4092 }
 0x694   : > { %v4247_v1 = vmax.f32 %v4183_v18, 0.0 }
 0x695   : > { %v4248_v14 = vmax.f32 %v4184_v26, 0.0 }
 0x696   : > { %v4337_v61 = vpack.c.bf16 %v4247_v1, %v4245_v54 }
 0x697   : > { %v4338_v25 = vpack.c.bf16 %v4248_v14, %v4246_v10  ;;  %v3864_v0 = vpop.f32.mrb[160].mxu0 }
 0x698   : > { %v4185_v23 = vadd.f32 %v4058_v32, %v3864_v0  ;;  %v3866_v9 = vpop.f32.mrb[161].mxu0 }
 0x699   : > { %v4186_v24 = vadd.f32 %v4058_v32, %v3866_v9  ;;  %v3868_v6 = vpop.f32.mrb[162].mxu0  ;;  %4765 = vmatprep.subr.bf16.mxu1 %v4338_v25  ;;  %v4098_v25 = vpop.permute.xlu0 %4097 }
 0x69a   : > { %v4187_v16 = vadd.f32 %v4063_v40, %v3868_v6  ;;  %v3870_v21 = vpop.f32.mrb[163].mxu0  ;;  %4766 = vmatpush1.bf16.msra.mxu1 %v4337_v61  ;;  %v4249_v56 = vmax.f32 %v4185_v23, 0.0 }
 0x69b   : > { %v4188_v57 = vadd.f32 %v4063_v40, %v3870_v21  ;;  %v4250_v36 = vmax.f32 %v4186_v24, 0.0  ;;  %v4103_v24 = vpop.permute.xlu1 %4102 }
 0x69c   : > { %v4251_v27 = vmax.f32 %v4187_v16, 0.0 }
 0x69d   : > { %v4252_v20 = vmax.f32 %v4188_v57, 0.0 }
 0x69e   : > { %v4339_v34 = vpack.c.bf16 %v4251_v27, %v4249_v56 }
 0x69f   : > { %v4340_v41 = vpack.c.bf16 %v4252_v20, %v4250_v36  ;;  %v3874_v3 = vpop.f32.mrb[164].mxu0 }
 0x6a0   : > { %v4189_v63 = vadd.f32 %v4068_v17, %v3874_v3  ;;  %v3876_v51 = vpop.f32.mrb[165].mxu0 }
 0x6a1   : > { %v4190_v4 = vadd.f32 %v4068_v17, %v3876_v51  ;;  %v3878_v33 = vpop.f32.mrb[166].mxu0  ;;  %4767 = vmatprep.subr.bf16.mxu1 %v4340_v41  ;;  %v4108_v41 = vpop.permute.xlu0 %4107 }
 0x6a2   : > { %v4191_v46 = vadd.f32 %v4073_v55, %v3878_v33  ;;  %v3880_v47 = vpop.f32.mrb[167].mxu0  ;;  %4768 = vmatpush1.bf16.msra.mxu1 %v4339_v34  ;;  %v4253_v29 = vmax.f32 %v4189_v63, 0.0 }
 0x6a3   : > { %v4192_v37 = vadd.f32 %v4073_v55, %v3880_v47  ;;  %v4254_v43 = vmax.f32 %v4190_v4, 0.0  ;;  %v4113_v4 = vpop.permute.xlu1 %4112 }
 0x6a4   : > { %v4255_v45 = vmax.f32 %v4191_v46, 0.0 }
 0x6a5   : > { %v4256_v60 = vmax.f32 %v4192_v37, 0.0 }
 0x6a6   : > { %v4341_v62 = vpack.c.bf16 %v4255_v45, %v4253_v29 }
 0x6a7   : > { %v4342_v39 = vpack.c.bf16 %v4256_v60, %v4254_v43  ;;  %v3884_v13 = vpop.f32.mrb[168].mxu0 }
 0x6a8   : > { %v4193_v15 = vadd.f32 %v4078_v31, %v3884_v13  ;;  %v3886_v52 = vpop.f32.mrb[169].mxu0 }
 0x6a9   : > { %v4194_v7 = vadd.f32 %v4078_v31, %v3886_v52  ;;  %v3888_v19 = vpop.f32.mrb[170].mxu0  ;;  %4769 = vmatprep.subr.bf16.mxu1 %v4342_v39  ;;  %v4118_v39 = vpop.permute.xlu0 %4117 }
 0x6aa   : > { %v4195_v8 = vadd.f32 %v4083_v38, %v3888_v19  ;;  %v3890_v28 = vpop.f32.mrb[171].mxu0  ;;  %4770 = vmatpush1.bf16.msra.mxu1 %v4341_v62  ;;  %v4257_v59 = vmax.f32 %v4193_v15, 0.0 }
 0x6ab   : > { %v4196_v12 = vadd.f32 %v4083_v38, %v3890_v28  ;;  %v4258_v48 = vmax.f32 %v4194_v7, 0.0  ;;  %v4123_v7 = vpop.permute.xlu1 %4122 }
 0x6ac   : > { %v4259_v11 = vmax.f32 %v4195_v8, 0.0 }
 0x6ad   : > { %v4260_v50 = vmax.f32 %v4196_v12, 0.0 }
 0x6ae   : > { %v4343_v58 = vpack.c.bf16 %v4259_v11, %v4257_v59 }
 0x6af   : > { %v4344_v44 = vpack.c.bf16 %v4260_v50, %v4258_v48  ;;  %v3894_v2 = vpop.f32.mrb[172].mxu0 }
 0x6b0   : > { %v4197_v30 = vadd.f32 %v4088_v53, %v3894_v2  ;;  %v3896_v5 = vpop.f32.mrb[173].mxu0 }
 0x6b1   : > { %v4198_v42 = vadd.f32 %v4088_v53, %v3896_v5  ;;  %v3898_v18 = vpop.f32.mrb[174].mxu0  ;;  %4771 = vmatprep.subr.bf16.mxu1 %v4344_v44  ;;  %v4128_v44 = vpop.permute.xlu0 %4127 }
 0x6b2   : > { %v4199_v35 = vadd.f32 %v4093_v49, %v3898_v18  ;;  %v3900_v26 = vpop.f32.mrb[175].mxu0  ;;  %4772 = vmatpush1.bf16.msra.mxu1 %v4343_v58  ;;  %v4261_v1 = vmax.f32 %v4197_v30, 0.0 }
 0x6b3   : > { %v4200_v54 = vadd.f32 %v4093_v49, %v3900_v26  ;;  %v4262_v14 = vmax.f32 %v4198_v42, 0.0  ;;  %v4133_v42 = vpop.permute.xlu1 %4132 }
 0x6b4   : > { %v4263_v10 = vmax.f32 %v4199_v35, 0.0 }
 0x6b5   : > { %v4264_v61 = vmax.f32 %v4200_v54, 0.0 }
 0x6b6   : > { %v4345_v32 = vpack.c.bf16 %v4263_v10, %v4261_v1 }
 0x6b7   : > { %v4346_v0 = vpack.c.bf16 %v4264_v61, %v4262_v14  ;;  %v3904_v23 = vpop.f32.mrb[176].mxu0 }
 0x6b8   : > { %v4201_v9 = vadd.f32 %v4098_v25, %v3904_v23  ;;  %v3906_v40 = vpop.f32.mrb[177].mxu0 }
 0x6b9   : > { %v4202_v6 = vadd.f32 %v4098_v25, %v3906_v40  ;;  %v3908_v16 = vpop.f32.mrb[178].mxu0  ;;  %4773 = vmatprep.subr.bf16.mxu1 %v4346_v0  ;;  %v4138_v0 = vpop.permute.xlu0 %4137 }
 0x6ba   : > { %v4203_v21 = vadd.f32 %v4103_v24, %v3908_v16  ;;  %v3910_v57 = vpop.f32.mrb[179].mxu0  ;;  %4774 = vmatpush1.bf16.msra.mxu1 %v4345_v32  ;;  %v4265_v27 = vmax.f32 %v4201_v9, 0.0 }
 0x6bb   : > { %v4204_v56 = vadd.f32 %v4103_v24, %v3910_v57  ;;  %v4266_v20 = vmax.f32 %v4202_v6, 0.0  ;;  %v4143_v6 = vpop.permute.xlu1 %4142 }
 0x6bc   : > { %v4267_v36 = vmax.f32 %v4203_v21, 0.0 }
 0x6bd   : > { %v4268_v34 = vmax.f32 %v4204_v56, 0.0 }
 0x6be   : > { %v4347_v17 = vpack.c.bf16 %v4267_v36, %v4265_v27 }
 0x6bf   : > { %v4348_v3 = vpack.c.bf16 %v4268_v34, %v4266_v20  ;;  %v3914_v63 = vpop.f32.mrb[180].mxu0 }
 0x6c0   : > { %v4205_v51 = vadd.f32 %v4108_v41, %v3914_v63  ;;  %v3916_v55 = vpop.f32.mrb[181].mxu0 }
 0x6c1   : > { %v4206_v33 = vadd.f32 %v4108_v41, %v3916_v55  ;;  %v3918_v46 = vpop.f32.mrb[182].mxu0  ;;  %4775 = vmatprep.subr.bf16.mxu1 %v4348_v3  ;;  %v4148_v3 = vpop.permute.xlu0 %4147 }
 0x6c2   : > { %v4207_v47 = vadd.f32 %v4113_v4, %v3918_v46  ;;  %v3920_v37 = vpop.f32.mrb[183].mxu0  ;;  %4776 = vmatpush1.bf16.msra.mxu1 %v4347_v17  ;;  %v4269_v45 = vmax.f32 %v4205_v51, 0.0 }
 0x6c3   : > { %v4208_v29 = vadd.f32 %v4113_v4, %v3920_v37  ;;  %v4270_v60 = vmax.f32 %v4206_v33, 0.0  ;;  %v4153_v33 = vpop.permute.xlu1 %4152 }
 0x6c4   : > { %v4271_v43 = vmax.f32 %v4207_v47, 0.0 }
 0x6c5   : > { %v4272_v62 = vmax.f32 %v4208_v29, 0.0 }
 0x6c6   : > { %v4349_v31 = vpack.c.bf16 %v4271_v43, %v4269_v45 }
 0x6c7   : > { %v4350_v13 = vpack.c.bf16 %v4272_v62, %v4270_v60  ;;  %v3924_v15 = vpop.f32.mrb[184].mxu0 }
 0x6c8   : > { %v4209_v52 = vadd.f32 %v4118_v39, %v3924_v15  ;;  %v3926_v38 = vpop.f32.mrb[185].mxu0 }
 0x6c9   : > { %v4210_v19 = vadd.f32 %v4118_v39, %v3926_v38  ;;  %v3928_v8 = vpop.f32.mrb[186].mxu0  ;;  %4777 = vmatprep.subr.bf16.mxu1 %v4350_v13  ;;  %v4158_v13 = vpop.permute.xlu0 %4157 }
 0x6ca   : > { %v4211_v28 = vadd.f32 %v4123_v7, %v3928_v8  ;;  %v3930_v12 = vpop.f32.mrb[187].mxu0  ;;  %4778 = vmatpush1.bf16.msra.mxu1 %v4349_v31  ;;  %v4273_v11 = vmax.f32 %v4209_v52, 0.0 }
 0x6cb   : > { %v4212_v59 = vadd.f32 %v4123_v7, %v3930_v12  ;;  %v4274_v50 = vmax.f32 %v4210_v19, 0.0  ;;  %v4163_v19 = vpop.permute.xlu1 %4162 }
 0x6cc   : > { %v4275_v48 = vmax.f32 %v4211_v28, 0.0 }
 0x6cd   : > { %v4276_v58 = vmax.f32 %v4212_v59, 0.0 }
 0x6ce   : > { %v4351_v53 = vpack.c.bf16 %v4275_v48, %v4273_v11 }
 0x6cf   : > { %v4352_v2 = vpack.c.bf16 %v4276_v58, %v4274_v50  ;;  %v3934_v30 = vpop.f32.mrb[188].mxu0 }
 0x6d0   : > { %v4213_v5 = vadd.f32 %v4128_v44, %v3934_v30  ;;  %v3936_v49 = vpop.f32.mrb[189].mxu0  ;;  %v6926_v30 = vld [vmem:[%s7603_s10 + $0x400] ss:$8 sps:$4 sm:$0xff]  }
 0x6d1   : > { %v4214_v18 = vadd.f32 %v4128_v44, %v3936_v49  ;;  %v3938_v35 = vpop.f32.mrb[190].mxu0  ;;  %4779 = vmatprep.subr.bf16.mxu1 %v4352_v2  ;;  %v6931_v49 = vld [vmem:[%s7603_s10 + $0x410] ss:$8 sps:$4 sm:$0xff]  }
 0x6d2   : > { %v4215_v26 = vadd.f32 %v4133_v42, %v3938_v35  ;;  %v3940_v54 = vpop.f32.mrb[191].mxu0  ;;  %4780 = vmatpush1.bf16.msra.mxu1 %v4351_v53  ;;  %v4277_v10 = vmax.f32 %v4213_v5, 0.0  ;;  %v6929_v5 = vld [vmem:[%s7603_s10 + $0x414] ss:$8 sps:$4 sm:$0xff]   ;;  %v6982_v35 = vld [vmem:[%s8271_s13 + $0x4] ss:$8 sps:$4 sm:$0xff]  }
 0x6d3   : > { %v4216_v1 = vadd.f32 %v4133_v42, %v3940_v54  ;;  %v4278_v61 = vmax.f32 %v4214_v18, 0.0  ;;  %v6932_v42 = vld [vmem:[%s7603_s10 + $0x424] ss:$8 sps:$4 sm:$0xff]   ;;  %v6980_v18 = vld [vmem:[%s8271_s13] ss:$8 sps:$4 sm:$0xff]  }
 0x6d4   : > { %v4279_v14 = vmax.f32 %v4215_v26, 0.0  ;;  %v6934_v26 = vld [vmem:[%s7603_s10 + $0x420] ss:$8 sps:$4 sm:$0xff]   ;;  %v6935_v54 = vld [vmem:[%s7603_s10 + $0x434] ss:$8 sps:$4 sm:$0xff]  }
 0x6d5   : > { %v4280_v32 = vmax.f32 %v4216_v1, 0.0  ;;  %v6937_v1 = vld [vmem:[%s7603_s10 + $0x430] ss:$8 sps:$4 sm:$0xff]  }
 0x6d6   : > { %v4353_v25 = vpack.c.bf16 %v4279_v14, %v4277_v10  ;;  %v6938_v10 = vld [vmem:[%s7603_s10 + $0x444] ss:$8 sps:$4 sm:$0xff]   ;;  %v6940_v14 = vld [vmem:[%s7603_s10 + $0x440] ss:$8 sps:$4 sm:$0xff]  }
 0x6d7   : > { %v4354_v23 = vpack.c.bf16 %v4280_v32, %v4278_v61  ;;  %v3944_v9 = vpop.f32.mrb[192].mxu0  ;;  %v6941_v61 = vld [vmem:[%s7603_s10 + $0x454] ss:$8 sps:$4 sm:$0xff]   ;;  %v6943_v32 = vld [vmem:[%s7603_s10 + $0x450] ss:$8 sps:$4 sm:$0xff]  }
 0x6d8   : > { %v4217_v40 = vadd.f32 %v4138_v0, %v3944_v9  ;;  %v3946_v24 = vpop.f32.mrb[193].mxu0  ;;  %v6949_v9 = vld [vmem:[%s7603_s10 + $0x470] ss:$8 sps:$4 sm:$0xff]  }
 0x6d9   : > { %v4218_v16 = vadd.f32 %v4138_v0, %v3946_v24  ;;  %v3948_v21 = vpop.f32.mrb[194].mxu0  ;;  %4781 = vmatprep.subr.bf16.mxu1 %v4354_v23  ;;  %v6946_v0 = vld [vmem:[%s7603_s10 + $0x460] ss:$8 sps:$4 sm:$0xff]   ;;  %v6947_v23 = vld [vmem:[%s7603_s10 + $0x474] ss:$8 sps:$4 sm:$0xff]  }
 0x6da   : > { %v4219_v57 = vadd.f32 %v4143_v6, %v3948_v21  ;;  %v3950_v56 = vpop.f32.mrb[195].mxu0  ;;  %4782 = vmatpush1.bf16.msra.mxu1 %v4353_v25  ;;  %v4281_v36 = vmax.f32 %v4217_v40, 0.0  ;;  %v6944_v25 = vld [vmem:[%s7603_s10 + $0x464] ss:$8 sps:$4 sm:$0xff]   ;;  %v6952_v24 = vld [vmem:[%s7603_s10 + $0x480] ss:$8 sps:$4 sm:$0xff]  }
 0x6db   : > { %v4220_v27 = vadd.f32 %v4143_v6, %v3950_v56  ;;  %v4282_v34 = vmax.f32 %v4218_v16, 0.0  ;;  %v6950_v40 = vld [vmem:[%s7603_s10 + $0x484] ss:$8 sps:$4 sm:$0xff]   ;;  %v6953_v6 = vld [vmem:[%s7603_s10 + $0x494] ss:$8 sps:$4 sm:$0xff]  }
 0x6dc   : > { %v4283_v20 = vmax.f32 %v4219_v57, 0.0  ;;  %v6955_v16 = vld [vmem:[%s7603_s10 + $0x490] ss:$8 sps:$4 sm:$0xff]   ;;  %v6956_v21 = vld [vmem:[%s7603_s10 + $0x4a4] ss:$8 sps:$4 sm:$0xff]  }
 0x6dd   : > { %v4284_v17 = vmax.f32 %v4220_v27, 0.0  ;;  %v6958_v57 = vld [vmem:[%s7603_s10 + $0x4a0] ss:$8 sps:$4 sm:$0xff]   ;;  %v6959_v56 = vld [vmem:[%s7603_s10 + $0x4b4] ss:$8 sps:$4 sm:$0xff]  }
 0x6de   : > { %v4355_v41 = vpack.c.bf16 %v4283_v20, %v4281_v36  ;;  %v6961_v27 = vld [vmem:[%s7603_s10 + $0x4b0] ss:$8 sps:$4 sm:$0xff]   ;;  %v6962_v36 = vld [vmem:[%s7603_s10 + $0x4c4] ss:$8 sps:$4 sm:$0xff]   ;;  %v6985_v20 = vld [vmem:[%s8271_s13 + $0x14] ss:$8 sps:$4 sm:$0xff]  }
 0x6df   : > { %v4356_v63 = vpack.c.bf16 %v4284_v17, %v4282_v34  ;;  %v3954_v51 = vpop.f32.mrb[196].mxu0  ;;  %v6983_v34 = vld [vmem:[%s8271_s13 + $0x10] ss:$8 sps:$4 sm:$0xff]   ;;  %v6964_v17 = vld [vmem:[%s7603_s10 + $0x4c0] ss:$8 sps:$4 sm:$0xff]   ;;  %s6474_s13 = sshll.u32 (%p7276_p9), %s7146_s28, 1 }
 0x6e0   : > { %v4221_v55 = vadd.f32 %v4148_v3, %v3954_v51  ;;  %v3956_v4 = vpop.f32.mrb[197].mxu0  ;;  %v6970_v51 = vld [vmem:[%s7603_s10 + $0x4e0] ss:$8 sps:$4 sm:$0xff]   ;;  %s5977_s15 = sadd.s32 (%p7276_p9), %s6484_s26, %s6474_s13 }
 0x6e1   : > { %v4222_v46 = vadd.f32 %v4148_v3, %v3956_v4  ;;  %v3958_v47 = vpop.f32.mrb[198].mxu0  ;;  %4783 = vmatprep.subr.bf16.mxu1 %v4356_v63  ;;  %v6967_v3 = vld [vmem:[%s7603_s10 + $0x4d0] ss:$8 sps:$4 sm:$0xff]   ;;  %v6968_v63 = vld [vmem:[%s7603_s10 + $0x4e4] ss:$8 sps:$4 sm:$0xff]   ;;  %s6476_s20 = sshll.u32 (%p7276_p9), %s5977_s15, 3 }
 0x6e2   : > { %v4223_v37 = vadd.f32 %v4153_v33, %v3958_v47  ;;  %v3960_v29 = vpop.f32.mrb[199].mxu0  ;;  %4784 = vmatpush1.bf16.msra.mxu1 %v4355_v41  ;;  %v4285_v43 = vmax.f32 %v4221_v55, 0.0  ;;  %v6965_v41 = vld [vmem:[%s7603_s10 + $0x4d4] ss:$8 sps:$4 sm:$0xff]   ;;  %v6973_v4 = vld [vmem:[%s7603_s10 + $0x4f0] ss:$8 sps:$4 sm:$0xff]   ;;  %s5979_s22 = scalar_lea.vmem (%p7276_p9), %s8663_s7, %s6476_s20 }
 0x6e3   : > { %v4224_v45 = vadd.f32 %v4153_v33, %v3960_v29  ;;  %v4286_v62 = vmax.f32 %v4222_v46, 0.0  ;;  %v6971_v55 = vld [vmem:[%s7603_s10 + $0x4f4] ss:$8 sps:$4 sm:$0xff]   ;;  %v6974_v33 = vld [vmem:[%s7603_s10 + $0x504] ss:$8 sps:$4 sm:$0xff]  }
 0x6e4   : > { %v4287_v60 = vmax.f32 %v4223_v37, 0.0  ;;  %v6976_v46 = vld [vmem:[%s7603_s10 + $0x500] ss:$8 sps:$4 sm:$0xff]   ;;  %v6977_v47 = vld [vmem:[%s7603_s10 + $0x514] ss:$8 sps:$4 sm:$0xff]  }
 0x6e5   : > { %v4288_v31 = vmax.f32 %v4224_v45, 0.0  ;;  %v6979_v37 = vld [vmem:[%s7603_s10 + $0x510] ss:$8 sps:$4 sm:$0xff]   ;;  %v6986_v29 = vld [vmem:[%s8301_s19] sm:$0xff]   ;;  %v6987_v45 = vld [vmem:[%s8301_s19 + $0x8] sm:$0xff]  }
 0x6e6   : > { %v4357_v39 = vpack.c.bf16 %v4287_v60, %v4285_v43  ;;  %v6988_v43 = vld [vmem:[%s8301_s19 + $0x10] sm:$0xff]   ;;  %v6989_v60 = vld [vmem:[%s8301_s19 + $0x18] sm:$0xff]  }
 0x6e7   : > { %v4358_v15 = vpack.c.bf16 %v4288_v31, %v4286_v62  ;;  %v3964_v52 = vpop.f32.mrb[200].mxu0  ;;  %v6990_v62 = vld [vmem:[%s8301_s19 + $0x20] sm:$0xff]   ;;  %v6991_v31 = vld [vmem:[%s8301_s19 + $0x28] sm:$0xff]  }
 0x6e8   : > { %v4225_v38 = vadd.f32 %v4158_v13, %v3964_v52  ;;  %v3966_v7 = vpop.f32.mrb[201].mxu0  ;;  %v4405_v52 = vpop.permute.xlu1 %4404 }
 0x6e9   : > { %v4226_v8 = vadd.f32 %v4158_v13, %v3966_v7  ;;  %v3968_v28 = vpop.f32.mrb[202].mxu0  ;;  %4785 = vmatprep.subr.bf16.mxu1 %v4358_v15  ;;  %v6993_v13 = vld [vmem:[%s8301_s19 + $0x38] sm:$0xff]   ;;  %v4400_v7 = vpop.permute.xlu0 %4399 }
 0x6ea   : > { %v4227_v12 = vadd.f32 %v4163_v19, %v3968_v28  ;;  %v3970_v59 = vpop.f32.mrb[203].mxu0  ;;  %4786 = vmatpush1.bf16.msra.mxu1 %v4357_v39  ;;  %v4289_v48 = vmax.f32 %v4225_v38, 0.0  ;;  %v6992_v39 = vld [vmem:[%s8301_s19 + $0x30] sm:$0xff]  }
 0x6eb   : > { %v4228_v11 = vadd.f32 %v4163_v19, %v3970_v59  ;;  %v4290_v58 = vmax.f32 %v4226_v8, 0.0  ;;  %v6996_v59 = vld [vmem:[%s7603_s10 + $0x524] ss:$8 sps:$4 sm:$0xff]  }
 0x6ec   : > { %v4291_v50 = vmax.f32 %v4227_v12, 0.0 }
 0x6ed   : > { %v4292_v53 = vmax.f32 %v4228_v11, 0.0 }
 0x6ee   : > { %v4359_v44 = vpack.c.bf16 %v4291_v50, %v4289_v48 }
 0x6ef   : > { %v4360_v2 = vpack.c.bf16 %v4292_v53, %v4290_v58 }
 0x6f1   : > { %4787 = vmatprep.subr.bf16.mxu1 %v4360_v2 }
 0x6f2   : > { %4788 = vmatpush1.bf16.msra.mxu1 %v4359_v44  ;;  %v4415_v44 = vpop.permute.xlu1 %4414 }
 0x6f3   : > { %5119 = vmatprep.subr.bf16.mxu1 %v6982_v35 }
 0x6f5   : > { %4790 = vmatmul.mubr.bf16.vlgmr.msra.gmra.mrb[116].mxu1 %v6926_v30  ;;  %v4410_v30 = vpop.permute.xlu0 %4409 }
 0x6f6   : > { %4799 = vmatprep.mubr.bf16.mxu1 %v6929_v5  ;;  %5120 = vmatpush1.bf16.msra.mxu1 %v6980_v18 }
 0x6f7   : > { %5121 = vmatprep.subr.bf16.mxu1 %v6985_v20 }
 0x6fa   : > { %5122 = vmatpush1.bf16.msra.mxu1 %v6983_v34 }
 0x6fd   : > { %4800 = vmatmul.mubr.bf16.gmra.mrb[120].mxu1 %v6931_v49 }
 0x6fe   : > { %4809 = vmatprep.mubr.bf16.mxu1 %v6932_v42 }
 0x705   : > { %4810 = vmatmul.mubr.bf16.gmra.mrb[124].mxu1 %v6934_v26 }
 0x706   : > { %4819 = vmatprep.mubr.bf16.mxu1 %v6935_v54 }
 0x70d   : > { %4820 = vmatmul.mubr.bf16.gmra.mrb[128].mxu1 %v6937_v1 }
 0x70e   : > { %4829 = vmatprep.mubr.bf16.mxu1 %v6938_v10 }
 0x715   : > { %4830 = vmatmul.mubr.bf16.gmra.mrb[132].mxu1 %v6940_v14  ;;  %v4425_v14 = vpop.permute.xlu1 %4424 }
 0x716   : > { %4839 = vmatprep.mubr.bf16.mxu1 %v6941_v61 }
 0x71d   : > { %4840 = vmatmul.mubr.bf16.gmra.mrb[136].mxu1 %v6943_v32  ;;  %v4420_v32 = vpop.permute.xlu0 %4419 }
 0x71e   : > { %4849 = vmatprep.mubr.bf16.mxu1 %v6944_v25 }
 0x725   : > { %4850 = vmatmul.mubr.bf16.gmra.mrb[140].mxu1 %v6946_v0 }
 0x726   : > { %4859 = vmatprep.mubr.bf16.mxu1 %v6947_v23 }
 0x72d   : > { %4860 = vmatmul.mubr.bf16.gmra.mrb[144].mxu1 %v6949_v9 }
 0x72e   : > { %4869 = vmatprep.mubr.bf16.mxu1 %v6950_v40 }
 0x735   : > { %4870 = vmatmul.mubr.bf16.gmra.mrb[148].mxu1 %v6952_v24 }
 0x736   : > { %4879 = vmatprep.mubr.bf16.mxu1 %v6953_v6 }
 0x73d   : > { %4880 = vmatmul.mubr.bf16.gmra.mrb[152].mxu1 %v6955_v16 }
 0x73e   : > { %4889 = vmatprep.mubr.bf16.mxu1 %v6956_v21 }
 0x745   : > { %4890 = vmatmul.mubr.bf16.gmra.mrb[156].mxu1 %v6958_v57  ;;  %v4435_v57 = vpop.permute.xlu1 %4434 }
 0x746   : > { %4899 = vmatprep.mubr.bf16.mxu1 %v6959_v56 }
 0x74d   : > { %4900 = vmatmul.mubr.bf16.gmra.mrb[160].mxu1 %v6961_v27  ;;  %v4430_v27 = vpop.permute.xlu0 %4429 }
 0x74e   : > { %4909 = vmatprep.mubr.bf16.mxu1 %v6962_v36 }
 0x755   : > { %4910 = vmatmul.mubr.bf16.gmra.mrb[164].mxu1 %v6964_v17 }
 0x756   : > { %4919 = vmatprep.mubr.bf16.mxu1 %v6965_v41 }
 0x75d   : > { %4920 = vmatmul.mubr.bf16.gmra.mrb[168].mxu1 %v6967_v3 }
 0x75e   : > { %4929 = vmatprep.mubr.bf16.mxu1 %v6968_v63 }
 0x765   : > { %4930 = vmatmul.mubr.bf16.gmra.mrb[172].mxu1 %v6970_v51 }
 0x766   : > { %4939 = vmatprep.mubr.bf16.mxu1 %v6971_v55 }
 0x76d   : > { %4940 = vmatmul.mubr.bf16.gmra.mrb[176].mxu1 %v6973_v4  ;;  %v4445_v4 = vpop.permute.xlu1 %4444 }
 0x76e   : > { %4949 = vmatprep.mubr.bf16.mxu1 %v6974_v33 }
 0x775   : > { %4950 = vmatmul.mubr.bf16.gmra.mrb[180].mxu1 %v6976_v46  ;;  %v4440_v46 = vpop.permute.xlu0 %4439 }
 0x776   : > { %4959 = vmatprep.mubr.bf16.mxu1 %v6977_v47 }
 0x77d   : > { %4960 = vmatmul.mubr.bf16.gmra.mrb[184].mxu1 %v6979_v37 }
 0x77e   : > { %5151 = vmatprep.mubr.bf16.mxu1 %v8768_v22 }
 0x785   : > { %6430 = vmatmul.mubr.msk.bf16.vlgmr.msra.gmra.mrb[188].mxu1 %vm5094_vm1, %v6986_v29 }
 0x786   : > { %5161 = vmatprep.mubr.bf16.mxu1 %v8768_v22 }
 0x78d   : > { %6431 = vmatmul.mubr.msk.bf16.gmra.mrb[192].mxu1 %vm5094_vm1, %v6987_v45 }
 0x78e   : > { %5171 = vmatprep.mubr.bf16.mxu1 %v8768_v22 }
 0x795   : > { %6432 = vmatmul.mubr.msk.bf16.gmra.mrb[196].mxu1 %vm5094_vm1, %v6988_v43 }
 0x796   : > { %5181 = vmatprep.mubr.bf16.mxu1 %v8768_v22 }
 0x79d   : > { %6433 = vmatmul.mubr.msk.bf16.gmra.mrb[200].mxu1 %vm5094_vm1, %v6989_v60 }
 0x79e   : > { %5191 = vmatprep.mubr.bf16.mxu1 %v8768_v22 }
 0x7a5   : > { %6434 = vmatmul.mubr.msk.bf16.gmra.mrb[204].mxu1 %vm5094_vm1, %v6990_v62 }
 0x7a6   : > { %5201 = vmatprep.mubr.bf16.mxu1 %v8768_v22 }
 0x7ad   : > { %6435 = vmatmul.mubr.msk.bf16.gmra.mrb[208].mxu1 %vm5094_vm1, %v6991_v31 }
 0x7ae   : > { %5211 = vmatprep.mubr.bf16.mxu1 %v8768_v22 }
 0x7b5   : > { %6436 = vmatmul.mubr.msk.bf16.gmra.mrb[212].mxu1 %vm5094_vm1, %v6992_v39 }
 0x7b6   : > { %5221 = vmatprep.mubr.bf16.mxu1 %v8768_v22 }
 0x7bd   : > { %6437 = vmatmul.mubr.msk.bf16.gmra.mrb[216].mxu1 %vm5094_vm1, %v6993_v13  ;;  %v4455_v13 = vpop.permute.xlu1 %4454 }
 0x7be   : > { %5344 = vmatprep.mubr.bf16.mxu1 %v6996_v59 }
 0x7c8   : > { %v4791_v15 = vpop.f32.mrb[116].mxu1 }
 0x7c9   : > { %v4793_v38 = vpop.f32.mrb[117].mxu1  ;;  %v4792_v8 = vadd.f32 %v4791_v15, %v4400_v7 }
 0x7ca   : > { %v4795_v19 = vpop.f32.mrb[118].mxu1  ;;  %v4794_v11 = vadd.f32 %v4793_v38, %v4400_v7 }
 0x7cb   : > { %v4796_v28 = vadd.f32 %v4795_v19, %v4405_v52  ;;  %v4797_v12 = vpop.f32.mrb[119].mxu1 }
 0x7cc   : > { %v4798_v48 = vadd.f32 %v4797_v12, %v4405_v52  ;;  %v4450_v52 = vpop.permute.xlu0 %4449 }
 0x7cd   : > { %v4986_v50 = vpack.c.bf16 %v4796_v28, %v4792_v8 }
 0x7ce   : > { %v4987_v58 = vpack.c.bf16 %v4798_v48, %v4794_v11 }
 0x7d0   : > { %v4801_v53 = vpop.f32.mrb[120].mxu1  ;;  %5312 = vmatprep.subr.bf16.mxu1 %v4987_v58 }
 0x7d1   : > { %v4803_v2 = vpop.f32.mrb[121].mxu1  ;;  %5313 = vmatpush1.bf16.msra.mxu1 %v4986_v50  ;;  %v4802_v49 = vadd.f32 %v4801_v53, %v4410_v30  ;;  %v4465_v50 = vpop.permute.xlu1 %4464 }
 0x7d2   : > { %v4805_v5 = vpop.f32.mrb[122].mxu1  ;;  %v4804_v35 = vadd.f32 %v4803_v2, %v4410_v30  ;;  %v4460_v53 = vpop.permute.xlu0 %4459 }
 0x7d3   : > { %v4806_v42 = vadd.f32 %v4805_v5, %v4415_v44  ;;  %v4807_v18 = vpop.f32.mrb[123].mxu1 }
 0x7d4   : > { %v4808_v26 = vadd.f32 %v4807_v18, %v4415_v44 }
 0x7d5   : > { %v4988_v54 = vpack.c.bf16 %v4806_v42, %v4802_v49 }
 0x7d6   : > { %v4989_v1 = vpack.c.bf16 %v4808_v26, %v4804_v35 }
 0x7d8   : > { %v4811_v10 = vpop.f32.mrb[124].mxu1  ;;  %5314 = vmatprep.subr.bf16.mxu1 %v4989_v1 }
 0x7d9   : > { %v4813_v61 = vpop.f32.mrb[125].mxu1  ;;  %5315 = vmatpush1.bf16.msra.mxu1 %v4988_v54  ;;  %v4812_v0 = vadd.f32 %v4811_v10, %v4420_v32  ;;  %v4475_v54 = vpop.permute.xlu1 %4474 }
 0x7da   : > { %v4815_v25 = vpop.f32.mrb[126].mxu1  ;;  %v4814_v40 = vadd.f32 %v4813_v61, %v4420_v32  ;;  %v4470_v10 = vpop.permute.xlu0 %4469 }
 0x7db   : > { %v4816_v23 = vadd.f32 %v4815_v25, %v4425_v14  ;;  %v4817_v9 = vpop.f32.mrb[127].mxu1 }
 0x7dc   : > { %v4818_v24 = vadd.f32 %v4817_v9, %v4425_v14 }
 0x7dd   : > { %v4990_v6 = vpack.c.bf16 %v4816_v23, %v4812_v0 }
 0x7de   : > { %v4991_v16 = vpack.c.bf16 %v4818_v24, %v4814_v40 }
 0x7e0   : > { %v4821_v21 = vpop.f32.mrb[128].mxu1  ;;  %5316 = vmatprep.subr.bf16.mxu1 %v4991_v16 }
 0x7e1   : > { %v4823_v56 = vpop.f32.mrb[129].mxu1  ;;  %5317 = vmatpush1.bf16.msra.mxu1 %v4990_v6  ;;  %v4822_v20 = vadd.f32 %v4821_v21, %v4430_v27  ;;  %v4485_v6 = vpop.permute.xlu1 %4484 }
 0x7e2   : > { %v4825_v36 = vpop.f32.mrb[130].mxu1  ;;  %v4824_v41 = vadd.f32 %v4823_v56, %v4430_v27  ;;  %v4480_v21 = vpop.permute.xlu0 %4479 }
 0x7e3   : > { %v4826_v34 = vadd.f32 %v4825_v36, %v4435_v57  ;;  %v4827_v17 = vpop.f32.mrb[131].mxu1 }
 0x7e4   : > { %v4828_v3 = vadd.f32 %v4827_v17, %v4435_v57 }
 0x7e5   : > { %v4992_v63 = vpack.c.bf16 %v4826_v34, %v4822_v20 }
 0x7e6   : > { %v4993_v51 = vpack.c.bf16 %v4828_v3, %v4824_v41 }
 0x7e8   : > { %v4831_v55 = vpop.f32.mrb[132].mxu1  ;;  %5318 = vmatprep.subr.bf16.mxu1 %v4993_v51 }
 0x7e9   : > { %v4833_v33 = vpop.f32.mrb[133].mxu1  ;;  %5319 = vmatpush1.bf16.msra.mxu1 %v4992_v63  ;;  %v4832_v37 = vadd.f32 %v4831_v55, %v4440_v46  ;;  %v4495_v63 = vpop.permute.xlu1 %4494 }
 0x7ea   : > { %v4835_v47 = vpop.f32.mrb[134].mxu1  ;;  %v4834_v43 = vadd.f32 %v4833_v33, %v4440_v46  ;;  %v4490_v55 = vpop.permute.xlu0 %4489 }
 0x7eb   : > { %v4836_v29 = vadd.f32 %v4835_v47, %v4445_v4  ;;  %v4837_v45 = vpop.f32.mrb[135].mxu1 }
 0x7ec   : > { %v4838_v60 = vadd.f32 %v4837_v45, %v4445_v4 }
 0x7ed   : > { %v4994_v62 = vpack.c.bf16 %v4836_v29, %v4832_v37 }
 0x7ee   : > { %v4995_v31 = vpack.c.bf16 %v4838_v60, %v4834_v43 }
 0x7f0   : > { %v4841_v39 = vpop.f32.mrb[136].mxu1  ;;  %5320 = vmatprep.subr.bf16.mxu1 %v4995_v31 }
 0x7f1   : > { %v4843_v15 = vpop.f32.mrb[137].mxu1  ;;  %5321 = vmatpush1.bf16.msra.mxu1 %v4994_v62  ;;  %v4842_v7 = vadd.f32 %v4841_v39, %v4450_v52  ;;  %v4505_v62 = vpop.permute.xlu1 %4504 }
 0x7f2   : > { %v4845_v38 = vpop.f32.mrb[138].mxu1  ;;  %v4844_v28 = vadd.f32 %v4843_v15, %v4450_v52  ;;  %v4500_v39 = vpop.permute.xlu0 %4499 }
 0x7f3   : > { %v4846_v19 = vadd.f32 %v4845_v38, %v4455_v13  ;;  %v4847_v8 = vpop.f32.mrb[139].mxu1 }
 0x7f4   : > { %v4848_v12 = vadd.f32 %v4847_v8, %v4455_v13 }
 0x7f5   : > { %v4996_v59 = vpack.c.bf16 %v4846_v19, %v4842_v7 }
 0x7f6   : > { %v4997_v11 = vpack.c.bf16 %v4848_v12, %v4844_v28 }
 0x7f8   : > { %v4851_v48 = vpop.f32.mrb[140].mxu1  ;;  %5322 = vmatprep.subr.bf16.mxu1 %v4997_v11 }
 0x7f9   : > { %v4853_v58 = vpop.f32.mrb[141].mxu1  ;;  %5323 = vmatpush1.bf16.msra.mxu1 %v4996_v59  ;;  %v4852_v2 = vadd.f32 %v4851_v48, %v4460_v53  ;;  %v4515_v59 = vpop.permute.xlu1 %4514 }
 0x7fa   : > { %v4855_v44 = vpop.f32.mrb[142].mxu1  ;;  %v4854_v49 = vadd.f32 %v4853_v58, %v4460_v53  ;;  %v4510_v48 = vpop.permute.xlu0 %4509 }
 0x7fb   : > { %v4856_v30 = vadd.f32 %v4855_v44, %v4465_v50  ;;  %v4857_v5 = vpop.f32.mrb[143].mxu1 }
 0x7fc   : > { %v4858_v42 = vadd.f32 %v4857_v5, %v4465_v50 }
 0x7fd   : > { %v4998_v18 = vpack.c.bf16 %v4856_v30, %v4852_v2 }
 0x7fe   : > { %v4999_v35 = vpack.c.bf16 %v4858_v42, %v4854_v49 }
 0x800   : > { %v4861_v26 = vpop.f32.mrb[144].mxu1  ;;  %5324 = vmatprep.subr.bf16.mxu1 %v4999_v35 }
 0x801   : > { %v4863_v1 = vpop.f32.mrb[145].mxu1  ;;  %5325 = vmatpush1.bf16.msra.mxu1 %v4998_v18  ;;  %v4862_v61 = vadd.f32 %v4861_v26, %v4470_v10  ;;  %v4525_v18 = vpop.permute.xlu1 %4524 }
 0x802   : > { %v4865_v14 = vpop.f32.mrb[146].mxu1  ;;  %v4864_v0 = vadd.f32 %v4863_v1, %v4470_v10  ;;  %v4520_v26 = vpop.permute.xlu0 %4519 }
 0x803   : > { %v4866_v32 = vadd.f32 %v4865_v14, %v4475_v54  ;;  %v4867_v25 = vpop.f32.mrb[147].mxu1 }
 0x804   : > { %v4868_v23 = vadd.f32 %v4867_v25, %v4475_v54 }
 0x805   : > { %v5000_v9 = vpack.c.bf16 %v4866_v32, %v4862_v61 }
 0x806   : > { %v5001_v40 = vpack.c.bf16 %v4868_v23, %v4864_v0 }
 0x808   : > { %v4871_v24 = vpop.f32.mrb[148].mxu1  ;;  %5326 = vmatprep.subr.bf16.mxu1 %v5001_v40 }
 0x809   : > { %v4873_v16 = vpop.f32.mrb[149].mxu1  ;;  %5327 = vmatpush1.bf16.msra.mxu1 %v5000_v9  ;;  %v4872_v56 = vadd.f32 %v4871_v24, %v4480_v21  ;;  %v4535_v9 = vpop.permute.xlu1 %4534 }
 0x80a   : > { %v4875_v57 = vpop.f32.mrb[150].mxu1  ;;  %v4874_v20 = vadd.f32 %v4873_v16, %v4480_v21  ;;  %v4530_v24 = vpop.permute.xlu0 %4529 }
 0x80b   : > { %v4876_v27 = vadd.f32 %v4875_v57, %v4485_v6  ;;  %v4877_v36 = vpop.f32.mrb[151].mxu1 }
 0x80c   : > { %v4878_v34 = vadd.f32 %v4877_v36, %v4485_v6 }
 0x80d   : > { %v5002_v17 = vpack.c.bf16 %v4876_v27, %v4872_v56 }
 0x80e   : > { %v5003_v41 = vpack.c.bf16 %v4878_v34, %v4874_v20 }
 0x810   : > { %v4881_v3 = vpop.f32.mrb[152].mxu1  ;;  %5328 = vmatprep.subr.bf16.mxu1 %v5003_v41 }
 0x811   : > { %v4883_v51 = vpop.f32.mrb[153].mxu1  ;;  %5329 = vmatpush1.bf16.msra.mxu1 %v5002_v17  ;;  %v4882_v33 = vadd.f32 %v4881_v3, %v4490_v55  ;;  %v4545_v17 = vpop.permute.xlu1 %4544 }
 0x812   : > { %v4885_v4 = vpop.f32.mrb[154].mxu1  ;;  %v4884_v37 = vadd.f32 %v4883_v51, %v4490_v55  ;;  %v4540_v3 = vpop.permute.xlu0 %4539 }
 0x813   : > { %v4886_v46 = vadd.f32 %v4885_v4, %v4495_v63  ;;  %v4887_v47 = vpop.f32.mrb[155].mxu1 }
 0x814   : > { %v4888_v29 = vadd.f32 %v4887_v47, %v4495_v63 }
 0x815   : > { %v5004_v45 = vpack.c.bf16 %v4886_v46, %v4882_v33 }
 0x816   : > { %v5005_v43 = vpack.c.bf16 %v4888_v29, %v4884_v37 }
 0x818   : > { %v4891_v60 = vpop.f32.mrb[156].mxu1  ;;  %5330 = vmatprep.subr.bf16.mxu1 %v5005_v43 }
 0x819   : > { %v4893_v31 = vpop.f32.mrb[157].mxu1  ;;  %5331 = vmatpush1.bf16.msra.mxu1 %v5004_v45  ;;  %v4892_v15 = vadd.f32 %v4891_v60, %v4500_v39  ;;  %v4555_v45 = vpop.permute.xlu1 %4554 }
 0x81a   : > { %v4895_v13 = vpop.f32.mrb[158].mxu1  ;;  %v4894_v7 = vadd.f32 %v4893_v31, %v4500_v39  ;;  %v4550_v60 = vpop.permute.xlu0 %4549 }
 0x81b   : > { %v4896_v52 = vadd.f32 %v4895_v13, %v4505_v62  ;;  %v4897_v38 = vpop.f32.mrb[159].mxu1 }
 0x81c   : > { %v4898_v19 = vadd.f32 %v4897_v38, %v4505_v62 }
 0x81d   : > { %v5006_v8 = vpack.c.bf16 %v4896_v52, %v4892_v15 }
 0x81e   : > { %v5007_v28 = vpack.c.bf16 %v4898_v19, %v4894_v7 }
 0x820   : > { %v4901_v12 = vpop.f32.mrb[160].mxu1  ;;  %5332 = vmatprep.subr.bf16.mxu1 %v5007_v28 }
 0x821   : > { %v4903_v11 = vpop.f32.mrb[161].mxu1  ;;  %5333 = vmatpush1.bf16.msra.mxu1 %v5006_v8  ;;  %v4902_v58 = vadd.f32 %v4901_v12, %v4510_v48  ;;  %v6994_v8 = vld [vmem:[%s7603_s10 + $0x520] ss:$8 sps:$4 sm:$0xff]   ;;  %v6997_v12 = vld [vmem:[%s7603_s10 + $0x534] ss:$8 sps:$4 sm:$0xff]  }
 0x822   : > { %v4905_v50 = vpop.f32.mrb[162].mxu1  ;;  %v4904_v2 = vadd.f32 %v4903_v11, %v4510_v48 }
 0x823   : > { %v4906_v53 = vadd.f32 %v4905_v50, %v4515_v59  ;;  %v4907_v44 = vpop.f32.mrb[163].mxu1  ;;  %v6999_v50 = vld [vmem:[%s7603_s10 + $0x530] ss:$8 sps:$4 sm:$0xff]  }
 0x824   : > { %v4908_v30 = vadd.f32 %v4907_v44, %v4515_v59 }
 0x825   : > { %v5008_v5 = vpack.c.bf16 %v4906_v53, %v4902_v58  ;;  %v7000_v53 = vld [vmem:[%s7603_s10 + $0x544] ss:$8 sps:$4 sm:$0xff]  }
 0x826   : > { %v5009_v49 = vpack.c.bf16 %v4908_v30, %v4904_v2  ;;  %v7002_v30 = vld [vmem:[%s7603_s10 + $0x540] ss:$8 sps:$4 sm:$0xff]  }
 0x828   : > { %v4911_v42 = vpop.f32.mrb[164].mxu1  ;;  %5334 = vmatprep.subr.bf16.mxu1 %v5009_v49  ;;  %v7005_v49 = vld [vmem:[%s7603_s10 + $0x550] ss:$8 sps:$4 sm:$0xff]  }
 0x829   : > { %v4913_v35 = vpop.f32.mrb[165].mxu1  ;;  %5335 = vmatpush1.bf16.msra.mxu1 %v5008_v5  ;;  %v4912_v1 = vadd.f32 %v4911_v42, %v4520_v26  ;;  %v7003_v5 = vld [vmem:[%s7603_s10 + $0x554] ss:$8 sps:$4 sm:$0xff]   ;;  %v7006_v42 = vld [vmem:[%s7603_s10 + $0x564] ss:$8 sps:$4 sm:$0xff]  }
 0x82a   : > { %v4915_v54 = vpop.f32.mrb[166].mxu1  ;;  %v4914_v61 = vadd.f32 %v4913_v35, %v4520_v26  ;;  %v7009_v35 = vld [vmem:[%s7603_s10 + $0x574] ss:$8 sps:$4 sm:$0xff]   ;;  %v7011_v26 = vld [vmem:[%s7603_s10 + $0x570] ss:$8 sps:$4 sm:$0xff]  }
 0x82b   : > { %v4916_v10 = vadd.f32 %v4915_v54, %v4525_v18  ;;  %v4917_v14 = vpop.f32.mrb[167].mxu1  ;;  %v7012_v54 = vld [vmem:[%s7603_s10 + $0x584] ss:$8 sps:$4 sm:$0xff]  }
 0x82c   : > { %v4918_v32 = vadd.f32 %v4917_v14, %v4525_v18  ;;  %v7008_v18 = vld [vmem:[%s7603_s10 + $0x560] ss:$8 sps:$4 sm:$0xff]   ;;  %v7017_v14 = vld [vmem:[%s7603_s10 + $0x590] ss:$8 sps:$4 sm:$0xff]  }
 0x82d   : > { %v5010_v25 = vpack.c.bf16 %v4916_v10, %v4912_v1  ;;  %v7014_v1 = vld [vmem:[%s7603_s10 + $0x580] ss:$8 sps:$4 sm:$0xff]   ;;  %v7015_v10 = vld [vmem:[%s7603_s10 + $0x594] ss:$8 sps:$4 sm:$0xff]   ;;  %s8557_s10 = scalar_lea.vmem [#allocation4], %s6173_s24 }
 0x82e   : > { %v5011_v0 = vpack.c.bf16 %v4918_v32, %v4914_v61  ;;  %v5444_v61 = vpop.permute.xlu0 %5443 }
 0x830   : > { %v4921_v23 = vpop.f32.mrb[168].mxu1  ;;  %5336 = vmatprep.subr.bf16.mxu1 %v5011_v0 }
 0x831   : > { %v4923_v40 = vpop.f32.mrb[169].mxu1  ;;  %5337 = vmatpush1.bf16.msra.mxu1 %v5010_v25  ;;  %v4922_v16 = vadd.f32 %v4921_v23, %v4530_v24  ;;  %v5449_v23 = vpop.permute.xlu1 %5448 }
 0x832   : > { %v4925_v6 = vpop.f32.mrb[170].mxu1  ;;  %v4924_v56 = vadd.f32 %v4923_v40, %v4530_v24 }
 0x833   : > { %v4926_v21 = vadd.f32 %v4925_v6, %v4535_v9  ;;  %v4927_v57 = vpop.f32.mrb[171].mxu1 }
 0x834   : > { %v4928_v27 = vadd.f32 %v4927_v57, %v4535_v9 }
 0x835   : > { %v5012_v36 = vpack.c.bf16 %v4926_v21, %v4922_v16 }
 0x836   : > { %v5013_v20 = vpack.c.bf16 %v4928_v27, %v4924_v56 }
 0x838   : > { %v4931_v34 = vpop.f32.mrb[172].mxu1  ;;  %5338 = vmatprep.subr.bf16.mxu1 %v5013_v20  ;;  %v5454_v20 = vpop.permute.xlu0 %5453 }
 0x839   : > { %v4933_v41 = vpop.f32.mrb[173].mxu1  ;;  %5339 = vmatpush1.bf16.msra.mxu1 %v5012_v36  ;;  %v4932_v51 = vadd.f32 %v4931_v34, %v4540_v3 }
 0x83a   : > { %v4935_v63 = vpop.f32.mrb[174].mxu1  ;;  %v4934_v33 = vadd.f32 %v4933_v41, %v4540_v3 }
 0x83b   : > { %v4936_v55 = vadd.f32 %v4935_v63, %v4545_v17  ;;  %v4937_v4 = vpop.f32.mrb[175].mxu1  ;;  %v5459_v63 = vpop.permute.xlu1 %5458 }
 0x83c   : > { %v4938_v46 = vadd.f32 %v4937_v4, %v4545_v17 }
 0x83d   : > { %v5014_v47 = vpack.c.bf16 %v4936_v55, %v4932_v51 }
 0x83e   : > { %v5015_v37 = vpack.c.bf16 %v4938_v46, %v4934_v33 }
 0x840   : > { %v4941_v29 = vpop.f32.mrb[176].mxu1  ;;  %5340 = vmatprep.subr.bf16.mxu1 %v5015_v37 }
 0x841   : > { %v4943_v43 = vpop.f32.mrb[177].mxu1  ;;  %5341 = vmatpush1.bf16.msra.mxu1 %v5014_v47  ;;  %v4942_v31 = vadd.f32 %v4941_v29, %v4550_v60 }
 0x842   : > { %v4945_v62 = vpop.f32.mrb[178].mxu1  ;;  %v4944_v15 = vadd.f32 %v4943_v43, %v4550_v60  ;;  %v5464_v60 = vpop.permute.xlu0 %5463 }
 0x843   : > { %v4946_v39 = vadd.f32 %v4945_v62, %v4555_v45  ;;  %v4947_v13 = vpop.f32.mrb[179].mxu1 }
 0x844   : > { %v4948_v52 = vadd.f32 %v4947_v13, %v4555_v45 }
 0x845   : > { %v5016_v38 = vpack.c.bf16 %v4946_v39, %v4942_v31 }
 0x846   : > { %v5017_v7 = vpack.c.bf16 %v4948_v52, %v4944_v15  ;;  %v5469_v15 = vpop.permute.xlu1 %5468 }
 0x848   : > { %v8339_v19 = vpop.f32.mrb[180].mxu1  ;;  %5342 = vmatprep.subr.bf16.mxu1 %v5017_v7 }
 0x849   : > { %v8342_v28 = vpop.f32.mrb[181].mxu1  ;;  %5343 = vmatpush1.bf16.msra.mxu1 %v5016_v38 }
 0x84a   : > { %v8345_v59 = vpop.f32.mrb[182].mxu1 }
 0x84b   : > { %v8347_v11 = vpop.f32.mrb[183].mxu1 }
 0x84c   : > { %5345 = vmatmul.mubr.bf16.vlgmr.msra.gmra.mrb[188].mxu1 %v6994_v8 }
 0x84d   : > { %5354 = vmatprep.mubr.bf16.mxu1 %v6997_v12 }
 0x850   : > { %v8349_v48 = vpop.f32.mrb[184].mxu1 }
 0x851   : > { %v8352_v58 = vpop.f32.mrb[185].mxu1 }
 0x852   : > { %v8355_v44 = vpop.f32.mrb[186].mxu1 }
 0x853   : > { %v8357_v2 = vpop.f32.mrb[187].mxu1 }
 0x854   : > { %5355 = vmatmul.mubr.bf16.gmra.mrb[192].mxu1 %v6999_v50 }
 0x855   : > { %5364 = vmatprep.mubr.bf16.mxu1 %v7000_v53 }
 0x85c   : > { %5365 = vmatmul.mubr.bf16.gmra.mrb[196].mxu1 %v7002_v30 }
 0x85d   : > { %5374 = vmatprep.mubr.bf16.mxu1 %v7003_v5 }
 0x864   : > { %5375 = vmatmul.mubr.bf16.gmra.mrb[200].mxu1 %v7005_v49 }
 0x865   : > { %5384 = vmatprep.mubr.bf16.mxu1 %v7006_v42  ;;  %v5474_v42 = vpop.permute.xlu0 %5473 }
 0x86c   : > { %5385 = vmatmul.mubr.bf16.gmra.mrb[204].mxu1 %v7008_v18 }
 0x86d   : > { %5394 = vmatprep.mubr.bf16.mxu1 %v7009_v35 }
 0x874   : > { %5395 = vmatmul.mubr.bf16.gmra.mrb[208].mxu1 %v7011_v26 }
 0x875   : > { %5404 = vmatprep.mubr.bf16.mxu1 %v7012_v54 }
 0x87c   : > { %5405 = vmatmul.mubr.bf16.gmra.mrb[212].mxu1 %v7014_v1  ;;  %v5479_v1 = vpop.permute.xlu1 %5478 }
 0x87d   : > { %5414 = vmatprep.mubr.bf16.mxu1 %v7015_v10 }
 0x884   : > { %5415 = vmatmul.mubr.bf16.gmra.mrb[216].mxu1 %v7017_v14 }
 0x91f   : > { %v5346_v32 = vpop.f32.mrb[188].mxu1 }
 0x920   : > { %v5521_v25 = vadd.f32 %v5444_v61, %v5346_v32  ;;  %v5348_v0 = vpop.f32.mrb[189].mxu1 }
 0x921   : > { %v5522_v9 = vadd.f32 %v5444_v61, %v5348_v0  ;;  %v5350_v40 = vpop.f32.mrb[190].mxu1 }
 0x922   : > { %v5523_v24 = vadd.f32 %v5449_v23, %v5350_v40  ;;  %v5352_v6 = vpop.f32.mrb[191].mxu1  ;;  %v5553_v21 = vmax.f32 %v5521_v25, 0.0 }
 0x923   : > { %v5524_v16 = vadd.f32 %v5449_v23, %v5352_v6  ;;  %v5554_v56 = vmax.f32 %v5522_v9, 0.0  ;;  %v5484_v6 = vpop.permute.xlu0 %5483 }
 0x924   : > { %v5555_v57 = vmax.f32 %v5523_v24, 0.0 }
 0x925   : > { %v5556_v27 = vmax.f32 %v5524_v16, 0.0 }
 0x926   : > { %v5589_v36 = vpack.c.bf16 %v5555_v57, %v5553_v21 }
 0x927   : > { %v5590_v34 = vpack.c.bf16 %v5556_v27, %v5554_v56  ;;  %v5356_v17 = vpop.f32.mrb[192].mxu1  ;;  %v5489_v27 = vpop.permute.xlu1 %5488 }
 0x928   : > { %v5525_v41 = vadd.f32 %v5454_v20, %v5356_v17  ;;  %v5358_v3 = vpop.f32.mrb[193].mxu1 }
 0x929   : > { %v5526_v51 = vadd.f32 %v5454_v20, %v5358_v3  ;;  %v5360_v55 = vpop.f32.mrb[194].mxu1  ;;  %5641 = vmatprep.subr.bf16.mxu0 %v5590_v34 }
 0x92a   : > { %v5527_v4 = vadd.f32 %v5459_v63, %v5360_v55  ;;  %v5362_v33 = vpop.f32.mrb[195].mxu1  ;;  %5642 = vmatpush1.bf16.msra.mxu0 %v5589_v36  ;;  %v5557_v47 = vmax.f32 %v5525_v41, 0.0 }
 0x92b   : > { %v5528_v46 = vadd.f32 %v5459_v63, %v5362_v33  ;;  %v5558_v29 = vmax.f32 %v5526_v51, 0.0  ;;  %v5494_v33 = vpop.permute.xlu0 %5493 }
 0x92c   : > { %v5559_v37 = vmax.f32 %v5527_v4, 0.0 }
 0x92d   : > { %v5560_v45 = vmax.f32 %v5528_v46, 0.0 }
 0x92e   : > { %v5591_v43 = vpack.c.bf16 %v5559_v37, %v5557_v47 }
 0x92f   : > { %v5592_v62 = vpack.c.bf16 %v5560_v45, %v5558_v29  ;;  %v5366_v31 = vpop.f32.mrb[196].mxu1  ;;  %v5499_v45 = vpop.permute.xlu1 %5498 }
 0x930   : > { %v5529_v39 = vadd.f32 %v5464_v60, %v5366_v31  ;;  %v5368_v13 = vpop.f32.mrb[197].mxu1 }
 0x931   : > { %v5530_v52 = vadd.f32 %v5464_v60, %v5368_v13  ;;  %v5370_v38 = vpop.f32.mrb[198].mxu1  ;;  %5643 = vmatprep.subr.bf16.mxu0 %v5592_v62 }
 0x932   : > { %v5531_v7 = vadd.f32 %v5469_v15, %v5370_v38  ;;  %v5372_v8 = vpop.f32.mrb[199].mxu1  ;;  %5644 = vmatpush1.bf16.msra.mxu0 %v5591_v43  ;;  %v5561_v50 = vmax.f32 %v5529_v39, 0.0 }
 0x933   : > { %v5532_v12 = vadd.f32 %v5469_v15, %v5372_v8  ;;  %v5562_v30 = vmax.f32 %v5530_v52, 0.0  ;;  %v5504_v8 = vpop.permute.xlu0 %5503 }
 0x934   : > { %v5563_v53 = vmax.f32 %v5531_v7, 0.0 }
 0x935   : > { %v5564_v5 = vmax.f32 %v5532_v12, 0.0 }
 0x936   : > { %v5593_v49 = vpack.c.bf16 %v5563_v53, %v5561_v50 }
 0x937   : > { %v5594_v18 = vpack.c.bf16 %v5564_v5, %v5562_v30  ;;  %v5376_v35 = vpop.f32.mrb[200].mxu1  ;;  %v5509_v5 = vpop.permute.xlu1 %5508 }
 0x938   : > { %v5533_v26 = vadd.f32 %v5474_v42, %v5376_v35  ;;  %v5378_v54 = vpop.f32.mrb[201].mxu1 }
 0x939   : > { %v5534_v10 = vadd.f32 %v5474_v42, %v5378_v54  ;;  %v5380_v14 = vpop.f32.mrb[202].mxu1  ;;  %5645 = vmatprep.subr.bf16.mxu0 %v5594_v18 }
 0x93a   : > { %v5535_v61 = vadd.f32 %v5479_v1, %v5380_v14  ;;  %v5382_v32 = vpop.f32.mrb[203].mxu1  ;;  %5646 = vmatpush1.bf16.msra.mxu0 %v5593_v49  ;;  %v5565_v0 = vmax.f32 %v5533_v26, 0.0 }
 0x93b   : > { %v5536_v25 = vadd.f32 %v5479_v1, %v5382_v32  ;;  %v5566_v9 = vmax.f32 %v5534_v10, 0.0  ;;  %v5514_v32 = vpop.permute.xlu0 %5513 }
 0x93c   : > { %v5567_v23 = vmax.f32 %v5535_v61, 0.0 }
 0x93d   : > { %v5568_v40 = vmax.f32 %v5536_v25, 0.0 }
 0x93e   : > { %v5595_v24 = vpack.c.bf16 %v5567_v23, %v5565_v0 }
 0x93f   : > { %v5596_v16 = vpack.c.bf16 %v5568_v40, %v5566_v9  ;;  %v5386_v21 = vpop.f32.mrb[204].mxu1  ;;  %v5519_v40 = vpop.permute.xlu1 %5518 }
 0x940   : > { %v5537_v57 = vadd.f32 %v5484_v6, %v5386_v21  ;;  %v5388_v56 = vpop.f32.mrb[205].mxu1 }
 0x941   : > { %v5538_v36 = vadd.f32 %v5484_v6, %v5388_v56  ;;  %v5390_v20 = vpop.f32.mrb[206].mxu1  ;;  %5647 = vmatprep.subr.bf16.mxu0 %v5596_v16 }
 0x942   : > { %v5539_v34 = vadd.f32 %v5489_v27, %v5390_v20  ;;  %v5392_v17 = vpop.f32.mrb[207].mxu1  ;;  %5648 = vmatpush1.bf16.msra.mxu0 %v5595_v24  ;;  %v5569_v3 = vmax.f32 %v5537_v57, 0.0 }
 0x943   : > { %v5540_v41 = vadd.f32 %v5489_v27, %v5392_v17  ;;  %v5570_v51 = vmax.f32 %v5538_v36, 0.0 }
 0x944   : > { %v5571_v63 = vmax.f32 %v5539_v34, 0.0 }
 0x945   : > { %v5572_v55 = vmax.f32 %v5540_v41, 0.0  ;;  %v7018_v41 = vld [vmem:[%s8374_s0] sm:$0xff]  }
 0x946   : > { %v5597_v4 = vpack.c.bf16 %v5571_v63, %v5569_v3  ;;  %v7019_v3 = vld [vmem:[%s8374_s0 + $0x8] sm:$0xff]   ;;  %v4560_v63 = vpop.permute.xlu0 %4559 }
 0x947   : > { %v5598_v46 = vpack.c.bf16 %v5572_v55, %v5570_v51  ;;  %v5396_v47 = vpop.f32.mrb[208].mxu1  ;;  %v4952_v51 = vadd.f32 %v8339_v19, %v4560_v63  ;;  %v4954_v55 = vadd.f32 %v8342_v28, %v4560_v63 }
 0x948   : > { %v5541_v37 = vadd.f32 %v5494_v33, %v5396_v47  ;;  %v5398_v29 = vpop.f32.mrb[209].mxu1 }
 0x949   : > { %v5542_v43 = vadd.f32 %v5494_v33, %v5398_v29  ;;  %v5400_v60 = vpop.f32.mrb[210].mxu1  ;;  %5649 = vmatprep.subr.bf16.mxu0 %v5598_v46  ;;  %v8381_v33 = vadd.f32 -1.0, %v4952_v51  ;;  %v8383_v46 = vadd.f32 -1.0, %v4954_v55 }
 0x94a   : > { %v5543_v62 = vadd.f32 %v5499_v45, %v5400_v60  ;;  %v5402_v31 = vpop.f32.mrb[211].mxu1  ;;  %5650 = vmatpush1.bf16.msra.mxu0 %v5597_v4  ;;  %v5573_v13 = vmax.f32 %v5541_v37, 0.0  ;;  %v4565_v4 = vpop.permute.xlu1 %4564 }
 0x94b   : > { %v5544_v39 = vadd.f32 %v5499_v45, %v5402_v31  ;;  %v5574_v52 = vmax.f32 %v5542_v43, 0.0  ;;  %v4956_v47 = vadd.f32 %v8345_v59, %v4565_v4  ;;  %v4958_v37 = vadd.f32 %v8347_v11, %v4565_v4  ;;  %v4570_v43 = vpop.permute.xlu0 %4569 }
 0x94c   : > { %v5575_v15 = vmax.f32 %v5543_v62, 0.0  ;;  %v5783_v29 = vand.u32 2147483647, %v8381_v33  ;;  %v4962_v28 = vadd.f32 %v8349_v48, %v4570_v43  ;;  %v4964_v59 = vadd.f32 %v8352_v58, %v4570_v43 }
 0x94d   : > { %v5576_v38 = vmax.f32 %v5544_v39, 0.0  ;;  %v8389_v45 = vadd.f32 -1.0, %v4956_v47  ;;  %v8391_v60 = vadd.f32 -1.0, %v4958_v37  ;;  %vm5767_vm5 = vcmp.ne.f32.partialorder %v8381_v33, %v8381_v33 }
 0x94e   : > { %v5599_v7 = vpack.c.bf16 %v5575_v15, %v5573_v13  ;;  %v5791_v19 = vsub.f32 0.0, %v5783_v29  ;;  %v4575_v62 = vpop.permute.xlu1 %4574  ;;  %vm5768_vm6 = vcmp.ne.f32.partialorder %v8383_v46, %v8383_v46 }
 0x94f   : > { %v5600_v12 = vpack.c.bf16 %v5576_v38, %v5574_v52  ;;  %v5406_v50 = vpop.f32.mrb[212].mxu1  ;;  %v5785_v39 = vand.u32 2147483647, %v8389_v45  ;;  %v4966_v11 = vadd.f32 %v8355_v44, %v4575_v62  ;;  %v5786_v13 = vand.u32 2147483647, %v8391_v60 }
 0x950   : > { %v5545_v53 = vadd.f32 %v5504_v8, %v5406_v50  ;;  %v5408_v30 = vpop.f32.mrb[213].mxu1  ;;  %v4968_v15 = vadd.f32 %v8357_v2, %v4575_v62  ;;  %v5799_v52 = vmul.f32 1.442695, %v5791_v19  ;;  %v8399_v38 = vadd.f32 -1.0, %v4962_v28 }
 0x951   : > { %v5546_v49 = vadd.f32 %v5504_v8, %v5408_v30  ;;  %v5410_v42 = vpop.f32.mrb[214].mxu1  ;;  %5651 = vmatprep.subr.bf16.mxu0 %v5600_v12  ;;  %v5793_v8 = vsub.f32 0.0, %v5785_v39  ;;  %v8401_v12 = vadd.f32 -1.0, %v4964_v59  ;;  %v8403_v48 = vadd.f32 -1.0, %v4966_v11 }
 0x952   : > { %v5547_v18 = vadd.f32 %v5509_v5, %v5410_v42  ;;  %v5412_v35 = vpop.f32.mrb[215].mxu1  ;;  %5652 = vmatpush1.bf16.msra.mxu0 %v5599_v7  ;;  %v5577_v54 = vmax.f32 %v5545_v53, 0.0  ;;  %v5794_v50 = vsub.f32 0.0, %v5786_v13  ;;  %v8405_v53 = vadd.f32 -1.0, %v4968_v15  ;;  %v5617_v55 = vpop.permute.xlu1 %5616 }
 0x953   : > { %v5548_v26 = vadd.f32 %v5509_v5, %v5412_v35  ;;  %v5578_v10 = vmax.f32 %v5546_v49, 0.0  ;;  %7020 = vpow2.f32 %v5799_v52  ;;  %v5787_v58 = vand.u32 2147483647, %v8399_v38 }
 0x954   : > { %v5579_v1 = vmax.f32 %v5547_v18, 0.0  ;;  %v5803_v44 = vmul.f32 1.442695, %v5793_v8  ;;  %v5788_v30 = vand.u32 2147483647, %v8401_v12  ;;  %v5765_v47 = vmax.f32 %v8403_v48, 0.0 }
 0x955   : > { %v5580_v14 = vmax.f32 %v5548_v26, 0.0  ;;  %v5789_v2 = vand.u32 2147483647, %v8403_v48  ;;  %v5805_v5 = vmul.f32 1.442695, %v5794_v50  ;;  %v5795_v42 = vsub.f32 0.0, %v5787_v58 }
 0x956   : > { %v5601_v61 = vpack.c.bf16 %v5579_v1, %v5577_v54  ;;  %v5790_v49 = vand.u32 2147483647, %v8405_v53  ;;  %v5796_v18 = vsub.f32 0.0, %v5788_v30  ;;  %vm5769_vm8 = vcmp.ne.f32.partialorder %v8389_v45, %v8389_v45 }
 0x957   : > { %v5602_v25 = vpack.c.bf16 %v5580_v14, %v5578_v10  ;;  %v5416_v0 = vpop.f32.mrb[216].mxu1  ;;  %v5797_v35 = vsub.f32 0.0, %v5789_v2  ;;  %v5807_v54 = vmul.f32 1.442695, %v5795_v42  ;;  %vm5770_vm11 = vcmp.ne.f32.partialorder %v8391_v60, %v8391_v60 }
 0x958   : > { %v5549_v23 = vadd.f32 %v5514_v32, %v5416_v0  ;;  %v5418_v9 = vpop.f32.mrb[217].mxu1  ;;  %v5798_v26 = vsub.f32 0.0, %v5790_v49  ;;  %v5809_v1 = vmul.f32 1.442695, %v5796_v18  ;;  %vm5771_vm1 = vcmp.ne.f32.partialorder %v8399_v38, %v8399_v38 }
 0x959   : > { %v5550_v24 = vadd.f32 %v5514_v32, %v5418_v9  ;;  %v5420_v6 = vpop.f32.mrb[218].mxu1  ;;  %5653 = vmatprep.subr.bf16.mxu0 %v5602_v25  ;;  %v5811_v14 = vmul.f32 1.442695, %v5797_v35 }
 0x95a   : > { %v5551_v16 = vadd.f32 %v5519_v40, %v5420_v6  ;;  %v5422_v21 = vpop.f32.mrb[219].mxu1  ;;  %5654 = vmatpush1.bf16.msra.mxu0 %v5601_v61  ;;  %v5581_v56 = vmax.f32 %v5549_v23, 0.0  ;;  %v5813_v32 = vmul.f32 1.442695, %v5798_v26 }
 0x95b   : > { %v5552_v57 = vadd.f32 %v5519_v40, %v5422_v21  ;;  %v5582_v36 = vmax.f32 %v5550_v24, 0.0  ;;  %v5759_v24 = vmax.f32 %v8381_v33, 0.0  ;;  %v5612_v21 = vpop.permute.xlu0 %5611 }
 0x95c   : > { %v5583_v27 = vmax.f32 %v5551_v16, 0.0  ;;  %v5760_v16 = vmax.f32 %v8383_v46, 0.0 }
 0x95d   : > { %v5584_v20 = vmax.f32 %v5552_v57, 0.0  ;;  %v8411_v10 = vpop.eup %7020 }
 0x95e   : > { %v5603_v34 = vpack.c.bf16 %v5583_v27, %v5581_v56  ;;  %v5815_v25 = vadd.f32 1.0, %v8411_v10  ;;  %v5818_v6 = vmul.f32 -0.5, %v8411_v10  ;;  %v5761_v56 = vmax.f32 %v8389_v45, 0.0 }
 0x95f   : > { %v5604_v17 = vpack.c.bf16 %v5584_v20, %v5582_v36  ;;  %v5762_v27 = vmax.f32 %v8391_v60, 0.0  ;;  %v5821_v4 = vand.u32 2147483647, %v8411_v10  ;;  %v5622_v35 = vpop.permute.xlu0 %5621 }
 0x960   : > { %v5819_v43 = vadd.f32 1.0, %v5818_v6  ;;  %v5627_v6 = vpop.permute.xlu1 %5626 }
 0x961   : > { %5655 = vmatprep.subr.bf16.mxu0 %v5604_v17  ;;  %v5763_v17 = vmax.f32 %v8399_v38, 0.0  ;;  %vm8444_vm2 = vcmp.lt.f32.partialorder %v5821_v4, 0.0004427343 }
 0x962   : > { %5656 = vmatpush1.bf16.msra.mxu0 %v5603_v34  ;;  %v5820_v26 = vmul.f32 %v8411_v10, %v5819_v43 }
 0x965   : > { %5674 = vmatmul.mubr.bf16.vlgmr.msra.gmra.mrb[204].mxu0 %v7018_v41  ;;  %v5764_v41 = vmax.f32 %v8401_v12, 0.0 }
 0x966   : > { %5683 = vmatprep.mubr.bf16.mxu0 %v8768_v22  ;;  %v5784_v22 = vand.u32 2147483647, %v8383_v46 }
 0x968   : > { %v5792_v31 = vsub.f32 0.0, %v5784_v22 }
 0x96a   : > { %v5801_v7 = vmul.f32 1.442695, %v5792_v31 }
 0x96c   : > { %7022 = vpow2.f32 %v5801_v7 }
 0x96d   : > { %5684 = vmatmul.mubr.bf16.gmra.mrb[208].mxu0 %v7019_v3  ;;  %7024 = vpow2.f32 %v5803_v44 }
 0x96e   : > { %7026 = vpow2.f32 %v5805_v5 }
 0x96f   : > { %7028 = vpow2.f32 %v5807_v54 }
 0x970   : > { %7030 = vpow2.f32 %v5809_v1 }
 0x971   : > { %7032 = vpow2.f32 %v5811_v14 }
 0x972   : > { %7034 = vpow2.f32 %v5813_v32 }
 0x973   : > { %7036 = vlog2.f32 %v5815_v25 }
 0x976   : > { %v8413_v61 = vpop.eup %7022 }
 0x977   : > { %v5824_v0 = vadd.f32 1.0, %v8413_v61  ;;  %v8417_v23 = vpop.eup %7024  ;;  %v5827_v57 = vmul.f32 -0.5, %v8413_v61  ;;  %v5830_v19 = vand.u32 2147483647, %v8413_v61 }
 0x978   : > { %v8419_v9 = vpop.eup %7026  ;;  %v5833_v40 = vadd.f32 1.0, %v8417_v23  ;;  %v5836_v34 = vmul.f32 -0.5, %v8417_v23  ;;  %v5839_v49 = vand.u32 2147483647, %v8417_v23 }
 0x979   : > { %7038 = vlog2.f32 %v5824_v0  ;;  %v5842_v36 = vadd.f32 1.0, %v8419_v9  ;;  %v8432_v51 = vpop.eup %7028  ;;  %v5828_v59 = vadd.f32 1.0, %v5827_v57  ;;  %v5845_v58 = vmul.f32 -0.5, %v8419_v9 }
 0x97a   : > { %7040 = vlog2.f32 %v5833_v40  ;;  %v8436_v22 = vpop.eup %7030  ;;  %v5837_v52 = vadd.f32 1.0, %v5836_v34  ;;  %v5851_v7 = vadd.f32 1.0, %v8432_v51  ;;  %vm8450_vm3 = vcmp.lt.f32.partialorder %v5830_v19, 0.0004427343 }
 0x97b   : > { %v8439_v39 = vpop.eup %7032  ;;  %7042 = vlog2.f32 %v5842_v36  ;;  %v5860_v44 = vadd.f32 1.0, %v8436_v22  ;;  %v5829_v54 = vmul.f32 %v8413_v61, %v5828_v59  ;;  %v5848_v25 = vand.u32 2147483647, %v8419_v9 }
 0x97c   : > { %v8441_v15 = vpop.eup %7034  ;;  %v5869_v42 = vadd.f32 1.0, %v8439_v39  ;;  %v8460_v32 = vmul.f32 %v8417_v23, %v5837_v52  ;;  %v5846_v57 = vadd.f32 1.0, %v5845_v58  ;;  %vm8463_vm4 = vcmp.lt.f32.partialorder %v5839_v49, 0.0004427343 }
 0x97d   : > { %v7037_v2 = vpop.eup %7036  ;;  %v5878_v1 = vadd.f32 1.0, %v8441_v15  ;;  %v5863_v43 = vmul.f32 -0.5, %v8436_v22  ;;  %vm8480_vm7 = vcmp.lt.f32.partialorder %v5848_v25, 0.0004427343 }
 0x983   : > { %v7039_v18 = vpop.eup %7038 }
 0xa38   : > { %v5675_v20 = vpop.f32.mrb[204].mxu0 }
 0xa39   : > { %v5676_v3 = vadd.f32 %v5675_v20, %v5612_v21  ;;  %v5677_v63 = vpop.f32.mrb[205].mxu0  ;;  %v5826_v20 = vmul.f32 0.6931472, %v7039_v18  ;;  %v5866_v18 = vand.u32 2147483647, %v8436_v22 }
 0xa3a   : > { %v5678_v37 = vadd.f32 %v5677_v63, %v5612_v21  ;;  %v5679_v29 = vpop.f32.mrb[206].mxu0  ;;  %v5817_v21 = vmul.f32 0.6931472, %v7037_v2  ;;  %v7041_v63 = vpop.eup %7040 }
 0xa3b   : > { %v6464_v28 = vmul.f32 -1.442695, %v5676_v3  ;;  %v5680_v62 = vadd.f32 %v5679_v29, %v5617_v55  ;;  %v5681_v31 = vpop.f32.mrb[207].mxu0  ;;  %v5854_v29 = vmul.f32 -0.5, %v8432_v51  ;;  %v5835_v52 = vmul.f32 0.6931472, %v7041_v63 }
 0xa3c   : > { %v6465_v11 = vmul.f32 -1.442695, %v5678_v37  ;;  %v5682_v13 = vadd.f32 %v5681_v31, %v5617_v55  ;;  %v5694_v55 = vlaneseq  ;;  %v5872_v31 = vmul.f32 -0.5, %v8439_v39 }
 0xa3d   : > { %7044 = vpow2.f32 %v6464_v28  ;;  %v6466_v8 = vmul.f32 -1.442695, %v5680_v62  ;;  %v7043_v28 = vpop.eup %7042  ;;  %v5857_v62 = vand.u32 2147483647, %v8432_v51  ;;  %v5855_v50 = vadd.f32 1.0, %v5854_v29 }
 0xa3e   : > { %7046 = vpow2.f32 %v6465_v11  ;;  %v6467_v30 = vmul.f32 -1.442695, %v5682_v13  ;;  %v5823_v13 = vsel %vm8444_vm2, %v5820_v26, %v5817_v21  ;;  %v5873_v26 = vadd.f32 1.0, %v5872_v31 }
 0xa3f   : > { %7048 = vpow2.f32 %v6466_v8  ;;  %v5887_v5 = vadd.f32 %v5823_v13, %v5759_v24  ;;  %v5844_v21 = vmul.f32 0.6931472, %v7043_v28  ;;  %vm8500_vm9 = vcmp.lt.f32.partialorder %v5857_v62, 0.0004427343 }
 0xa40   : > { %7050 = vpow2.f32 %v6467_v30  ;;  %v5685_v14 = vpop.f32.mrb[208].mxu0  ;;  %v8486_v30 = vshrl.u32 %v5694_v55, 7  ;;  %vm8504_vm10 = vcmp.lt.f32.partialorder %v5866_v18, 0.0004427343  ;;  %v5884_v29 = vand.u32 2147483647, %v8441_v15 }
 0xa41   : > { %7052 = vlog2.f32 %v5851_v7  ;;  %v5686_v0 = vadd.f32 %v5685_v14, %v5622_v35  ;;  %v5687_v40 = vpop.f32.mrb[209].mxu0  ;;  %v8478_v7 = vmul.f32 %v8419_v9, %v5846_v57  ;;  %v5895_v63 = vsel %vm5767_vm5, %v8381_v33, %v5887_v5 }
 0xa42   : > { %7054 = vlog2.f32 %v5860_v44  ;;  %v5688_v36 = vadd.f32 %v5687_v40, %v5622_v35  ;;  %v5689_v10 = vpop.f32.mrb[210].mxu0  ;;  %v5832_v44 = vsel %vm8450_vm3, %v5829_v54, %v5826_v20  ;;  %v5696_v57 = vadd.s32 8, %v8486_v30 }
 0xa43   : > { %7056 = vlog2.f32 %v5869_v42  ;;  %v6468_v34 = vmul.f32 -1.442695, %v5686_v0  ;;  %v5690_v23 = vadd.f32 %v5689_v10, %v5627_v6  ;;  %v5691_v3 = vpop.f32.mrb[211].mxu0  ;;  %v5864_v42 = vadd.f32 1.0, %v5863_v43 }
 0xa44   : > { %7058 = vlog2.f32 %v5878_v1  ;;  %v6469_v4 = vmul.f32 -1.442695, %v5688_v36  ;;  %v5692_v37 = vadd.f32 %v5691_v3, %v5627_v6  ;;  %v5875_v1 = vand.u32 2147483647, %v8439_v39 }
 0xa45   : > { %7060 = vpow2.f32 %v6468_v34  ;;  %v6470_v19 = vmul.f32 -1.442695, %v5690_v23  ;;  %v5888_v54 = vadd.f32 %v5832_v44, %v5760_v16  ;;  %v5841_v6 = vsel %vm8463_vm4, %v8460_v32, %v5835_v52 }
 0xa46   : > { %7062 = vpow2.f32 %v6469_v4  ;;  %v6471_v59 = vmul.f32 -1.442695, %v5692_v37  ;;  %v5881_v10 = vmul.f32 -0.5, %v8441_v15  ;;  %v5856_v32 = vmul.f32 %v8432_v51, %v5855_v50 }
 0xa47   : > { %v7045_v11 = vpop.eup %7044  ;;  %7064 = vpow2.f32 %v6470_v19  ;;  %v5865_v61 = vmul.f32 %v8436_v22, %v5864_v42  ;;  %vm8514_vm12 = vcmp.lt.f32.partialorder %v5875_v1, 0.0004427343  ;;  %v5703_v23 = vand.u32 3, %v8486_v30 }
 0xa48   : > { %v7047_v58 = vpop.eup %7046  ;;  %v5927_v2 = vadd.f32 1.0, %v7045_v11  ;;  %7066 = vpow2.f32 %v6471_v59  ;;  %v5896_v55 = vsel %vm5768_vm6, %v8383_v46, %v5888_v54  ;;  %v5889_v51 = vadd.f32 %v5841_v6, %v5761_v56 }
 0xa49   : > { %v7049_v49 = vpop.eup %7048  ;;  %v5928_v9 = vadd.f32 1.0, %v7047_v58  ;;  %v5874_v22 = vmul.f32 %v8439_v39, %v5873_v26  ;;  %v5850_v37 = vsel %vm8480_vm7, %v8478_v7, %v5844_v21  ;;  %v5710_v43 = vand.u32 3, %v5696_v57 }
 0xa4a   : > { %v7051_v35 = vpop.eup %7050  ;;  %7068 = vrcp.f32 %v5927_v2  ;;  %v5929_v14 = vadd.f32 1.0, %v7049_v49  ;;  %v5882_v31 = vadd.f32 1.0, %v5881_v10  ;;  %vm8534_vm13 = vcmp.eq.s32.totalorder %v5703_v23, 3 }
 0xa4b   : > { %v7053_v25 = vpop.eup %7052  ;;  %7070 = vrcp.f32 %v5928_v9  ;;  %v5930_v0 = vadd.f32 1.0, %v7051_v35  ;;  %v5697_v39 = vadd.s32 16, %v8486_v30  ;;  %v5890_v13 = vadd.f32 %v5850_v37, %v5762_v27 }
 0xa4c   : > { %v7055_v40 = vpop.eup %7054  ;;  %7072 = vrcp.f32 %v5929_v14  ;;  %v5853_v28 = vmul.f32 0.6931472, %v7053_v25  ;;  %vm8541_vm14 = vcmp.eq.s32.totalorder %v5710_v43, 3  ;;  %v5698_v2 = vadd.s32 24, %v8486_v30 }
 0xa4d   : > { %v7057_v36 = vpop.eup %7056  ;;  %7074 = vrcp.f32 %v5930_v0  ;;  %v5862_v62 = vmul.f32 0.6931472, %v7055_v40  ;;  %v5897_v50 = vsel %vm5769_vm8, %v8389_v45, %v5889_v51  ;;  %v5883_v30 = vmul.f32 %v8441_v15, %v5882_v31 }
 0xa4e   : > { %v7059_v20 = vpop.eup %7058  ;;  %v5871_v52 = vmul.f32 0.6931472, %v7057_v36  ;;  %v5859_v27 = vsel %vm8500_vm9, %v5856_v32, %v5853_v28  ;;  %v5717_v35 = vand.u32 3, %v5697_v39  ;;  %v5898_v1 = vsel %vm5770_vm11, %v8391_v60, %v5890_v13 }
 0xa4f   : > { %v7061_v3 = vpop.eup %7060  ;;  %v5880_v58 = vmul.f32 0.6931472, %v7059_v20  ;;  %v5868_v9 = vsel %vm8504_vm10, %v5865_v61, %v5862_v62  ;;  %vm5885_vm15 = vcmp.lt.f32.partialorder %v5884_v29, 0.0004427343  ;;  %v5891_v25 = vadd.f32 %v5859_v27, %v5763_v17 }
 0xa50   : > { %v7063_v4 = vpop.eup %7062  ;;  %v5931_v33 = vadd.f32 1.0, %v7061_v3  ;;  %v5877_v15 = vsel %vm8514_vm12, %v5874_v22, %v5871_v52  ;;  %v5724_v0 = vand.u32 3, %v5698_v2  ;;  %v5892_v60 = vadd.f32 %v5868_v9, %v5764_v41 }
 0xa51   : > { %v7065_v19 = vpop.eup %7064  ;;  %v5932_v46 = vadd.f32 1.0, %v7063_v4  ;;  %v5886_v5 = vsel %vm5885_vm15, %v5883_v30, %v5880_v58  ;;  %v5766_v40 = vmax.f32 %v8405_v53, 0.0  ;;  %v5893_v6 = vadd.f32 %v5877_v15, %v5765_v47 }
 0xa52   : > { %v7067_v59 = vpop.eup %7066  ;;  %7076 = vrcp.f32 %v5931_v33  ;;  %v5933_v11 = vadd.f32 1.0, %v7065_v19  ;;  %vm8582_vm0 = vcmp.eq.s32.totalorder %v5717_v35, 3  ;;  %v5899_v36 = vsel %vm5771_vm1, %v8399_v38, %v5891_v25 }
 0xa53   : > { %7078 = vrcp.f32 %v5932_v46  ;;  %v5934_v7 = vadd.f32 1.0, %v7067_v59  ;;  %v5894_v17 = vadd.f32 %v5886_v5, %v5766_v40  ;;  %vm5772_vm2 = vcmp.ne.f32.partialorder %v8401_v12, %v8401_v12 }
 0xa54   : > { %v7069_v8 = vpop.eup %7068  ;;  %7080 = vrcp.f32 %v5933_v11  ;;  %vm8591_vm3 = vcmp.eq.s32.totalorder %v5724_v0, 3  ;;  %v5900_v24 = vsel %vm5772_vm2, %v8401_v12, %v5892_v60  ;;  %vm5773_vm4 = vcmp.ne.f32.partialorder %v8403_v48, %v8403_v48 }
 0xa55   : > { %v7071_v49 = vpop.eup %7070  ;;  %v5951_v42 = vsel %vm8534_vm13, %v5895_v63, %v7069_v8  ;;  %7082 = vrcp.f32 %v5934_v7  ;;  %v5901_v38 = vsel %vm5773_vm4, %v8403_v48, %v5893_v6  ;;  %vm5774_vm5 = vcmp.ne.f32.partialorder %v8405_v53, %v8405_v53 }
 0xa56   : > { %v7073_v18 = vpop.eup %7072  ;;  %5959 = vst [vmem:[%s8557_s10] sm:$0xff] %v5951_v42  ;;  %v5952_v45 = vsel %vm8534_vm13, %v5896_v55, %v7071_v49  ;;  %v5902_v61 = vsel %vm5774_vm5, %v8405_v53, %v5894_v17 }
 0xa57   : > { %v7075_v26 = vpop.eup %7074  ;;  %5960 = vst [vmem:[%s8557_s10 + $0x8] sm:$0xff] %v5952_v45  ;;  %v5953_v14 = vsel %vm8541_vm14, %v5897_v50, %v7073_v18 }
 0xa58   : > { %5961 = vst [vmem:[%s8557_s10 + $0x10] sm:$0xff] %v5953_v14  ;;  %v5954_v54 = vsel %vm8541_vm14, %v5898_v1, %v7075_v26 }
 0xa59   : > { %5962 = vst [vmem:[%s8557_s10 + $0x18] sm:$0xff] %v5954_v54 }
 0xa5b   : > { %5973 = sbr.rel (!%p7276_p9) target bundleno = 2666 (0xa6a), region = 128 }
 0xa5c   : > { %v7077_v57 = vpop.eup %7076 }
 0xa5d   : > { %v7079_v47 = vpop.eup %7078  ;;  %v5955_v16 = vsel %vm8582_vm0, %v5899_v36, %v7077_v57  ;;  %v5992_v48 = vld [vmem:[%s8557_s10] sm:$0xff] (%p7276_p9) }
 0xa5e   : > { %v7081_v10 = vpop.eup %7080  ;;  %5963 = vst [vmem:[%s8557_s10 + $0x20] sm:$0xff] %v5955_v16  ;;  %v5956_v20 = vsel %vm8582_vm0, %v5900_v24, %v7079_v47  ;;  %v5994_v53 = vld [vmem:[%s8557_s10 + $0x8] sm:$0xff] (%p7276_p9)  ;;  %5993 = vst [vmem:[%s5979_s22] sm:$0xff] (%p7276_p9), %v5992_v48 }
 0xa5f   : > { %v7083_v32 = vpop.eup %7082  ;;  %5964 = vst [vmem:[%s8557_s10 + $0x28] sm:$0xff] %v5956_v20  ;;  %v5957_v12 = vsel %vm8591_vm3, %v5901_v38, %v7081_v10  ;;  %v5996_v23 = vld [vmem:[%s8557_s10 + $0x10] sm:$0xff] (%p7276_p9)  ;;  %5995 = vst [vmem:[%s5979_s22 + $0x8] sm:$0xff] (%p7276_p9), %v5994_v53 }
 0xa60   : > { %5965 = vst [vmem:[%s8557_s10 + $0x30] sm:$0xff] %v5957_v12  ;;  %v5958_v34 = vsel %vm8591_vm3, %v5902_v61, %v7083_v32  ;;  %v5998_v3 = vld [vmem:[%s8557_s10 + $0x18] sm:$0xff] (%p7276_p9)  ;;  %5997 = vst [vmem:[%s5979_s22 + $0x20] sm:$0xff] (%p7276_p9), %v5996_v23 }
 0xa61   : > { %5966 = vst [vmem:[%s8557_s10 + $0x38] sm:$0xff] %v5958_v34  ;;  %5999 = vst [vmem:[%s5979_s22 + $0x28] sm:$0xff] (%p7276_p9), %v5998_v3 }
 0xa65   : > { %v6000_v63 = vld [vmem:[%s8557_s10 + $0x20] sm:$0xff] }
 0xa66   : > { %v6002_v55 = vld [vmem:[%s8557_s10 + $0x28] sm:$0xff]  ;;  %6001 = vst [vmem:[%s5979_s22 + $0x40] sm:$0xff] %v6000_v63 }
 0xa67   : > { %v6004_v51 = vld [vmem:[%s8557_s10 + $0x30] sm:$0xff]  ;;  %6003 = vst [vmem:[%s5979_s22 + $0x48] sm:$0xff] %v6002_v55 }
 0xa68   : > { %v6006_v22 = vld [vmem:[%s8557_s10 + $0x38] sm:$0xff]  ;;  %6005 = vst [vmem:[%s5979_s22 + $0x60] sm:$0xff] %v6004_v51 }
 0xa69   : > { %6007 = vst [vmem:[%s5979_s22 + $0x68] sm:$0xff] %v6006_v22 }
 0xa6a PF: > { %s17_s9 = sadd.s32 1, %s7162_s9   ;;  %s8813_s24 = smov %s7134_s25 }
 0xa6b   : > { %p14_p1 = scmp.ge.s32.totalorder %s17_s9, 6   ;;  %s8814_s25 = smov %s7281_s21 }
 0xa6c   : > { %s8815_s26 = smov %s7142_s27  ;;  %s8816_s27 = smov %s7270_s17 }
 0xa6d   : > { %s8817_s28 = smov %s7154_s30  ;;  %s8818_s29 = smov %s7158_s8 }
 0xa6e   : > { %s8819_s30 = smov %s8822_s11  ;;  %s8820_s8 = smov %s8826_s12 }
 0xa6f   :  { %16 = sbr.rel (!%p14_p1) target bundleno = 7 (0x7), region = 205 }

</bundles_post_ra>
